<compile_context>
chip_gen: v7x
topology: tpu7x:2x2x1
jax: 0.10.0
libtpu: 0.0.40
codegen_flags: <defaults>
</compile_context>

<pallas_src>
import jax
import jax.numpy as jnp
from jax import lax
from jax.experimental import pallas as pl


def _graph_constructor_kernel(x_ref, w_ref, b_ref, tng_ref, tnb_ref,
                              asg_ref, asb_ref, o_ref):
    # x_ref:  (B, C, N, T)  raw NCHW input (no host transpose)
    # w_ref:  (C, T, D)     conv weight as per-channel (T, D) blocks
    # b_ref / tng_ref / tnb_ref: (1, D)
    # asg_ref / asb_ref: (1, 1, N)
    # o_ref:  (B, N, N)
    B, C, N, T = x_ref.shape
    D = w_ref.shape[-1]
    BN = B * N

    # --- trans_Merge_line: Conv2d(in_dim, dim, (1, T)) == sum_c x_c @ W_c ------
    x = x_ref[...]
    acc = jnp.dot(x[:, 0].reshape(BN, T), w_ref[0],
                  preferred_element_type=jnp.float32)
    for c in range(1, C):                       # static unroll, C is tiny
        acc = acc + jnp.dot(x[:, c].reshape(BN, T), w_ref[c],
                            preferred_element_type=jnp.float32)
    h = acc + b_ref[...]                        # (BN, D)

    # --- time_norm: LayerNorm over D (eps=1e-5, affine) on all B*N rows -------
    mu = jnp.mean(h, axis=-1, keepdims=True)
    var = jnp.mean((h - mu) ** 2, axis=-1, keepdims=True)
    hn = (h - mu) * lax.rsqrt(var + 1e-5)
    hn = hn * tng_ref[...] + tnb_ref[...]       # (BN, D)

    # --- Spearman ranks along D: argsort(argsort(x)) via pairwise counts ------
    # rank[n,i] = #{j : x[n,j] < x[n,i]} + #{j < i : x[n,j] == x[n,i]}
    # NOTE: the (B*N, D, D) comparison cube scales as B*N*D^2; re-tile over D
    # (or switch to a sort-based rank) before scaling N/D up on v7x (64 MiB VMEM).
    xi = hn[:, :, None]                         # (BN, D, 1)
    xj = hn[:, None, :]                         # (BN, 1, D)
    i_idx = lax.broadcasted_iota(jnp.int32, (1, D, D), 1)
    j_idx = lax.broadcasted_iota(jnp.int32, (1, D, D), 2)
    smaller = (xj < xi) | ((xj == xi) & (j_idx < i_idx))
    rank = jnp.sum(smaller.astype(jnp.int32), axis=-1).astype(jnp.float32)  # (BN, D)

    # --- centered ranks; norm is a compile-time constant (rank is a permutation)
    cr = rank - (D - 1) / 2.0                   # mean(0..D-1) == (D-1)/2
    inv_den = 1.0 / (D * (D * D - 1) / 12.0 + 1e-8)   # ||centered||^2 per row
    cr3 = cr.reshape(B, N, D)
    corr = jnp.einsum('bnd,bmd->bnm', cr3, cr3,
                      preferred_element_type=jnp.float32)   # (B, N, N)
    s = jnp.abs(corr) * inv_den

    # --- attn_static: LayerNorm over N (eps=1e-5, affine), then ReLU ----------
    mu2 = jnp.mean(s, axis=-1, keepdims=True)
    var2 = jnp.mean((s - mu2) ** 2, axis=-1, keepdims=True)
    sn = (s - mu2) * lax.rsqrt(var2 + 1e-5)
    sn = sn * asg_ref[...] + asb_ref[...]
    o_ref[...] = jnp.maximum(sn, 0.0)


@jax.jit
def graph_constructor_forward(inp, conv_w, conv_b, tn_g, tn_b, as_g, as_b):
    """inp: (B, in_dim, N, T) NCHW; conv_w: (dim, in_dim, 1, T); conv_b: (dim,)."""
    B, C, N, T = inp.shape
    D = conv_w.shape[0]

    # Tiny parameter re-layouts (fused / constant-folded under jit).  The large
    # input tensor is passed straight through with no host-side transpose.
    w_ctd = jnp.transpose(conv_w[:, :, 0, :], (1, 2, 0)).astype(jnp.float32)  # (C,T,D)
    bias = conv_b.reshape(1, D).astype(jnp.float32)
    tn_g2 = tn_g.reshape(1, D).astype(jnp.float32)
    tn_b2 = tn_b.reshape(1, D).astype(jnp.float32)
    as_g2 = as_g.reshape(1, 1, N).astype(jnp.float32)
    as_b2 = as_b.reshape(1, 1, N).astype(jnp.float32)

    # Single fused step: no grid, whole arrays resident in VMEM (a few hundred
    # KiB total), so BlockSpec pipelining is unnecessary at these sizes.
    return pl.pallas_call(
        _graph_constructor_kernel,
        out_shape=jax.ShapeDtypeStruct((B, N, N), jnp.float32),
    )(inp.astype(jnp.float32), w_ctd, bias, tn_g2, tn_b2, as_g2, as_b2)


def _reference_forward(inp, conv_w, conv_b, tn_g, tn_b, as_g, as_b):
    """Pure-JAX reference mirroring the PyTorch module."""
    B, C, N, T = inp.shape
    D = conv_w.shape[0]
    x = jnp.transpose(inp, (0, 2, 1, 3)).reshape(B, N, C * T)
    w = conv_w.reshape(D, C * T).T
    h = x @ w + conv_b
    mu = h.mean(-1, keepdims=True)
    var = ((h - mu) ** 2).mean(-1, keepdims=True)
    hn = (h - mu) / jnp.sqrt(var + 1e-5) * tn_g + tn_b
    rank = jnp.argsort(jnp.argsort(hn, axis=-1), axis=-1).astype(jnp.float32)
    c = rank - rank.mean(-1, keepdims=True)
    norm = jnp.sqrt((c ** 2).sum(-1, keepdims=True))
    corr = jnp.einsum('bnd,bmd->bnm', c, c)
    s = jnp.abs(corr / (norm * jnp.swapaxes(norm, 1, 2) + 1e-8))
    mu2 = s.mean(-1, keepdims=True)
    var2 = ((s - mu2) ** 2).mean(-1, keepdims=True)
    sn = (s - mu2) / jnp.sqrt(var2 + 1e-5) * as_g + as_b
    return jnp.maximum(sn, 0.0)


if __name__ == "__main__":
    # Module hyper-params (small): nodes=16, dim=32, in_dim=2,
    # time_step=7 with is_add1=True -> effective T = 8, batch B = 2.
    B, in_dim, N, D = 2, 2, 16, 32
    T = 7 + 1  # is_add1=True

    key = jax.random.PRNGKey(0)
    k_in, k_w, k_b = jax.random.split(key, 3)
    inp = jax.random.normal(k_in, (B, in_dim, N, T), dtype=jnp.float32)

    # Deterministic synthetic parameters (shapes per __init__):
    conv_w = 0.1 * jax.random.normal(k_w, (D, in_dim, 1, T), dtype=jnp.float32)
    conv_b = 0.1 * jax.random.normal(k_b, (D,), dtype=jnp.float32)
    tn_g = jnp.ones((D,), jnp.float32)   # time_norm = LayerNorm(dim)
    tn_b = jnp.zeros((D,), jnp.float32)
    as_g = jnp.ones((N,), jnp.float32)   # attn_static = LayerNorm(nodes)
    as_b = jnp.zeros((N,), jnp.float32)

    adj = graph_constructor_forward(inp, conv_w, conv_b, tn_g, tn_b, as_g, as_b)
    jax.block_until_ready(adj)

    assert adj.shape == (B, N, N) and adj.dtype == jnp.float32
    assert bool(jnp.all(adj >= 0.0))  # post-ReLU

    ref = _reference_forward(inp, conv_w, conv_b, tn_g, tn_b, as_g, as_b)
    assert bool(jnp.allclose(adj, ref, rtol=1e-3, atol=1e-3)), \
        float(jnp.max(jnp.abs(adj - ref)))

    print("KERNEL_OK")
</pallas_src>

<mosaic_0001>
module attributes {stable_mosaic.version = 11 : i64} {
  func.func @_graph_constructor_kernel(%arg0: memref<2x2x16x8xf32, #tpu.memory_space<vmem>>, %arg1: memref<2x8x32xf32, #tpu.memory_space<vmem>>, %arg2: memref<1x32xf32, #tpu.memory_space<vmem>>, %arg3: memref<1x32xf32, #tpu.memory_space<vmem>>, %arg4: memref<1x32xf32, #tpu.memory_space<vmem>>, %arg5: memref<1x1x16xf32, #tpu.memory_space<vmem>>, %arg6: memref<1x1x16xf32, #tpu.memory_space<vmem>>, %arg7: memref<2x16x16xf32, #tpu.memory_space<vmem>>) attributes {dimension_semantics = [], scalar_prefetch = 0 : i64, scratch_operands = 0 : i64, tpu.core_type = #tpu.core_type<tc>} {
    %c0 = arith.constant 0 : index
    %c0_0 = arith.constant 0 : index
    %c0_1 = arith.constant 0 : index
    %c0_2 = arith.constant 0 : index
    %0 = vector.load %arg0[%c0, %c0_0, %c0_1, %c0_2] : memref<2x2x16x8xf32, #tpu.memory_space<vmem>>, vector<2x2x16x8xf32>
    %1 = vector.extract_strided_slice %0 {offsets = [0, 0, 0, 0], sizes = [2, 1, 16, 8], strides = [1, 1, 1, 1]} : vector<2x2x16x8xf32> to vector<2x1x16x8xf32>
    %2 = vector.shape_cast %1 : vector<2x1x16x8xf32> to vector<2x16x8xf32>
    %3 = vector.shape_cast %2 : vector<2x16x8xf32> to vector<32x8xf32>
    %c0_3 = arith.constant 0 : index
    %c0_4 = arith.constant 0 : index
    %c0_5 = arith.constant 0 : index
    %4 = vector.load %arg1[%c0_3, %c0_4, %c0_5] : memref<2x8x32xf32, #tpu.memory_space<vmem>>, vector<1x8x32xf32>
    %5 = vector.shape_cast %4 : vector<1x8x32xf32> to vector<8x32xf32>
    %cst = arith.constant dense<0.000000e+00> : vector<32x32xf32>
    %6 = tpu.matmul %3, %5, %cst {dimension_numbers = #tpu.dot_dimension_numbers<[1], [0], [0], [1], [0, 0, 1, 1], [], []>} : vector<32x8xf32>, vector<8x32xf32>, vector<32x32xf32> -> vector<32x32xf32>
    %7 = vector.extract_strided_slice %0 {offsets = [0, 1, 0, 0], sizes = [2, 1, 16, 8], strides = [1, 1, 1, 1]} : vector<2x2x16x8xf32> to vector<2x1x16x8xf32>
    %8 = vector.shape_cast %7 : vector<2x1x16x8xf32> to vector<2x16x8xf32>
    %9 = vector.shape_cast %8 : vector<2x16x8xf32> to vector<32x8xf32>
    %c1 = arith.constant 1 : index
    %c0_6 = arith.constant 0 : index
    %c0_7 = arith.constant 0 : index
    %10 = vector.load %arg1[%c1, %c0_6, %c0_7] : memref<2x8x32xf32, #tpu.memory_space<vmem>>, vector<1x8x32xf32>
    %11 = vector.shape_cast %10 : vector<1x8x32xf32> to vector<8x32xf32>
    %cst_8 = arith.constant dense<0.000000e+00> : vector<32x32xf32>
    %12 = tpu.matmul %9, %11, %cst_8 {dimension_numbers = #tpu.dot_dimension_numbers<[1], [0], [0], [1], [0, 0, 1, 1], [], []>} : vector<32x8xf32>, vector<8x32xf32>, vector<32x32xf32> -> vector<32x32xf32>
    %13 = arith.addf %6, %12 : vector<32x32xf32>
    %c0_9 = arith.constant 0 : index
    %c0_10 = arith.constant 0 : index
    %14 = vector.load %arg2[%c0_9, %c0_10] : memref<1x32xf32, #tpu.memory_space<vmem>>, vector<1x32xf32>
    %15 = vector.broadcast %14 : vector<1x32xf32> to vector<32x32xf32>
    %16 = arith.addf %13, %15 : vector<32x32xf32>
    %cst_11 = arith.constant dense<0.000000e+00> : vector<32xf32>
    %17 = vector.multi_reduction <add>, %16, %cst_11 [1] : vector<32x32xf32> to vector<32xf32>
    %18 = vector.shape_cast %17 : vector<32xf32> to vector<32x1xf32>
    %cst_12 = arith.constant 3.200000e+01 : f32
    %19 = vector.broadcast %cst_12 : f32 to vector<32x1xf32>
    %20 = arith.divf %18, %19 : vector<32x1xf32>
    %21 = vector.broadcast %20 : vector<32x1xf32> to vector<32x32xf32>
    %22 = arith.subf %16, %21 : vector<32x32xf32>
    %23 = arith.mulf %22, %22 : vector<32x32xf32>
    %cst_13 = arith.constant dense<0.000000e+00> : vector<32xf32>
    %24 = vector.multi_reduction <add>, %23, %cst_13 [1] : vector<32x32xf32> to vector<32xf32>
    %25 = vector.shape_cast %24 : vector<32xf32> to vector<32x1xf32>
    %cst_14 = arith.constant 3.200000e+01 : f32
    %26 = vector.broadcast %cst_14 : f32 to vector<32x1xf32>
    %27 = arith.divf %25, %26 : vector<32x1xf32>
    %28 = vector.broadcast %20 : vector<32x1xf32> to vector<32x32xf32>
    %29 = arith.subf %16, %28 : vector<32x32xf32>
    %cst_15 = arith.constant 9.99999974E-6 : f32
    %30 = vector.broadcast %cst_15 : f32 to vector<32x1xf32>
    %31 = arith.addf %27, %30 : vector<32x1xf32>
    %32 = math.rsqrt %31 : vector<32x1xf32>
    %33 = vector.broadcast %32 : vector<32x1xf32> to vector<32x32xf32>
    %34 = arith.mulf %29, %33 : vector<32x32xf32>
    %c0_16 = arith.constant 0 : index
    %c0_17 = arith.constant 0 : index
    %35 = vector.load %arg3[%c0_16, %c0_17] : memref<1x32xf32, #tpu.memory_space<vmem>>, vector<1x32xf32>
    %36 = vector.broadcast %35 : vector<1x32xf32> to vector<32x32xf32>
    %37 = arith.mulf %34, %36 : vector<32x32xf32>
    %c0_18 = arith.constant 0 : index
    %c0_19 = arith.constant 0 : index
    %38 = vector.load %arg4[%c0_18, %c0_19] : memref<1x32xf32, #tpu.memory_space<vmem>>, vector<1x32xf32>
    %39 = vector.broadcast %38 : vector<1x32xf32> to vector<32x32xf32>
    %40 = arith.addf %37, %39 : vector<32x32xf32>
    %41 = vector.shape_cast %40 : vector<32x32xf32> to vector<32x32x1xf32>
    %42 = vector.shape_cast %40 : vector<32x32xf32> to vector<32x1x32xf32>
    %43 = tpu.iota {dimensions = array<i32: 1>} : vector<1x32x32xi32>
    %44 = tpu.iota {dimensions = array<i32: 2>} : vector<1x32x32xi32>
    %45 = vector.broadcast %42 : vector<32x1x32xf32> to vector<32x32x32xf32>
    %46 = vector.broadcast %41 : vector<32x32x1xf32> to vector<32x32x32xf32>
    %47 = arith.cmpf olt, %45, %46 : vector<32x32x32xf32>
    %48 = vector.broadcast %42 : vector<32x1x32xf32> to vector<32x32x32xf32>
    %49 = vector.broadcast %41 : vector<32x32x1xf32> to vector<32x32x32xf32>
    %50 = arith.cmpf oeq, %48, %49 : vector<32x32x32xf32>
    %51 = arith.cmpi slt, %44, %43 : vector<1x32x32xi32>
    %52 = vector.broadcast %51 : vector<1x32x32xi1> to vector<32x32x32xi1>
    %53 = arith.andi %50, %52 : vector<32x32x32xi1>
    %54 = arith.ori %47, %53 : vector<32x32x32xi1>
    %55 = arith.extui %54 : vector<32x32x32xi1> to vector<32x32x32xi32>
    %cst_20 = arith.constant dense<0> : vector<32x32xi32>
    %56 = vector.multi_reduction <add>, %55, %cst_20 [2] : vector<32x32x32xi32> to vector<32x32xi32>
    %57 = arith.sitofp %56 : vector<32x32xi32> to vector<32x32xf32>
    %cst_21 = arith.constant 1.550000e+01 : f32
    %58 = vector.broadcast %cst_21 : f32 to vector<32x32xf32>
    %59 = arith.subf %57, %58 : vector<32x32xf32>
    %60 = vector.shape_cast %59 : vector<32x32xf32> to vector<2x16x32xf32>
    "tpu.trace_start"() <{level = 10 : i32, message = "bnd,bmd->bnm"}> : () -> ()
    %cst_22 = arith.constant dense<0.000000e+00> : vector<2x16x16xf32>
    %61 = tpu.matmul %60, %60, %cst_22 {dimension_numbers = #tpu.dot_dimension_numbers<[2], [2], [1], [1], [0, 0, 0, 1, 1, 1], [0], [0]>} : vector<2x16x32xf32>, vector<2x16x32xf32>, vector<2x16x16xf32> -> vector<2x16x16xf32>
    "tpu.trace_stop"() : () -> ()
    %62 = math.absf %61 : vector<2x16x16xf32>
    %cst_23 = arith.constant 3.66568915E-4 : f32
    %63 = vector.broadcast %cst_23 : f32 to vector<2x16x16xf32>
    %64 = arith.mulf %62, %63 : vector<2x16x16xf32>
    %cst_24 = arith.constant dense<0.000000e+00> : vector<2x16xf32>
    %65 = vector.multi_reduction <add>, %64, %cst_24 [2] : vector<2x16x16xf32> to vector<2x16xf32>
    %66 = vector.shape_cast %65 : vector<2x16xf32> to vector<2x16x1xf32>
    %cst_25 = arith.constant 1.600000e+01 : f32
    %67 = vector.broadcast %cst_25 : f32 to vector<2x16x1xf32>
    %68 = arith.divf %66, %67 : vector<2x16x1xf32>
    %69 = vector.broadcast %68 : vector<2x16x1xf32> to vector<2x16x16xf32>
    %70 = arith.subf %64, %69 : vector<2x16x16xf32>
    %71 = arith.mulf %70, %70 : vector<2x16x16xf32>
    %cst_26 = arith.constant dense<0.000000e+00> : vector<2x16xf32>
    %72 = vector.multi_reduction <add>, %71, %cst_26 [2] : vector<2x16x16xf32> to vector<2x16xf32>
    %73 = vector.shape_cast %72 : vector<2x16xf32> to vector<2x16x1xf32>
    %cst_27 = arith.constant 1.600000e+01 : f32
    %74 = vector.broadcast %cst_27 : f32 to vector<2x16x1xf32>
    %75 = arith.divf %73, %74 : vector<2x16x1xf32>
    %76 = vector.broadcast %68 : vector<2x16x1xf32> to vector<2x16x16xf32>
    %77 = arith.subf %64, %76 : vector<2x16x16xf32>
    %cst_28 = arith.constant 9.99999974E-6 : f32
    %78 = vector.broadcast %cst_28 : f32 to vector<2x16x1xf32>
    %79 = arith.addf %75, %78 : vector<2x16x1xf32>
    %80 = math.rsqrt %79 : vector<2x16x1xf32>
    %81 = vector.broadcast %80 : vector<2x16x1xf32> to vector<2x16x16xf32>
    %82 = arith.mulf %77, %81 : vector<2x16x16xf32>
    %c0_29 = arith.constant 0 : index
    %c0_30 = arith.constant 0 : index
    %c0_31 = arith.constant 0 : index
    %83 = vector.load %arg5[%c0_29, %c0_30, %c0_31] : memref<1x1x16xf32, #tpu.memory_space<vmem>>, vector<1x1x16xf32>
    %84 = vector.broadcast %83 : vector<1x1x16xf32> to vector<2x16x16xf32>
    %85 = arith.mulf %82, %84 : vector<2x16x16xf32>
    %c0_32 = arith.constant 0 : index
    %c0_33 = arith.constant 0 : index
    %c0_34 = arith.constant 0 : index
    %86 = vector.load %arg6[%c0_32, %c0_33, %c0_34] : memref<1x1x16xf32, #tpu.memory_space<vmem>>, vector<1x1x16xf32>
    %87 = vector.broadcast %86 : vector<1x1x16xf32> to vector<2x16x16xf32>
    %88 = arith.addf %85, %87 : vector<2x16x16xf32>
    %cst_35 = arith.constant 0.000000e+00 : f32
    %89 = vector.broadcast %cst_35 : f32 to vector<2x16x16xf32>
    %90 = arith.maximumf %88, %89 : vector<2x16x16xf32>
    %c0_36 = arith.constant 0 : index
    %c0_37 = arith.constant 0 : index
    %c0_38 = arith.constant 0 : index
    %91 = vector.load %arg7[%c0_36, %c0_37, %c0_38] : memref<2x16x16xf32, #tpu.memory_space<vmem>>, vector<2x16x16xf32>
    tpu.vector_store %arg7[%c0_36, %c0_37, %c0_38], %90 {strides = array<i32>} : memref<2x16x16xf32, #tpu.memory_space<vmem>>, vector<2x16x16xf32>,
    return
  }
}

</mosaic_0001>

<bundles_post_ra>
// kernel: graph_constructor_forward.1
= control target key start
LH: loop header
LB: loop body
LE: loop exit
PB: predicated region body
PF: predicated region fallthrough
CT: control target
= control target key end

     0   :  { %vm38_vm0 = vcmask 64512   ;;  %s9871_s0 = inlined_call_operand.vmem [shape: f32[2,2,16,8], index: 0, kind: input, shape index: {}]   ;;  %s9872_s1 = inlined_call_operand.vmem [shape: f32[2,8,32], index: 1, kind: input, shape index: {}]   ;;  %s9873_s2 = inlined_call_operand.vmem [shape: f32[1,32], index: 2, kind: input, shape index: {}]   ;;  %s9874_s3 = inlined_call_operand.vmem [shape: f32[1,32], index: 3, kind: input, shape index: {}]   ;;  %s9875_s4 = inlined_call_operand.vmem [shape: f32[1,32], index: 4, kind: input, shape index: {}]   ;;  %s9876_s5 = inlined_call_operand.vmem [shape: f32[1,1,16], index: 5, kind: input, shape index: {}]   ;;  %s9877_s6 = inlined_call_operand.vmem [shape: f32[1,1,16], index: 6, kind: input, shape index: {}]   ;;  %s9878_s7 = inlined_call_operand.hbm [shape: f32[2,16,16], index: 7, kind: output, shape index: {}]  }
   0x1   :  { %v4910_v0 = vld [vmem:[%s9872_s1 + $0x8] sm:$0xff]  ;;  %v29_v1 = vld [vmem:[%s9871_s0 + $0x10] sm:$0xff]  ;;  %v30_v2 = vld [vmem:[%s9871_s0 + $0x18] sm:$0xff] }
   0x2   :  { %5078 = vmatprep.subr.mxu0 %v4910_v0  ;;  %5080 = vmatprep.mubr.msk.f32.mxu0 %vm38_vm0, %v29_v1  ;;  %v35_v3 = vld [vmem:[%s9872_s1] sm:$0xff]  ;;  %v33_v4 = vld [vmem:[%s9871_s0 + $0x30] sm:$0xff] }
   0x3   :  { %5079 = vmatpush3.msra.mxu0 %v4910_v0 }
   0x4   :  { %5081 = vmatmul.mubr.msk.f32.vlgmr.msra.gmra.mrb[0].mxu0 %vm38_vm0, %v30_v2  ;;  %5086 = vmatprep.subr.mxu0 %v35_v3 }
   0x5   :  { %12 = vsyncpa [#allocation3], 0  ;;  %5087 = vmatpush3.msra.mxu0 %v35_v3  ;;  %5083 = vmatprep.mubr.msk.f32.mxu0 %vm38_vm0, %v33_v4  ;;  %v34_v5 = vld [vmem:[%s9871_s0 + $0x38] sm:$0xff]  ;;  %v27_v6 = vld [vmem:[%s9871_s0] sm:$0xff]  ;;  %vm9991_vm1 = vcmask 261120   ;;  %v9879_v54 = vlaneseq }
   0x6   :  { %v28_v7 = vld [vmem:[%s9871_s0 + $0x8] sm:$0xff]  ;;  %v31_v8 = vld [vmem:[%s9871_s0 + $0x20] sm:$0xff]  ;;  %v5169_v56 = vmov 1966171168  }
   0x7   :  { %v32_v9 = vld [vmem:[%s9871_s0 + $0x28] sm:$0xff]  ;;  %v4919_v10 = vld [vmem:[%s9873_s2] ss:$0 sm:$0xff]  ;;  %v934_v57 = vunpack.c.l.s4 %v5169_v56  ;;  %v5264_v58 = vshrl.u32 %v9879_v54, 7 }
   0x8   :  { %5084 = vmatmul.mubr.msk.f32.gmra.mrb[2].mxu0 %vm38_vm0, %v34_v5  ;;  %v4920_v60 = vld [vmem:[%s9874_s3] ss:$0 sm:$0xff] }
   0x9   :  { %5088 = vmatprep.mubr.msk.f32.mxu0 %vm38_vm0, %v27_v6  ;;  %v4921_v62 = vld [vmem:[%s9875_s4] ss:$0 sm:$0xff]  ;;  %v935_v63 = vunpack.c.0.s8 %v934_v57  ;;  %v5273_v1 = vsub.s32 0, %v5264_v58 }
   0xc   :  { %5089 = vmatmul.mubr.msk.f32.vlgmr.msra.gmra.mrb[0].mxu0 %vm38_vm0, %v28_v7  ;;  %v5278_v7 = vsub.s32 %v935_v63, %v5264_v58 }
   0xd   :  { %5091 = vmatprep.mubr.msk.f32.mxu0 %vm38_vm0, %v31_v8 }
  0x10   :  { %5092 = vmatmul.mubr.msk.f32.gmra.mrb[2].mxu0 %vm38_vm0, %v32_v9 }
  0xdf   :  { %v5090_v11 = vpop.f32.mrb[0].mxu0 }
  0xe0   :  { %v241_v12 = vadd.f32 %v5090_v11, %v4919_v10  ;;  %v214_v13 = vpop.f32.mrb[1].mxu0 }
  0xe1   :  { %v240_v14 = vadd.f32 %v4919_v10, %v214_v13  ;;  %v5286_v13 = vsub.s32 2, %v5264_v58 }
  0xe2   :  { %v248_v15 = vsel %vm9991_vm1, %v241_v12, 0.0 }
  0xe3   :  { %249 = vadd.xlane.f32.xlu0 %v248_v15  ;;  %v5093_v16 = vpop.f32.mrb[2].mxu0  ;;  %v245_v20 = vsel %vm9991_vm1, %v240_v14, 0.0 }
  0xe4   :  { %v243_v17 = vadd.f32 %v5093_v16, %v4919_v10  ;;  %v224_v18 = vpop.f32.mrb[3].mxu0  ;;  %v5291_v16 = vsub.s32 3, %v5264_v58 }
  0xe5   :  { %v242_v19 = vadd.f32 %v4919_v10, %v224_v18 }
  0xe6   :  { %v254_v21 = vsel %vm9991_vm1, %v243_v17, 0.0 }
  0xe7   :  { %246 = vadd.xlane.f32.xlu0 %v245_v20  ;;  %255 = vadd.xlane.f32.xlu1 %v254_v21  ;;  %v251_v22 = vsel %vm9991_vm1, %v242_v19, 0.0  ;;  %v5298_v20 = vsub.s32 4, %v5264_v58 }
  0xeb   :  { %252 = vadd.xlane.f32.xlu1 %v251_v22 }
 0x170   :  { %v250_v23 = vpop.xlane.xlu0 %249 }
 0x171   :  { %v259_v24 = vmul.f32 0.03125, %v250_v23 }
 0x173   :  { %v263_v25 = vsub.f32 %v241_v12, %v259_v24  ;;  %v5283_v12 = vsub.s32 1, %v5264_v58 }
 0x174   :  { %v247_v26 = vpop.xlane.xlu0 %246  ;;  %v256_v27 = vpop.xlane.xlu1 %255 }
 0x175   :  { %v258_v28 = vmul.f32 0.03125, %v247_v26  ;;  %v261_v29 = vmul.f32 0.03125, %v256_v27  ;;  %v267_v30 = vmul.f32 %v263_v25, %v263_v25  ;;  %v5316_v26 = vsub.s32 6, %v5264_v58 }
 0x177   :  { %v262_v31 = vsub.f32 %v240_v14, %v258_v28  ;;  %v265_v32 = vsub.f32 %v243_v17, %v261_v29  ;;  %v273_v33 = vsel %vm9991_vm1, %v267_v30, 0.0  ;;  %v5325_v29 = vsub.s32 7, %v5264_v58 }
 0x178   :  { %274 = vadd.xlane.f32.xlu1 %v273_v33  ;;  %v253_v34 = vpop.xlane.xlu1 %252 }
 0x179   :  { %v260_v35 = vmul.f32 0.03125, %v253_v34  ;;  %v266_v36 = vmul.f32 %v262_v31, %v262_v31  ;;  %v269_v37 = vmul.f32 %v265_v32, %v265_v32 }
 0x17b   :  { %v264_v38 = vsub.f32 %v242_v19, %v260_v35  ;;  %v270_v39 = vsel %vm9991_vm1, %v266_v36, 0.0  ;;  %v279_v40 = vsel %vm9991_vm1, %v269_v37, 0.0 }
 0x17c   :  { %271 = vadd.xlane.f32.xlu0 %v270_v39  ;;  %280 = vadd.xlane.f32.xlu1 %v279_v40 }
 0x17d   :  { %v268_v41 = vmul.f32 %v264_v38, %v264_v38 }
 0x17f   :  { %v276_v42 = vsel %vm9991_vm1, %v268_v41, 0.0 }
 0x180   :  { %277 = vadd.xlane.f32.xlu0 %v276_v42 }
 0x205   :  { %v275_v43 = vpop.xlane.xlu1 %274 }
 0x206   :  { %v283_v44 = vmul.f32 0.03125, %v275_v43 }
 0x208   :  { %v287_v45 = vadd.f32 1e-05, %v283_v44 }
 0x209   :  { %v272_v46 = vpop.xlane.xlu0 %271  ;;  %v281_v47 = vpop.xlane.xlu1 %280 }
 0x20a   :  { %5129 = vrsqrt.f32 %v287_v45  ;;  %v282_v48 = vmul.f32 0.03125, %v272_v46  ;;  %v285_v49 = vmul.f32 0.03125, %v281_v47 }
 0x20c   :  { %v286_v50 = vadd.f32 1e-05, %v282_v48  ;;  %v289_v51 = vadd.f32 1e-05, %v285_v49 }
 0x20d   :  { %v278_v52 = vpop.xlane.xlu0 %277 }
 0x20e   :  { %5131 = vrsqrt.f32 %v286_v50  ;;  %v284_v53 = vmul.f32 0.03125, %v278_v52 }
 0x20f   :  { %5133 = vrsqrt.f32 %v289_v51 }
 0x210   :  { %v288_v55 = vadd.f32 1e-05, %v284_v53 }
 0x212   :  { %5135 = vrsqrt.f32 %v288_v55 }
 0x214   :  { %v5130_v59 = vpop.eup %5129 }
 0x215   :  { %v295_v61 = vmul.f32 %v5130_v59, %v263_v25  ;;  %v5313_v25 = vsub.s32 5, %v5264_v58 }
 0x217   :  { %v306_v0 = vmul.f32 %v4920_v60, %v295_v61 }
 0x218   :  { %v5132_v2 = vpop.eup %5131 }
 0x219   :  { %v5134_v3 = vpop.eup %5133  ;;  %v5275_v4 = vadd.f32 %v4921_v62, %v306_v0  ;;  %v294_v5 = vmul.f32 %v5132_v2, %v262_v31 }
 0x21a   :  { %v297_v6 = vmul.f32 %v5134_v3, %v265_v32 }
 0x21b   :  { %v305_v8 = vmul.f32 %v4920_v60, %v294_v5  ;;  %v475_v9 = vrot.slane %v5275_v4, %v5273_v1  ;;  %v988_v18 = vrot.slane %v5275_v4, %v5278_v7  ;;  %v981_v22 = vcombine.high %v5275_v4, %v5275_v4 }
 0x21c   :  { %v5136_v10 = vpop.eup %5135  ;;  %v308_v11 = vmul.f32 %v4920_v60, %v297_v6  ;;  %v494_v23 = vrot.slane %v5275_v4, %v5283_v12  ;;  %v5310_v24 = vrot.slane %v5275_v4, %v5286_v13  ;;  %v5322_v28 = vrot.slane %v5275_v4, %v5291_v16 }
 0x21d   :  { %v5288_v14 = vadd.f32 %v4921_v62, %v305_v8  ;;  %v296_v15 = vmul.f32 %v5136_v10, %v264_v38  ;;  %481 = vbcast.lane.b32.xlu1 %v475_v9, 264  ;;  %477 = vbcast.lane.b32.xlu0 %v475_v9, 256  ;;  %v1004_v30 = vrot.slane %v988_v18, %v5278_v7 }
 0x21e   :  { %v5293_v17 = vadd.f32 %v4921_v62, %v308_v11  ;;  %v996_v31 = vcombine.high %v988_v18, %v988_v18  ;;  %v995_v37 = vrot.slane %v981_v22, %v5278_v7 }
 0x21f   :  { %v307_v19 = vmul.f32 %v4920_v60, %v296_v15  ;;  %v5302_v21 = vrot.slane %v5288_v14, %v5273_v1  ;;  %v5341_v35 = vrot.slane %v1004_v30, %v5273_v1  ;;  %v1026_v36 = vcombine.high %v1004_v30, %v1004_v30 }
 0x220   :  { %v5330_v32 = vrot.slane %v5293_v17, %v5273_v1  ;;  %v5334_v33 = vrot.slane %v5293_v17, %v5283_v12  ;;  %v5338_v34 = vrot.slane %v5293_v17, %v5286_v13  ;;  %v5346_v38 = vrot.slane %v5293_v17, %v5291_v16 }
 0x221   :  { %v5318_v27 = vadd.f32 %v4921_v62, %v307_v19  ;;  %489 = vbcast.lane.b32.xlu1 %v475_v9, 280  ;;  %485 = vbcast.lane.b32.xlu0 %v475_v9, 272  ;;  %v1018_v39 = vrot.slane %v996_v31, %v5278_v7  ;;  %v5351_v40 = vrot.slane %v5293_v17, %v5298_v20 }
 0x222   :  { %v5355_v41 = vrot.slane %v5293_v17, %v5313_v25  ;;  %v5359_v42 = vrot.slane %v5293_v17, %v5316_v26  ;;  %v5362_v43 = vrot.slane %v1026_v36, %v5273_v1  ;;  %v1011_v44 = vrot.slane %v995_v37, %v5278_v7 }
 0x223   :  { %v997_v45 = vcombine.high %v995_v37, %v995_v37  ;;  %v5366_v46 = vrot.slane %v1018_v39, %v5273_v1  ;;  %v1028_v47 = vcombine.high %v1018_v39, %v1018_v39  ;;  %v939_v48 = vrot.slane %v5288_v14, %v5278_v7 }
 0x224   :  { %v5372_v49 = vrot.slane %v5293_v17, %v5325_v29  ;;  %v5375_v50 = vrot.slane %v1011_v44, %v5273_v1  ;;  %v1027_v52 = vcombine.high %v1011_v44, %v1011_v44  ;;  %v5380_v53 = vrot.slane %v5318_v27, %v5273_v1 }
 0x225   :  { %500 = vbcast.lane.b32.xlu1 %v494_v23, 264  ;;  %496 = vbcast.lane.b32.xlu0 %v494_v23, 256  ;;  %v1025_v51 = vrot.slane %v997_v45, %v5278_v7  ;;  %v5383_v55 = vrot.slane %v1028_v47, %v5273_v1  ;;  %v955_v56 = vrot.slane %v939_v48, %v5278_v7 }
 0x226   :  { %v947_v57 = vcombine.high %v939_v48, %v939_v48  ;;  %v5388_v59 = vrot.slane %v5318_v27, %v5283_v12  ;;  %v5394_v61 = vrot.slane %v1027_v52, %v5273_v1  ;;  %v5402_v3 = vrot.slane %v5318_v27, %v5286_v13 }
 0x227   :  { %v5391_v60 = vrot.slane %v1025_v51, %v5273_v1  ;;  %v1029_v62 = vcombine.high %v1025_v51, %v1025_v51  ;;  %v5397_v63 = vrot.slane %v955_v56, %v5273_v1  ;;  %v977_v2 = vcombine.high %v955_v56, %v955_v56 }
 0x228   :  { %v969_v0 = vrot.slane %v947_v57, %v5278_v7  ;;  %v932_v6 = vcombine.high %v5288_v14, %v5288_v14  ;;  %v5411_v8 = vrot.slane %v5318_v27, %v5291_v16  ;;  %v5415_v9 = vrot.slane %v5318_v27, %v5298_v20 }
 0x229   :  { %508 = vbcast.lane.b32.xlu1 %v494_v23, 280  ;;  %504 = vbcast.lane.b32.xlu0 %v494_v23, 272  ;;  %v5405_v5 = vrot.slane %v1029_v62, %v5273_v1  ;;  %v5421_v11 = vrot.slane %v977_v2, %v5273_v1  ;;  %v5425_v18 = vrot.slane %v5318_v27, %v5313_v25 }
 0x22a   :  { %v5418_v10 = vrot.slane %v969_v0, %v5273_v1  ;;  %v979_v15 = vcombine.high %v969_v0, %v969_v0  ;;  %v946_v19 = vrot.slane %v932_v6, %v5278_v7  ;;  %v5432_v22 = vrot.slane %v5318_v27, %v5316_v26 }
 0x22b   :  { %9999 = vst [vmem:[#allocation5_spill] sm:$0xff] %v5421_v11  ;;  %v1086_v23 = vrot.slane %v5293_v17, %v5278_v7  ;;  %v5441_v31 = vrot.slane %v5318_v27, %v5325_v29  ;;  %v1079_v36 = vcombine.high %v5293_v17, %v5293_v17  ;;  %v1037_v37 = vrot.slane %v5318_v27, %v5278_v7 }
 0x22c   :  { %v5437_v30 = vrot.slane %v979_v15, %v5273_v1  ;;  %v962_v39 = vrot.slane %v946_v19, %v5278_v7  ;;  %v948_v44 = vcombine.high %v946_v19, %v946_v19  ;;  %v1030_v56 = vcombine.high %v5318_v27, %v5318_v27 }
 0x22d   :  { %519 = vbcast.lane.b32.xlu1 %v5310_v24, 264  ;;  %515 = vbcast.lane.b32.xlu0 %v5310_v24, 256  ;;  %v1102_v45 = vrot.slane %v1086_v23, %v5278_v7  ;;  %v1094_v47 = vcombine.high %v1086_v23, %v1086_v23  ;;  %v1093_v48 = vrot.slane %v1079_v36, %v5278_v7 }
 0x22e   :  { %10000 = vst [vmem:[#allocation6_spill] sm:$0xff] %v5437_v30  ;;  %v1053_v51 = vrot.slane %v1037_v37, %v5278_v7  ;;  %v1045_v52 = vcombine.high %v1037_v37, %v1037_v37  ;;  %v5456_v17 = vrot.slane %v962_v39, %v5273_v1  ;;  %v976_v57 = vrot.slane %v948_v44, %v5278_v7 }
 0x22f   :  { %v978_v62 = vcombine.high %v962_v39, %v962_v39  ;;  %v5460_v0 = vrot.slane %v1102_v45, %v5273_v1  ;;  %v1116_v2 = vrot.slane %v1094_v47, %v5278_v7  ;;  %v1124_v6 = vcombine.high %v1102_v45, %v1102_v45 }
 0x230   :  { %10001 = vst [vmem:[#allocation7_spill] sm:$0xff] %v5456_v17  ;;  %v1109_v15 = vrot.slane %v1093_v48, %v5278_v7  ;;  %v5465_v27 = vrot.slane %v976_v57, %v5273_v1  ;;  %v1095_v23 = vcombine.high %v1093_v48, %v1093_v48 }
 0x231   :  { %527 = vbcast.lane.b32.xlu1 %v5310_v24, 280  ;;  %523 = vbcast.lane.b32.xlu0 %v5310_v24, 272  ;;  %10002 = vst [vmem:[#allocation8_spill] sm:$0xff] %v5460_v0  ;;  %v5468_v19 = vrot.slane %v978_v62, %v5273_v1  ;;  %v980_v24 = vcombine.high %v976_v57, %v976_v57 }
 0x232   :  { %10003 = vst [vmem:[#allocation9_spill] sm:$0xff] %v5465_v27  ;;  %v5471_v36 = vrot.slane %v1116_v2, %v5273_v1  ;;  %v5474_v37 = vrot.slane %v1124_v6, %v5273_v1  ;;  %v1126_v39 = vcombine.high %v1116_v2, %v1116_v2  ;;  %v5477_v44 = vrot.slane %v1109_v15, %v5273_v1 }
 0x233   :  { %10004 = vst [vmem:[#allocation10_spill] sm:$0xff] %v5468_v19  ;;  %v5482_v45 = vrot.slane %v980_v24, %v5273_v1  ;;  %v1123_v47 = vrot.slane %v1095_v23, %v5278_v7  ;;  %v1125_v48 = vcombine.high %v1109_v15, %v1109_v15  ;;  %v5489_v62 = vrot.slane %v1053_v51, %v5273_v1 }
 0x234   :  { %10005 = vst [vmem:[#allocation11_spill] sm:$0xff] %v5471_v36  ;;  %10006 = vst [vmem:[#allocation12_spill] sm:$0xff] %v5474_v37  ;;  %v5486_v57 = vrot.slane %v1126_v39, %v5273_v1  ;;  %v1067_v2 = vrot.slane %v1045_v52, %v5278_v7  ;;  %v1075_v6 = vcombine.high %v1053_v51, %v1053_v51 }
 0x235   :  { %10007 = vst [vmem:[#allocation13_spill] sm:$0xff] %v5477_v44  ;;  %538 = vbcast.lane.b32.xlu1 %v5322_v28, 264  ;;  %534 = vbcast.lane.b32.xlu0 %v5322_v28, 256  ;;  %10008 = vst [vmem:[#allocation14_spill] sm:$0xff] %v5482_v45  ;;  %v5493_v54 = vrot.slane %v1123_v47, %v5273_v1  ;;  %v5496_v44 = vrot.slane %v1125_v48, %v5273_v1 }
 0x236   :  { %10009 = vst [vmem:[#allocation15_spill] sm:$0xff] %v5486_v57  ;;  %10010 = vst [vmem:[#allocation16_spill] sm:$0xff] %v5489_v62  ;;  %v1127_v24 = vcombine.high %v1123_v47, %v1123_v47  ;;  %v1044_v37 = vrot.slane %v1030_v56, %v5278_v7  ;;  %v5500_v15 = vrot.slane %v1067_v2, %v5273_v1 }
 0x237   :  { %10011 = vst [vmem:[#allocation17_spill] sm:$0xff] %v5493_v54  ;;  %10012 = vst [vmem:[#allocation18_spill] sm:$0xff] %v5496_v44  ;;  %v5503_v23 = vrot.slane %v1075_v6, %v5273_v1  ;;  %v1077_v39 = vcombine.high %v1067_v2, %v1067_v2  ;;  %v551_v56 = vrot.slane %v5275_v4, %v5298_v20 }
 0x238   :  { %10013 = vst [vmem:[#allocation19_spill] sm:$0xff] %v5500_v15  ;;  %v5508_v51 = vrot.slane %v1127_v24, %v5273_v1  ;;  %v1060_v52 = vrot.slane %v1044_v37, %v5278_v7  ;;  %v1046_v48 = vcombine.high %v1044_v37, %v1044_v37 }
 0x239   :  { %10014 = vst [vmem:[#allocation20_spill] sm:$0xff] %v5503_v23  ;;  %546 = vbcast.lane.b32.xlu1 %v5322_v28, 280  ;;  %542 = vbcast.lane.b32.xlu0 %v5322_v28, 272  ;;  %v5512_v47 = vrot.slane %v1077_v39, %v5273_v1 }
 0x23a   :  { %10015 = vst [vmem:[#allocation21_spill] sm:$0xff] %v5508_v51  ;;  %v5517_v6 = vrot.slane %v1060_v52, %v5273_v1  ;;  %v1074_v2 = vrot.slane %v1046_v48, %v5278_v7  ;;  %v1076_v44 = vcombine.high %v1060_v52, %v1060_v52  ;;  %v570_v51 = vrot.slane %v5275_v4, %v5313_v25 }
 0x23b   :  { %10016 = vst [vmem:[#allocation22_spill] sm:$0xff] %v5512_v47  ;;  %v589_v7 = vrot.slane %v5275_v4, %v5316_v26  ;;  %v456_v52 = vrot.slane %v5288_v14, %v5325_v29 }
 0x23c   :  { %10017 = vst [vmem:[#allocation23_spill] sm:$0xff] %v5517_v6  ;;  %v5521_v28 = vrot.slane %v1074_v2, %v5273_v1  ;;  %v5524_v24 = vrot.slane %v1076_v44, %v5273_v1  ;;  %v1078_v37 = vcombine.high %v1074_v2, %v1074_v2  ;;  %v342_v44 = vrot.slane %v5288_v14, %v5283_v12 }
 0x23d   :  { %557 = vbcast.lane.b32.xlu1 %v551_v56, 264  ;;  %553 = vbcast.lane.b32.xlu0 %v551_v56, 256  ;;  %v399_v12 = vrot.slane %v5288_v14, %v5298_v20 }
 0x23e   :  { %10018 = vst [vmem:[#allocation24_spill] sm:$0xff] %v5521_v28  ;;  %10019 = vst [vmem:[#allocation25_spill] sm:$0xff] %v5524_v24  ;;  %v5527_v39 = vrot.slane %v1078_v37, %v5273_v1  ;;  %v608_v1 = vrot.slane %v5275_v4, %v5325_v29  ;;  %v361_v4 = vrot.slane %v5288_v14, %v5286_v13 }
 0x23f   :  { %v418_v13 = vrot.slane %v5288_v14, %v5313_v25 }
 0x240   :  { %10020 = vst [vmem:[#allocation26_spill] sm:$0xff] %v5527_v39 }
 0x241   :  { %565 = vbcast.lane.b32.xlu1 %v551_v56, 280  ;;  %561 = vbcast.lane.b32.xlu0 %v551_v56, 272 }
 0x245   :  { %576 = vbcast.lane.b32.xlu1 %v570_v51, 264  ;;  %572 = vbcast.lane.b32.xlu0 %v570_v51, 256 }
 0x249   :  { %584 = vbcast.lane.b32.xlu1 %v570_v51, 280  ;;  %580 = vbcast.lane.b32.xlu0 %v570_v51, 272  ;;  %v380_v51 = vrot.slane %v5288_v14, %v5291_v16  ;;  %v437_v16 = vrot.slane %v5288_v14, %v5316_v26 }
 0x24d   :  { %595 = vbcast.lane.b32.xlu1 %v589_v7, 264  ;;  %591 = vbcast.lane.b32.xlu0 %v589_v7, 256 }
 0x251   :  { %603 = vbcast.lane.b32.xlu1 %v589_v7, 280  ;;  %599 = vbcast.lane.b32.xlu0 %v589_v7, 272 }
 0x255   :  { %614 = vbcast.lane.b32.xlu1 %v608_v1, 264  ;;  %610 = vbcast.lane.b32.xlu0 %v608_v1, 256 }
 0x259   :  { %622 = vbcast.lane.b32.xlu1 %v608_v1, 280  ;;  %618 = vbcast.lane.b32.xlu0 %v608_v1, 272 }
 0x25d   :  { %329 = vbcast.lane.b32.xlu1 %v5302_v21, 264  ;;  %325 = vbcast.lane.b32.xlu0 %v5302_v21, 256 }
 0x261   :  { %333 = vbcast.lane.b32.xlu1 %v5302_v21, 272  ;;  %344 = vbcast.lane.b32.xlu0 %v342_v44, 256 }
 0x265   :  { %337 = vbcast.lane.b32.xlu1 %v5302_v21, 280  ;;  %352 = vbcast.lane.b32.xlu0 %v342_v44, 272 }
 0x269   :  { %348 = vbcast.lane.b32.xlu1 %v342_v44, 264  ;;  %363 = vbcast.lane.b32.xlu0 %v361_v4, 256 }
 0x26d   :  { %356 = vbcast.lane.b32.xlu1 %v342_v44, 280  ;;  %371 = vbcast.lane.b32.xlu0 %v361_v4, 272 }
 0x271   :  { %367 = vbcast.lane.b32.xlu1 %v361_v4, 264  ;;  %382 = vbcast.lane.b32.xlu0 %v380_v51, 256 }
 0x275   :  { %375 = vbcast.lane.b32.xlu1 %v361_v4, 280  ;;  %390 = vbcast.lane.b32.xlu0 %v380_v51, 272 }
 0x279   :  { %386 = vbcast.lane.b32.xlu1 %v380_v51, 264  ;;  %401 = vbcast.lane.b32.xlu0 %v399_v12, 256 }
 0x27d   :  { %394 = vbcast.lane.b32.xlu1 %v380_v51, 280  ;;  %409 = vbcast.lane.b32.xlu0 %v399_v12, 272 }
 0x281   :  { %405 = vbcast.lane.b32.xlu1 %v399_v12, 264  ;;  %420 = vbcast.lane.b32.xlu0 %v418_v13, 256 }
 0x285   :  { %413 = vbcast.lane.b32.xlu1 %v399_v12, 280  ;;  %428 = vbcast.lane.b32.xlu0 %v418_v13, 272 }
 0x289   :  { %424 = vbcast.lane.b32.xlu1 %v418_v13, 264  ;;  %439 = vbcast.lane.b32.xlu0 %v437_v16, 256 }
 0x28d   :  { %432 = vbcast.lane.b32.xlu1 %v418_v13, 280  ;;  %447 = vbcast.lane.b32.xlu0 %v437_v16, 272 }
 0x28f   :  { %v5551_v21 = vpop.permute.xlu0 %477  ;;  %v5553_v20 = vpop.permute.xlu1 %481 }
 0x290   :  { %vm1455_vm3 = vcmp.eq.f32.partialorder %v5341_v35, %v5551_v21  ;;  %vm1327_vm4 = vcmp.lt.f32.partialorder %v5341_v35, %v5551_v21 }
 0x291   :  { %443 = vbcast.lane.b32.xlu1 %v437_v16, 264  ;;  %458 = vbcast.lane.b32.xlu0 %v456_v52, 256 }
 0x293   :  { %v5557_v25 = vpop.permute.xlu0 %485  ;;  %v5559_v48 = vpop.permute.xlu1 %489 }
 0x295   :  { %451 = vbcast.lane.b32.xlu1 %v437_v16, 280  ;;  %466 = vbcast.lane.b32.xlu0 %v456_v52, 272 }
 0x297   :  { %v5561_v26 = vpop.permute.xlu0 %496  ;;  %v5563_v56 = vpop.permute.xlu1 %500 }
 0x298   :  { %vm1459_vm6 = vcmp.eq.f32.partialorder %v5366_v46, %v5561_v26  ;;  %vm1331_vm8 = vcmp.lt.f32.partialorder %v5366_v46, %v5561_v26 }
 0x299   :  { %462 = vbcast.lane.b32.xlu1 %v456_v52, 264  ;;  %781 = vbcast.lane.b32.xlu0 %v5330_v32, 256 }
 0x29b   :  { %v5566_v2 = vpop.permute.xlu0 %504  ;;  %v5568_v37 = vpop.permute.xlu1 %508 }
 0x29c   :  { %vm1461_vm10 = vcmp.eq.f32.partialorder %v5366_v46, %v5566_v2  ;;  %vm1333_vm13 = vcmp.lt.f32.partialorder %v5366_v46, %v5566_v2 }
 0x29d   :  { %470 = vbcast.lane.b32.xlu1 %v456_v52, 280  ;;  %789 = vbcast.lane.b32.xlu0 %v5330_v32, 272 }
 0x29f   :  { %v5571_v14 = vpop.permute.xlu0 %515  ;;  %v5573_v29 = vpop.permute.xlu1 %519 }
 0x2a0   :  { %vm1464_vm15 = vcmp.eq.f32.partialorder %v5362_v43, %v5573_v29 }
 0x2a1   :  { %785 = vbcast.lane.b32.xlu1 %v5330_v32, 264  ;;  %800 = vbcast.lane.b32.xlu0 %v5334_v33, 256 }
 0x2a3   :  { %v5577_v7 = vpop.permute.xlu0 %523  ;;  %v5579_v1 = vpop.permute.xlu1 %527 }
 0x2a5   :  { %793 = vbcast.lane.b32.xlu1 %v5330_v32, 280  ;;  %808 = vbcast.lane.b32.xlu0 %v5334_v33, 272 }
 0x2a7   :  { %v5583_v44 = vpop.permute.xlu0 %534  ;;  %v5585_v4 = vpop.permute.xlu1 %538 }
 0x2a9   :  { %804 = vbcast.lane.b32.xlu1 %v5334_v33, 264  ;;  %819 = vbcast.lane.b32.xlu0 %v5338_v34, 256 }
 0x2ab   :  { %v5589_v51 = vpop.permute.xlu0 %542  ;;  %v5591_v12 = vpop.permute.xlu1 %546 }
 0x2ad   :  { %812 = vbcast.lane.b32.xlu1 %v5334_v33, 280  ;;  %827 = vbcast.lane.b32.xlu0 %v5338_v34, 272 }
 0x2af   :  { %v5595_v13 = vpop.permute.xlu0 %553  ;;  %v5597_v32 = vpop.permute.xlu1 %557 }
 0x2b1   :  { %823 = vbcast.lane.b32.xlu1 %v5338_v34, 264  ;;  %838 = vbcast.lane.b32.xlu0 %v5346_v38, 256 }
 0x2b3   :  { %v5601_v16 = vpop.permute.xlu0 %561  ;;  %v5603_v52 = vpop.permute.xlu1 %565 }
 0x2b5   :  { %831 = vbcast.lane.b32.xlu1 %v5338_v34, 280  ;;  %846 = vbcast.lane.b32.xlu0 %v5346_v38, 272 }
 0x2b7   :  { %v5607_v39 = vpop.permute.xlu0 %572  ;;  %v5609_v33 = vpop.permute.xlu1 %576 }
 0x2b9   :  { %842 = vbcast.lane.b32.xlu1 %v5346_v38, 264  ;;  %857 = vbcast.lane.b32.xlu0 %v5351_v40, 256 }
 0x2bb   :  { %v5613_v24 = vpop.permute.xlu0 %580  ;;  %v5615_v54 = vpop.permute.xlu1 %584 }
 0x2bd   :  { %850 = vbcast.lane.b32.xlu1 %v5346_v38, 280  ;;  %865 = vbcast.lane.b32.xlu0 %v5351_v40, 272 }
 0x2bf   :  { %v5619_v28 = vpop.permute.xlu0 %591  ;;  %v5621_v34 = vpop.permute.xlu1 %595 }
 0x2c1   :  { %861 = vbcast.lane.b32.xlu1 %v5351_v40, 264  ;;  %876 = vbcast.lane.b32.xlu0 %v5355_v41, 256 }
 0x2c3   :  { %v5625_v6 = vpop.permute.xlu0 %599  ;;  %v5627_v47 = vpop.permute.xlu1 %603 }
 0x2c5   :  { %869 = vbcast.lane.b32.xlu1 %v5351_v40, 280  ;;  %884 = vbcast.lane.b32.xlu0 %v5355_v41, 272 }
 0x2c7   :  { %v5631_v23 = vpop.permute.xlu0 %610  ;;  %v5633_v38 = vpop.permute.xlu1 %614 }
 0x2c9   :  { %880 = vbcast.lane.b32.xlu1 %v5355_v41, 264  ;;  %895 = vbcast.lane.b32.xlu0 %v5359_v42, 256 }
 0x2cb   :  { %v5637_v15 = vpop.permute.xlu0 %618  ;;  %v5639_v62 = vpop.permute.xlu1 %622 }
 0x2cd   :  { %888 = vbcast.lane.b32.xlu1 %v5355_v41, 280  ;;  %903 = vbcast.lane.b32.xlu0 %v5359_v42, 272 }
 0x2cf   :  { %v5643_v57 = vpop.permute.xlu0 %325  ;;  %v5645_v40 = vpop.permute.xlu1 %329 }
 0x2d1   :  { %899 = vbcast.lane.b32.xlu1 %v5359_v42, 264  ;;  %918 = vbcast.lane.b32.xlu0 %v5372_v49, 264 }
 0x2d3   :  { %v5649_v36 = vpop.permute.xlu0 %344  ;;  %v5651_v0 = vpop.permute.xlu1 %333 }
 0x2d5   :  { %914 = vbcast.lane.b32.xlu1 %v5372_v49, 256  ;;  %922 = vbcast.lane.b32.xlu0 %v5372_v49, 272 }
 0x2d7   :  { %v5655_v45 = vpop.permute.xlu0 %352  ;;  %v5657_v41 = vpop.permute.xlu1 %337 }
 0x2d9   :  { %907 = vbcast.lane.b32.xlu1 %v5359_v42, 280  ;;  %629 = vbcast.lane.b32.xlu0 %v5380_v53, 256 }
 0x2db   :  { %v5661_v19 = vpop.permute.xlu0 %363  ;;  %v5663_v27 = vpop.permute.xlu1 %348 }
 0x2dc   :  { %10021 = vst [vmem:[#allocation27_spill] sm:$0xff] %v5661_v19 }
 0x2dd   :  { %926 = vbcast.lane.b32.xlu1 %v5372_v49, 280  ;;  %637 = vbcast.lane.b32.xlu0 %v5380_v53, 272 }
 0x2df   :  { %v5667_v17 = vpop.permute.xlu0 %371  ;;  %v5669_v30 = vpop.permute.xlu1 %356 }
 0x2e0   :  { %10022 = vst [vmem:[#allocation28_spill] sm:$0xff] %v5667_v17  ;;  %10023 = vst [vmem:[#allocation29_spill] sm:$0xff] %v5669_v30 }
 0x2e1   :  { %648 = vbcast.lane.b32.xlu0 %v5388_v59, 256  ;;  %633 = vbcast.lane.b32.xlu1 %v5380_v53, 264 }
 0x2e3   :  { %v5673_v11 = vpop.permute.xlu0 %382  ;;  %v5675_v42 = vpop.permute.xlu1 %367 }
 0x2e4   :  { %10024 = vst [vmem:[#allocation30_spill] sm:$0xff] %v5673_v11  ;;  %10025 = vst [vmem:[#allocation31_spill] sm:$0xff] %v5675_v42 }
 0x2e5   :  { %656 = vbcast.lane.b32.xlu0 %v5388_v59, 272  ;;  %641 = vbcast.lane.b32.xlu1 %v5380_v53, 280 }
 0x2e7   :  { %v5679_v19 = vpop.permute.xlu0 %390  ;;  %v5681_v49 = vpop.permute.xlu1 %375 }
 0x2e8   :  { %10026 = vst [vmem:[#allocation32_spill] sm:$0xff] %v5679_v19  ;;  %10027 = vst [vmem:[#allocation33_spill] sm:$0xff] %v5681_v49 }
 0x2e9   :  { %667 = vbcast.lane.b32.xlu0 %v5402_v3, 256  ;;  %652 = vbcast.lane.b32.xlu1 %v5388_v59, 264 }
 0x2eb   :  { %v5685_v30 = vpop.permute.xlu0 %401  ;;  %v5687_v17 = vpop.permute.xlu1 %386 }
 0x2ec   :  { %10028 = vst [vmem:[#allocation34_spill] sm:$0xff] %v5685_v30 }
 0x2ed   :  { %675 = vbcast.lane.b32.xlu0 %v5402_v3, 272  ;;  %660 = vbcast.lane.b32.xlu1 %v5388_v59, 280 }
 0x2ef   :  { %v5691_v11 = vpop.permute.xlu0 %409  ;;  %v5693_v42 = vpop.permute.xlu1 %394 }
 0x2f0   :  { %10029 = vst [vmem:[#allocation35_spill] sm:$0xff] %v5691_v11  ;;  %10030 = vst [vmem:[#allocation36_spill] sm:$0xff] %v5693_v42 }
 0x2f1   :  { %686 = vbcast.lane.b32.xlu0 %v5411_v8, 256  ;;  %671 = vbcast.lane.b32.xlu1 %v5402_v3, 264 }
 0x2f3   :  { %v5697_v53 = vpop.permute.xlu0 %420  ;;  %v5699_v49 = vpop.permute.xlu1 %405 }
 0x2f4   :  { %10031 = vst [vmem:[#allocation37_spill] sm:$0xff] %v5697_v53  ;;  %10032 = vst [vmem:[#allocation38_spill] sm:$0xff] %v5699_v49 }
 0x2f5   :  { %694 = vbcast.lane.b32.xlu0 %v5411_v8, 272  ;;  %679 = vbcast.lane.b32.xlu1 %v5402_v3, 280 }
 0x2f7   :  { %v5703_v30 = vpop.permute.xlu0 %428  ;;  %v5705_v19 = vpop.permute.xlu1 %413 }
 0x2f8   :  { %10033 = vst [vmem:[#allocation39_spill] sm:$0xff] %v5703_v30  ;;  %10034 = vst [vmem:[#allocation40_spill] sm:$0xff] %v5705_v19 }
 0x2f9   :  { %705 = vbcast.lane.b32.xlu0 %v5415_v9, 256  ;;  %690 = vbcast.lane.b32.xlu1 %v5411_v8, 264 }
 0x2fb   :  { %v5709_v59 = vpop.permute.xlu0 %439  ;;  %v5711_v42 = vpop.permute.xlu1 %424 }
 0x2fc   :  { %10035 = vst [vmem:[#allocation41_spill] sm:$0xff] %v5709_v59  ;;  %10036 = vst [vmem:[#allocation42_spill] sm:$0xff] %v5711_v42 }
 0x2fd   :  { %713 = vbcast.lane.b32.xlu0 %v5415_v9, 272  ;;  %698 = vbcast.lane.b32.xlu1 %v5411_v8, 280 }
 0x2ff   :  { %v5715_v53 = vpop.permute.xlu0 %447  ;;  %v5717_v49 = vpop.permute.xlu1 %432 }
 0x300   :  { %10037 = vst [vmem:[#allocation43_spill] sm:$0xff] %v5715_v53  ;;  %10038 = vst [vmem:[#allocation44_spill] sm:$0xff] %v5717_v49 }
 0x301   :  { %724 = vbcast.lane.b32.xlu0 %v5425_v18, 256  ;;  %709 = vbcast.lane.b32.xlu1 %v5415_v9, 264 }
 0x303   :  { %v5721_v3 = vpop.permute.xlu0 %458  ;;  %v5723_v30 = vpop.permute.xlu1 %443 }
 0x304   :  { %10039 = vst [vmem:[#allocation45_spill] sm:$0xff] %v5721_v3  ;;  %10040 = vst [vmem:[#allocation46_spill] sm:$0xff] %v5723_v30 }
 0x305   :  { %732 = vbcast.lane.b32.xlu0 %v5425_v18, 272  ;;  %717 = vbcast.lane.b32.xlu1 %v5415_v9, 280 }
 0x307   :  { %v5727_v42 = vpop.permute.xlu0 %466  ;;  %v5729_v59 = vpop.permute.xlu1 %451 }
 0x308   :  { %10041 = vst [vmem:[#allocation47_spill] sm:$0xff] %v5727_v42  ;;  %10042 = vst [vmem:[#allocation48_spill] sm:$0xff] %v5729_v59 }
 0x309   :  { %743 = vbcast.lane.b32.xlu0 %v5432_v22, 256  ;;  %728 = vbcast.lane.b32.xlu1 %v5425_v18, 264 }
 0x30b   :  { %v5733_v8 = vpop.permute.xlu0 %781  ;;  %v5735_v49 = vpop.permute.xlu1 %462 }
 0x30c   :  { %10043 = vst [vmem:[#allocation49_spill] sm:$0xff] %v5733_v8  ;;  %10044 = vst [vmem:[#allocation50_spill] sm:$0xff] %v5735_v49 }
 0x30d   :  { %751 = vbcast.lane.b32.xlu0 %v5432_v22, 272  ;;  %736 = vbcast.lane.b32.xlu1 %v5425_v18, 280  ;;  %v10051_v18 = vlaneseq }
 0x30f   :  { %v5739_v30 = vpop.permute.xlu0 %789  ;;  %v5741_v3 = vpop.permute.xlu1 %470 }
 0x310   :  { %10045 = vst [vmem:[#allocation51_spill] sm:$0xff] %v5739_v30  ;;  %10046 = vst [vmem:[#allocation52_spill] sm:$0xff] %v5741_v3  ;;  %v5757_v30 = vand.u32 127, %v10051_v18 }
 0x311   :  { %762 = vbcast.lane.b32.xlu0 %v5441_v31, 256  ;;  %747 = vbcast.lane.b32.xlu1 %v5432_v22, 264 }
 0x312   :  { %vm5766_vm2 = vcmp.lt.s32.totalorder %v5757_v30, %v5264_v58 }
 0x313   :  { %v5745_v9 = vpop.permute.xlu0 %800  ;;  %v5747_v59 = vpop.permute.xlu1 %785  ;;  %vm1595_vm5 = vmand %vm1455_vm3, %vm5766_vm2  ;;  %vm1456_vm3 = vcmp.eq.f32.partialorder %v5341_v35, %v5553_v20 }
 0x314   :  { %10047 = vst [vmem:[#allocation53_spill] sm:$0xff] %v5745_v9  ;;  %10048 = vst [vmem:[#allocation54_spill] sm:$0xff] %v5747_v59 }
 0x315   :  { %770 = vbcast.lane.b32.xlu0 %v5441_v31, 272  ;;  %755 = vbcast.lane.b32.xlu1 %v5432_v22, 280  ;;  %vm1723_vm7 = vmor %vm1327_vm4, %vm1595_vm5  ;;  %vm1336_vm5 = vcmp.lt.f32.partialorder %v5362_v43, %v5573_v29 }
 0x316   :  { %vm1599_vm9 = vmand %vm1459_vm6, %vm5766_vm2 }
 0x317   :  { %v5751_v49 = vpop.permute.xlu0 %808  ;;  %v5753_v8 = vpop.permute.xlu1 %793  ;;  %vm1727_vm12 = vmor %vm1331_vm8, %vm1599_vm9  ;;  %vm1460_vm9 = vcmp.eq.f32.partialorder %v5366_v46, %v5563_v56 }
 0x318   :  { %10049 = vst [vmem:[#allocation55_spill] sm:$0xff] %v5751_v49  ;;  %10050 = vst [vmem:[#allocation56_spill] sm:$0xff] %v5753_v8  ;;  %v1132_v49 = vadd.s32 24, %v5264_v58 }
 0x319   :  { %766 = vbcast.lane.b32.xlu1 %v5441_v31, 264 }
 0x31b   :  { %v5759_v3 = vpop.permute.xlu0 %819  ;;  %v5761_v42 = vpop.permute.xlu1 %804 }
 0x31c   :  { %10052 = vst [vmem:[#allocation57_spill] sm:$0xff] %v5759_v3  ;;  %10053 = vst [vmem:[#allocation58_spill] sm:$0xff] %v5761_v42  ;;  %v1130_v42 = vadd.s32 8, %v5264_v58 }
 0x31d   :  { %774 = vbcast.lane.b32.xlu1 %v5441_v31, 280  ;;  %v1131_v31 = vadd.s32 16, %v5264_v58 }
 0x31e   :  { %vm5810_vm0 = vcmp.lt.s32.totalorder %v5757_v30, %v1130_v42 }
 0x31f   :  { %v5772_v22 = vpop.permute.xlu0 %827  ;;  %v5778_v18 = vpop.permute.xlu1 %812  ;;  %vm5796_vm11 = vcmp.lt.s32.totalorder %v5757_v30, %v1131_v31  ;;  %v10064_v31 = vmov 0   ;;  %vm1604_vm6 = vmand %vm1464_vm15, %vm5810_vm0 }
 0x320   :  { %10056 = vst [vmem:[#allocation59_spill] sm:$0xff] %v5772_v22  ;;  %10057 = vst [vmem:[#allocation60_spill] sm:$0xff] %v5778_v18  ;;  %v9931_v22 = vmov 0  }
 0x321   :  { %v1851_v18 = vsel %vm1723_vm7, 1, %v9931_v22  ;;  %vm1601_vm14 = vmand %vm1461_vm10, %vm5796_vm11  ;;  %vm1328_vm7 = vcmp.lt.f32.partialorder %v5341_v35, %v5553_v20 }
 0x322   :  { %v5807_v26 = vsel %vm9991_vm1, %v1851_v18, 0  ;;  %vm1729_vm4 = vmor %vm1333_vm13, %vm1601_vm14  ;;  %vm1457_vm13 = vcmp.eq.f32.partialorder %v5341_v35, %v5557_v25  ;;  %vm1332_vm14 = vcmp.lt.f32.partialorder %v5366_v46, %v5563_v56 }
 0x323   :  { %v5789_v21 = vpop.permute.xlu0 %838  ;;  %v5793_v3 = vpop.permute.xlu1 %823  ;;  %v2365_v42 = vshrl.u32 %v5807_v26, 16  ;;  %vm1596_vm8 = vmand %vm1456_vm3, %vm5810_vm0  ;;  %v1857_v29 = vsel %vm1729_vm4, 1, %v10064_v31  ;;  %vm1329_vm3 = vcmp.lt.f32.partialorder %v5341_v35, %v5557_v25 }
 0x324   :  { %10058 = vst [vmem:[#allocation61_spill] sm:$0xff] %v5789_v21  ;;  %10059 = vst [vmem:[#allocation62_spill] sm:$0xff] %v5793_v3  ;;  %v1855_v3 = vsel %vm1727_vm12, 1, %v10064_v31 }
 0x325   :  { %v5831_v21 = vsel %vm9991_vm1, %v1855_v3, 0  ;;  %vm1732_vm10 = vmor %vm1336_vm5, %vm1604_vm6  ;;  %v5846_v3 = vsel %vm9991_vm1, %v1857_v29, 0  ;;  %vm1462_vm6 = vcmp.eq.f32.partialorder %v5366_v46, %v5568_v37 }
 0x326   :  { %vm1724_vm12 = vmor %vm1328_vm7, %vm1596_vm8  ;;  %v1860_v9 = vsel %vm1732_vm10, 1, %v10064_v31  ;;  %v2443_v29 = vshrl.u32 %v5846_v3, 16  ;;  %vm1463_vm7 = vcmp.eq.f32.partialorder %v5362_v43, %v5571_v14  ;;  %vm1334_vm10 = vcmp.lt.f32.partialorder %v5366_v46, %v5568_v37 }
 0x327   :  { %v5817_v2 = vpop.permute.xlu0 %846  ;;  %v5823_v18 = vpop.permute.xlu1 %831  ;;  %vm1600_vm15 = vmand %vm1460_vm9, %vm5810_vm0  ;;  %vm5870_vm9 = vcmp.lt.s32.totalorder %v5757_v30, %v1132_v49 }
 0x328   :  { %10065 = vst [vmem:[#allocation63_spill] sm:$0xff] %v5817_v2  ;;  %10066 = vst [vmem:[#allocation64_spill] sm:$0xff] %v5823_v18  ;;  %v2367_v18 = vcvt.s32.f32 %v2365_v42  ;;  %v2417_v2 = vshrl.u32 %v5831_v21, 16  ;;  %v1852_v42 = vsel %vm1724_vm12, 1, %v10064_v31 }
 0x329   :  { %vm1597_vm4 = vmand %vm1457_vm13, %vm5796_vm11  ;;  %vm1335_vm13 = vcmp.lt.f32.partialorder %v5362_v43, %v5571_v14 }
 0x32a   :  { %vm1728_vm5 = vmor %vm1332_vm14, %vm1600_vm15  ;;  %v2419_v56 = vcvt.s32.f32 %v2417_v2  ;;  %v2376_v2 = vsel %vm9991_vm1, %v1852_v42, 0  ;;  %vm1467_vm15 = vcmp.eq.f32.partialorder %v5383_v55, %v5583_v44 }
 0x32b   :  { %v5843_v20 = vpop.permute.xlu0 %857  ;;  %v5850_v53 = vpop.permute.xlu1 %842  ;;  %vm5865_vm8 = vmor %vm1329_vm3, %vm1597_vm4  ;;  %v2378_v46 = vshrl.u32 %v2376_v2, 16 }
 0x32c   :  { %10067 = vst [vmem:[#allocation65_spill] sm:$0xff] %v5843_v20  ;;  %10068 = vst [vmem:[#allocation66_spill] sm:$0xff] %v5850_v53  ;;  %v1856_v20 = vsel %vm1728_vm5, 1, %v10064_v31  ;;  %v1853_v14 = vsel %vm5865_vm8, 1, %v10064_v31  ;;  %vm1339_vm5 = vcmp.lt.f32.partialorder %v5383_v55, %v5583_v44 }
 0x32d   :  { %vm1602_vm12 = vmand %vm1462_vm6, %vm5870_vm9  ;;  %v5892_v37 = vsel %vm9991_vm1, %v1856_v20, 0  ;;  %v2380_v19 = vcvt.s32.f32 %v2378_v46  ;;  %v5910_v44 = vsel %vm9991_vm1, %v1853_v14, 0 }
 0x32e   :  { %vm1603_vm14 = vmand %vm1463_vm7, %vm5766_vm2  ;;  %vm1458_vm7 = vcmp.eq.f32.partialorder %v5341_v35, %v5559_v48 }
 0x32f   :  { %v5886_v49 = vpop.permute.xlu1 %850  ;;  %vm1730_vm3 = vmor %vm1334_vm10, %vm1602_vm12  ;;  %vm1330_vm10 = vcmp.lt.f32.partialorder %v5341_v35, %v5559_v48 }
 0x330   :  { %10074 = vst [vmem:[#allocation68_spill] sm:$0xff] %v5886_v49  ;;  %vm1731_vm4 = vmor %vm1335_vm13, %vm1603_vm14  ;;  %v2377_v49 = vand.u32 65535, %v2376_v2  ;;  %v1858_v53 = vsel %vm1730_vm3, 1, %v10064_v31  ;;  %vm1465_vm14 = vcmp.eq.f32.partialorder %v5362_v43, %v5577_v7  ;;  %vm1337_vm3 = vcmp.lt.f32.partialorder %v5362_v43, %v5577_v7 }
 0x331   :  { %vm1607_vm6 = vmand %vm1467_vm15, %vm5766_vm2  ;;  %v1859_v11 = vsel %vm1731_vm4, 1, %v10064_v31  ;;  %vm1469_vm15 = vcmp.eq.f32.partialorder %v5383_v55, %v5589_v51  ;;  %v2364_v7 = vand.u32 65535, %v5807_v26 }
 0x332   :  { %vm1735_vm8 = vmor %vm1339_vm5, %vm1607_vm6  ;;  %v2379_v2 = vcvt.s32.f32 %v2377_v49  ;;  %vm1341_vm5 = vcmp.lt.f32.partialorder %v5383_v55, %v5589_v51 }
 0x333   :  { %v5907_v20 = vpop.permute.xlu1 %861  ;;  %vm1598_vm12 = vmand %vm1458_vm7, %vm5870_vm9  ;;  %v1863_v14 = vsel %vm1735_vm8, 1, %v10064_v31  ;;  %vm1472_vm7 = vcmp.eq.f32.partialorder %v5375_v50, %v5597_v32 }
 0x334   :  { %2370 = vadd.xlane.f32.xlu0 %v2367_v18  ;;  %v5863_v18 = vsel %vm9991_vm1, %v1860_v9, 0  ;;  %v5880_v9 = vpop.permute.xlu0 %865  ;;  %vm1726_vm13 = vmor %vm1330_vm10, %vm1598_vm12  ;;  %vm1468_vm10 = vcmp.eq.f32.partialorder %v5383_v55, %v5585_v4 }
 0x335   :  { %10073 = vst [vmem:[#allocation67_spill] sm:$0xff] %v5880_v9  ;;  %v2482_v42 = vshrl.u32 %v5863_v18, 16  ;;  %vm1605_vm4 = vmand %vm1465_vm14, %vm5796_vm11 }
 0x336   :  { %vm1609_vm6 = vmand %vm1469_vm15, %vm5796_vm11  ;;  %vm1340_vm15 = vcmp.lt.f32.partialorder %v5383_v55, %v5585_v4 }
 0x337   :  { %v5930_v35 = vpop.permute.xlu1 %869  ;;  %vm5954_vm8 = vmor %vm1337_vm3, %vm1605_vm4 }
 0x338   :  { %2422 = vadd.xlane.f32.xlu0 %v2419_v56  ;;  %v2445_v56 = vcvt.s32.f32 %v2443_v29  ;;  %v2484_v29 = vcvt.s32.f32 %v2482_v42  ;;  %v5901_v9 = vpop.permute.xlu0 %876  ;;  %v2416_v42 = vand.u32 65535, %v5831_v21  ;;  %10077 = vst [vmem:[#allocation71_spill] sm:$0xff] %v5930_v35  ;;  %vm1737_vm12 = vmor %vm1341_vm5, %vm1609_vm6  ;;  %vm1466_vm6 = vcmp.eq.f32.partialorder %v5362_v43, %v5579_v1 }
 0x339   :  { %10075 = vst [vmem:[#allocation69_spill] sm:$0xff] %v5901_v9  ;;  %v2391_v9 = vshrl.u32 %v5910_v44, 16  ;;  %vm1612_vm14 = vmand %vm1472_vm7, %vm5810_vm0  ;;  %vm1470_vm7 = vcmp.eq.f32.partialorder %v5383_v55, %v5591_v12 }
 0x33a   :  { %v2418_v48 = vcvt.s32.f32 %v2416_v42  ;;  %vm1608_vm3 = vmand %vm1468_vm10, %vm5810_vm0 }
 0x33b   :  { %v5960_v51 = vpop.permute.xlu1 %880  ;;  %vm1736_vm5 = vmor %vm1340_vm15, %vm1608_vm3  ;;  %vm1471_vm3 = vcmp.eq.f32.partialorder %v5375_v50, %v5595_v13 }
 0x33c   :  { %2448 = vadd.xlane.f32.xlu0 %v2445_v56  ;;  %v2430_v56 = vshrl.u32 %v5892_v37, 16  ;;  %v5926_v49 = vpop.permute.xlu0 %884  ;;  %10081 = vst [vmem:[#allocation73_spill] sm:$0xff] %v5960_v51  ;;  %vm1606_vm10 = vmand %vm1466_vm6, %vm5870_vm9 }
 0x33d   :  { %10076 = vst [vmem:[#allocation70_spill] sm:$0xff] %v5926_v49 }
 0x33e   :  { %v2432_v46 = vcvt.s32.f32 %v2430_v56  ;;  %v2393_v56 = vcvt.s32.f32 %v2391_v9 }
 0x340   :  { %2487 = vadd.xlane.f32.xlu0 %v2484_v29  ;;  %v5920_v29 = vsel %vm9991_vm1, %v1858_v53, 0 }
 0x341   :  { %2383 = vadd.xlane.f32.xlu1 %v2380_v19  ;;  %v5924_v19 = vsel %vm9991_vm1, %v1859_v11, 0  ;;  %v2456_v21 = vshrl.u32 %v5920_v29, 16  ;;  %v5937_v11 = vsel %vm9991_vm1, %v1863_v14, 0 }
 0x342   :  { %v2469_v53 = vshrl.u32 %v5924_v19, 16  ;;  %v2521_v42 = vshrl.u32 %v5937_v11, 16 }
 0x343   :  { %v2458_v9 = vcvt.s32.f32 %v2456_v21 }
 0x344   :  { %2381 = vadd.xlane.f32.xlu0 %v2379_v2  ;;  %v1854_v2 = vsel %vm1726_vm13, 1, %v10064_v31  ;;  %v2471_v14 = vcvt.s32.f32 %v2469_v53  ;;  %vm1344_vm13 = vcmp.lt.f32.partialorder %v5375_v50, %v5597_v32  ;;  %v2523_v26 = vcvt.s32.f32 %v2521_v42 }
 0x345   :  { %2435 = vadd.xlane.f32.xlu1 %v2432_v46  ;;  %v5951_v46 = vpop.permute.xlu0 %895  ;;  %v5963_v21 = vsel %vm9991_vm1, %v1854_v2, 0  ;;  %v2366_v53 = vcvt.s32.f32 %v2364_v7  ;;  %v1861_v32 = vsel %vm5954_vm8, 1, %v10064_v31  ;;  %vm1740_vm4 = vmor %vm1344_vm13, %vm1612_vm14  ;;  %vm1338_vm8 = vcmp.lt.f32.partialorder %v5362_v43, %v5579_v1 }
 0x346   :  { %10078 = vst [vmem:[#allocation72_spill] sm:$0xff] %v5951_v46  ;;  %v2404_v2 = vshrl.u32 %v5963_v21, 16  ;;  %v2429_v46 = vand.u32 65535, %v5892_v37  ;;  %vm1610_vm13 = vmand %vm1470_vm7, %vm5870_vm9  ;;  %vm1475_vm14 = vcmp.eq.f32.partialorder %v5391_v60, %v5607_v39  ;;  %vm1343_vm7 = vcmp.lt.f32.partialorder %v5375_v50, %v5595_v13 }
 0x347   :  { %vm6021_vm15 = vmor %vm1338_vm8, %vm1606_vm10 }
 0x348   :  { %2420 = vadd.xlane.f32.xlu0 %v2418_v48  ;;  %v2406_v7 = vcvt.s32.f32 %v2404_v2  ;;  %v5990_v48 = vsel %vm9991_vm1, %v1861_v32, 0  ;;  %v2431_v2 = vcvt.s32.f32 %v2429_v46  ;;  %vm1615_vm6 = vmand %vm1475_vm14, %vm5766_vm2  ;;  %vm1346_vm14 = vcmp.lt.f32.partialorder %v5375_v50, %v5603_v52 }
 0x349   :  { %2396 = vadd.xlane.f32.xlu1 %v2393_v56  ;;  %v2442_v56 = vand.u32 65535, %v5846_v3  ;;  %v5979_v42 = vpop.permute.xlu0 %903  ;;  %v5981_v3 = vpop.permute.xlu1 %888  ;;  %vm1611_vm8 = vmand %vm1471_vm3, %vm5766_vm2  ;;  %vm1479_vm3 = vcmp.eq.f32.partialorder %v5394_v61, %v5619_v28 }
 0x34a   :  { %10082 = vst [vmem:[#allocation74_spill] sm:$0xff] %v5979_v42  ;;  %10083 = vst [vmem:[#allocation75_spill] sm:$0xff] %v5981_v3  ;;  %v10137_v3 = vld [vmem:[#allocation30_spill] sm:$0xff] }
 0x34b   :  { %v2444_v4 = vcvt.s32.f32 %v2442_v56 }
 0x34c   :  { %2461 = vadd.xlane.f32.xlu0 %v2458_v9  ;;  %v1865_v9 = vsel %vm1737_vm12, 1, %v10064_v31  ;;  %vm1342_vm12 = vcmp.lt.f32.partialorder %v5383_v55, %v5591_v12 }
 0x34d   :  { %2474 = vadd.xlane.f32.xlu1 %v2471_v14  ;;  %v2481_v14 = vand.u32 65535, %v5863_v18  ;;  %v5986_v49 = vsel %vm9991_vm1, %v1865_v9, 0  ;;  %v5998_v37 = vpop.permute.xlu0 %918  ;;  %v2495_v9 = vshrl.u32 %v5990_v48, 16 }
 0x34e   :  { %v2547_v18 = vshrl.u32 %v5986_v49, 16  ;;  %10084 = vst [vmem:[#allocation76_spill] sm:$0xff] %v5998_v37 }
 0x34f   :  { %v2483_v56 = vcvt.s32.f32 %v2481_v14 }
 0x350   :  { %2526 = vadd.xlane.f32.xlu0 %v2523_v26  ;;  %v1868_v26 = vsel %vm1740_vm4, 1, %v10064_v31  ;;  %v2549_v46 = vcvt.s32.f32 %v2547_v18  ;;  %vm1738_vm4 = vmor %vm1342_vm12, %vm1610_vm13  ;;  %vm1474_vm13 = vcmp.eq.f32.partialorder %v5375_v50, %v5603_v52 }
 0x351   :  { %2368 = vadd.xlane.f32.xlu1 %v2366_v53  ;;  %v1864_v53 = vsel %vm1736_vm5, 1, %v10064_v31  ;;  %v6002_v32 = vsel %vm9991_vm1, %v1868_v26, 0  ;;  %v2497_v26 = vcvt.s32.f32 %v2495_v9  ;;  %v6027_v55 = vpop.permute.xlu0 %922  ;;  %vm1347_vm5 = vcmp.lt.f32.partialorder %v5391_v60, %v5607_v39  ;;  %vm1739_vm12 = vmor %vm1343_vm7, %vm1611_vm8 }
 0x352   :  { %v2586_v14 = vshrl.u32 %v6002_v32, 16  ;;  %10088 = vst [vmem:[#allocation78_spill] sm:$0xff] %v6027_v55  ;;  %v1866_v9 = vsel %vm1738_vm4, 1, %v10064_v31  ;;  %v1862_v39 = vsel %vm6021_vm15, 1, %v10064_v31  ;;  %vm1743_vm10 = vmor %vm1347_vm5, %vm1615_vm6  ;;  %vm1473_vm4 = vcmp.eq.f32.partialorder %v5375_v50, %v5601_v16 }
 0x353   :  { %v2506_v43 = vsel %vm9991_vm1, %v1862_v39, 0  ;;  %vm1614_vm15 = vmand %vm1474_vm13, %vm5870_vm9  ;;  %vm1351_vm6 = vcmp.lt.f32.partialorder %v5394_v61, %v5619_v28  ;;  %vm1345_vm8 = vcmp.lt.f32.partialorder %v5375_v50, %v5601_v16 }
 0x354   :  { %2446 = vadd.xlane.f32.xlu0 %v2444_v4  ;;  %v6004_v4 = vpop.permute.xlu1 %899  ;;  %v2588_v12 = vcvt.s32.f32 %v2586_v14  ;;  %vm1742_vm5 = vmor %vm1346_vm14, %vm1614_vm15  ;;  %vm1348_vm15 = vcmp.lt.f32.partialorder %v5391_v60, %v5609_v33 }
 0x355   :  { %2409 = vadd.xlane.f32.xlu1 %v2406_v7  ;;  %10085 = vst [vmem:[#allocation77_spill] sm:$0xff] %v6004_v4  ;;  %v6007_v7 = vsel %vm9991_vm1, %v1864_v53, 0  ;;  %v6046_v13 = vpop.permute.xlu0 %629  ;;  %vm1619_vm7 = vmand %vm1479_vm3, %vm5766_vm2 }
 0x356   :  { %v2534_v53 = vshrl.u32 %v6007_v7, 16  ;;  %vm1747_vm13 = vmor %vm1351_vm6, %vm1619_vm7  ;;  %vm1350_vm6 = vcmp.lt.f32.partialorder %v5391_v60, %v5615_v54 }
 0x358   :  { %2485 = vadd.xlane.f32.xlu0 %v2483_v56  ;;  %v6033_v1 = vpop.permute.xlu1 %914  ;;  %v2455_v56 = vand.u32 65535, %v5920_v29  ;;  %v2536_v18 = vcvt.s32.f32 %v2534_v53  ;;  %v1871_v53 = vsel %vm1743_vm10, 1, %v10064_v31  ;;  %vm1613_vm10 = vmand %vm1473_vm4, %vm5796_vm11 }
 0x359   :  { %2433 = vadd.xlane.f32.xlu1 %v2431_v2  ;;  %10089 = vst [vmem:[#allocation79_spill] sm:$0xff] %v6033_v1  ;;  %v2390_v2 = vand.u32 65535, %v5910_v44  ;;  %v6050_v44 = vsel %vm9991_vm1, %v1866_v9, 0  ;;  %v6061_v9 = vsel %vm9991_vm1, %v1871_v53, 0  ;;  %vm1741_vm14 = vmor %vm1345_vm8, %vm1613_vm10  ;;  %vm1483_vm8 = vcmp.eq.f32.partialorder %v5405_v5, %v5631_v23 }
 0x35a   :  { %v2457_v29 = vcvt.s32.f32 %v2455_v56  ;;  %vm1477_vm10 = vcmp.eq.f32.partialorder %v5391_v60, %v5613_v24 }
 0x35b   :  { %v2392_v14 = vcvt.s32.f32 %v2390_v2  ;;  %v2508_v2 = vshrl.u32 %v2506_v43, 16 }
 0x35c   :  { %2552 = vadd.xlane.f32.xlu0 %v2549_v46  ;;  %v2520_v46 = vand.u32 65535, %v5937_v11  ;;  %v2560_v11 = vshrl.u32 %v6050_v44, 16 }
 0x35d   :  { %2500 = vadd.xlane.f32.xlu1 %v2497_v26  ;;  %v2468_v26 = vand.u32 65535, %v5924_v19 }
 0x35e   :  { %v2522_v56 = vcvt.s32.f32 %v2520_v46  ;;  %v2562_v46 = vcvt.s32.f32 %v2560_v11 }
 0x35f   :  { %v2470_v19 = vcvt.s32.f32 %v2468_v26  ;;  %v2510_v26 = vcvt.s32.f32 %v2508_v2  ;;  %v1870_v2 = vsel %vm1742_vm5, 1, %v10064_v31  ;;  %vm1478_vm5 = vcmp.eq.f32.partialorder %v5391_v60, %v5615_v54 }
 0x360   :  { %2591 = vadd.xlane.f32.xlu0 %v2588_v12  ;;  %v6053_v12 = vpop.permute.xlu1 %907  ;;  %vm1618_vm7 = vmand %vm1478_vm5, %vm5870_vm9 }
 0x361   :  { %2539 = vadd.xlane.f32.xlu1 %v2536_v18  ;;  %10090 = vst [vmem:[#allocation80_spill] sm:$0xff] %v6053_v12  ;;  %v1867_v18 = vsel %vm1739_vm12, 1, %v10064_v31  ;;  %vm1476_vm12 = vcmp.eq.f32.partialorder %v5391_v60, %v5609_v33 }
 0x362   :  { %v2571_v55 = vsel %vm9991_vm1, %v1867_v18, 0  ;;  %v2507_v18 = vand.u32 65535, %v2506_v43  ;;  %vm1616_vm3 = vmand %vm1476_vm12, %vm5810_vm0  ;;  %v2494_v43 = vand.u32 65535, %v5990_v48 }
 0x363   :  { %v2573_v53 = vshrl.u32 %v2571_v55, 16  ;;  %v2572_v16 = vand.u32 65535, %v2571_v55  ;;  %vm1744_vm4 = vmor %vm1348_vm15, %vm1616_vm3  ;;  %vm1349_vm15 = vcmp.lt.f32.partialorder %v5391_v60, %v5613_v24  ;;  %v2624_v24 = vand.u32 65535, %v6061_v9 }
 0x364   :  { %2459 = vadd.xlane.f32.xlu0 %v2457_v29  ;;  %v6064_v29 = vpop.permute.xlu0 %637  ;;  %v6070_v39 = vpop.permute.xlu1 %926  ;;  %v2509_v50 = vcvt.s32.f32 %v2507_v18  ;;  %v2496_v48 = vcvt.s32.f32 %v2494_v43  ;;  %v2533_v18 = vand.u32 65535, %v6007_v7  ;;  %vm1746_vm12 = vmor %vm1350_vm6, %vm1618_vm7  ;;  %vm1352_vm7 = vcmp.lt.f32.partialorder %v5394_v61, %v5621_v34 }
 0x365   :  { %2394 = vadd.xlane.f32.xlu1 %v2392_v14  ;;  %10091 = vst [vmem:[#allocation81_spill] sm:$0xff] %v6070_v39  ;;  %v2625_v14 = vshrl.u32 %v6061_v9, 16  ;;  %v2575_v11 = vcvt.s32.f32 %v2573_v53  ;;  %v2574_v33 = vcvt.s32.f32 %v2572_v16  ;;  %vm1617_vm3 = vmand %vm1477_vm10, %vm5796_vm11  ;;  %v2626_v9 = vcvt.s32.f32 %v2624_v24 }
 0x366   :  { %vm1745_vm6 = vmor %vm1349_vm15, %vm1617_vm3  ;;  %vm1481_vm15 = vcmp.eq.f32.partialorder %v5394_v61, %v5625_v6  ;;  %v3935_v39 = vadd.s32 4294967288, %v5757_v30 }
 0x367   :  { %v2627_v52 = vcvt.s32.f32 %v2625_v14  ;;  %v1875_v14 = vsel %vm1747_vm13, 1, %v10064_v31  ;;  %vm1355_vm13 = vcmp.lt.f32.partialorder %v5405_v5, %v5631_v23 }
 0x368   :  { %2524 = vadd.xlane.f32.xlu0 %v2522_v56  ;;  %v6085_v56 = vpop.permute.xlu0 %648  ;;  %v6091_v28 = vpop.permute.xlu1 %633 }
 0x369   :  { %2472 = vadd.xlane.f32.xlu1 %v2470_v19  ;;  %v2403_v19 = vand.u32 65535, %v5963_v21 }
 0x36b   :  { %v2405_v21 = vcvt.s32.f32 %v2403_v19 }
 0x36c   :  { %2565 = vadd.xlane.f32.xlu0 %v2562_v46  ;;  %v6099_v46 = vsel %vm9991_vm1, %v1870_v2, 0  ;;  %v6103_v53 = vpop.permute.xlu0 %656  ;;  %v6105_v55 = vpop.permute.xlu1 %641  ;;  %v1872_v2 = vsel %vm1744_vm4, 1, %v10064_v31  ;;  %vm1480_vm4 = vcmp.eq.f32.partialorder %v5394_v61, %v5621_v34 }
 0x36d   :  { %2513 = vadd.xlane.f32.xlu1 %v2510_v26  ;;  %v1869_v26 = vsel %vm1741_vm14, 1, %v10064_v31  ;;  %10092 = vst [vmem:[#allocation82_spill] sm:$0xff] %v6103_v53  ;;  %10093 = vst [vmem:[#allocation83_spill] sm:$0xff] %v6105_v55  ;;  %v6133_v54 = vsel %vm9991_vm1, %v1872_v2, 0 }
 0x36e   :  { %v6115_v19 = vsel %vm9991_vm1, %v1869_v26, 0  ;;  %vm1623_vm14 = vmand %vm1483_vm8, %vm5766_vm2 }
 0x36f   :  { %v2599_v43 = vshrl.u32 %v6115_v19, 16  ;;  %vm1751_vm5 = vmor %vm1355_vm13, %vm1623_vm14  ;;  %vm1354_vm13 = vcmp.lt.f32.partialorder %v5394_v61, %v5627_v47 }
 0x370   :  { %2630 = vadd.xlane.f32.xlu0 %v2627_v52  ;;  %v2612_v52 = vshrl.u32 %v6099_v46, 16  ;;  %v6125_v7 = vpop.permute.xlu0 %667  ;;  %vm1620_vm8 = vmand %vm1480_vm4, %vm5810_vm0  ;;  %vm1353_vm4 = vcmp.lt.f32.partialorder %v5394_v61, %v5625_v6 }
 0x371   :  { %2578 = vadd.xlane.f32.xlu1 %v2575_v11  ;;  %v6112_v11 = vsel %vm9991_vm1, %v1875_v14, 0  ;;  %10094 = vst [vmem:[#allocation84_spill] sm:$0xff] %v6125_v7  ;;  %v6130_v14 = vpop.permute.xlu1 %652  ;;  %vm1748_vm10 = vmor %vm1352_vm7, %vm1620_vm8  ;;  %vm1356_vm8 = vcmp.lt.f32.partialorder %v5405_v5, %v5633_v38 }
 0x372   :  { %v2677_v16 = vshrl.u32 %v6112_v11, 16  ;;  %10095 = vst [vmem:[#allocation85_spill] sm:$0xff] %v6130_v14  ;;  %v2676_v6 = vand.u32 65535, %v6112_v11 }
 0x374   :  { %2511 = vadd.xlane.f32.xlu0 %v2509_v50  ;;  %v2614_v50 = vcvt.s32.f32 %v2612_v52  ;;  %v2679_v26 = vcvt.s32.f32 %v2677_v16  ;;  %v2601_v52 = vcvt.s32.f32 %v2599_v43  ;;  %v6148_v23 = vpop.permute.xlu0 %675  ;;  %v1873_v43 = vsel %vm1745_vm6, 1, %v10064_v31 }
 0x375   :  { %2407 = vadd.xlane.f32.xlu1 %v2405_v21  ;;  %v2535_v21 = vcvt.s32.f32 %v2533_v18  ;;  %v1874_v18 = vsel %vm1746_vm12, 1, %v10064_v31  ;;  %10096 = vst [vmem:[#allocation86_spill] sm:$0xff] %v6148_v23  ;;  %vm1482_vm12 = vcmp.eq.f32.partialorder %v5394_v61, %v5627_v47  ;;  %vm1484_vm6 = vcmp.eq.f32.partialorder %v5405_v5, %v5633_v38 }
 0x376   :  { %v6159_v16 = vsel %vm9991_vm1, %v1874_v18, 0  ;;  %v6175_v18 = vsel %vm9991_vm1, %v1873_v43, 0  ;;  %vm1622_vm14 = vmand %vm1482_vm12, %vm5870_vm9  ;;  %v2678_v38 = vcvt.s32.f32 %v2676_v6 }
 0x377   :  { %vm1750_vm3 = vmor %vm1354_vm13, %vm1622_vm14  ;;  %vm1423_vm13 = vcmp.eq.f32.partialorder %v5397_v63, %v5643_v57  ;;  %vm1295_vm14 = vcmp.lt.f32.partialorder %v5397_v63, %v5643_v57 }
 0x378   :  { %2576 = vadd.xlane.f32.xlu0 %v2574_v33  ;;  %v2559_v33 = vand.u32 65535, %v6050_v44  ;;  %v6150_v44 = vpop.permute.xlu1 %660  ;;  %v6166_v34 = vpop.permute.xlu0 %686 }
 0x379   :  { %2498 = vadd.xlane.f32.xlu1 %v2496_v48  ;;  %v2638_v48 = vshrl.u32 %v6133_v54, 16  ;;  %10097 = vst [vmem:[#allocation87_spill] sm:$0xff] %v6150_v44  ;;  %10098 = vst [vmem:[#allocation88_spill] sm:$0xff] %v6166_v34 }
 0x37a   :  { %v2561_v60 = vcvt.s32.f32 %v2559_v33 }
 0x37b   :  { %v2640_v2 = vcvt.s32.f32 %v2638_v48 }
 0x37c   :  { %2617 = vadd.xlane.f32.xlu0 %v2614_v50  ;;  %v2546_v50 = vand.u32 65535, %v5986_v49  ;;  %v2585_v49 = vand.u32 65535, %v6002_v32  ;;  %v6172_v48 = vpop.permute.xlu1 %671  ;;  %v6189_v43 = vpop.permute.xlu0 %694 }
 0x37d   :  { %2537 = vadd.xlane.f32.xlu1 %v2535_v21  ;;  %v1879_v21 = vsel %vm1751_vm5, 1, %v10064_v31  ;;  %10099 = vst [vmem:[#allocation89_spill] sm:$0xff] %v6172_v48  ;;  %10100 = vst [vmem:[#allocation90_spill] sm:$0xff] %v6189_v43 }
 0x37e   :  { %v2548_v33 = vcvt.s32.f32 %v2546_v50  ;;  %v2651_v50 = vshrl.u32 %v6175_v18, 16  ;;  %vm1621_vm5 = vmand %vm1481_vm15, %vm5796_vm11 }
 0x37f   :  { %vm1749_vm7 = vmor %vm1353_vm4, %vm1621_vm5  ;;  %vm1485_vm4 = vcmp.eq.f32.partialorder %v5405_v5, %v5637_v15 }
 0x380   :  { %2682 = vadd.xlane.f32.xlu0 %v2679_v26  ;;  %v2664_v26 = vshrl.u32 %v6159_v16, 16  ;;  %v6195_v47 = vpop.permute.xlu1 %679  ;;  %vm1563_vm15 = vmand %vm1423_vm13, %vm5766_vm2 }
 0x381   :  { %2604 = vadd.xlane.f32.xlu1 %v2601_v52  ;;  %v6170_v52 = vsel %vm9991_vm1, %v1879_v21, 0  ;;  %10101 = vst [vmem:[#allocation91_spill] sm:$0xff] %v6195_v47  ;;  %vm1691_vm5 = vmor %vm1295_vm14, %vm1563_vm15  ;;  %vm1425_vm14 = vcmp.eq.f32.partialorder %v5397_v63, %v5651_v0  ;;  %vm1486_vm15 = vcmp.eq.f32.partialorder %v5405_v5, %v5639_v62 }
 0x382   :  { %v2666_v24 = vcvt.s32.f32 %v2664_v26  ;;  %v2729_v32 = vshrl.u32 %v6170_v52, 16  ;;  %v2611_v26 = vand.u32 65535, %v6099_v46  ;;  %v6207_v46 = vpop.permute.xlu0 %705 }
 0x383   :  { %10102 = vst [vmem:[#allocation92_spill] sm:$0xff] %v6207_v46 }
 0x384   :  { %2563 = vadd.xlane.f32.xlu0 %v2561_v60  ;;  %v1876_v60 = vsel %vm1748_vm10, 1, %v10064_v31  ;;  %vm1624_vm10 = vmand %vm1484_vm6, %vm5810_vm0  ;;  %v2613_v61 = vcvt.s32.f32 %v2611_v26  ;;  %v2637_v26 = vand.u32 65535, %v6133_v54  ;;  %vm1296_vm6 = vcmp.lt.f32.partialorder %v5397_v63, %v5645_v40 }
 0x385   :  { %2643 = vadd.xlane.f32.xlu1 %v2640_v2  ;;  %v2587_v2 = vcvt.s32.f32 %v2585_v49  ;;  %v6187_v21 = vsel %vm9991_vm1, %v1876_v60, 0  ;;  %v1878_v60 = vsel %vm1750_vm3, 1, %v10064_v31  ;;  %vm1752_vm12 = vmor %vm1356_vm8, %vm1624_vm10  ;;  %vm1424_vm3 = vcmp.eq.f32.partialorder %v5397_v63, %v5645_v40 }
 0x386   :  { %v2690_v49 = vshrl.u32 %v6187_v21, 16  ;;  %v2639_v54 = vcvt.s32.f32 %v2637_v26  ;;  %vm1357_vm8 = vcmp.lt.f32.partialorder %v5405_v5, %v5637_v15  ;;  %vm1625_vm10 = vmand %vm1485_vm4, %vm5796_vm11 }
 0x387   :  { %vm1753_vm13 = vmor %vm1357_vm8, %vm1625_vm10  ;;  %vm1298_vm10 = vcmp.lt.f32.partialorder %v5397_v63, %v5657_v41 }
 0x388   :  { %2628 = vadd.xlane.f32.xlu0 %v2626_v9  ;;  %v2731_v9 = vcvt.s32.f32 %v2729_v32  ;;  %v2598_v32 = vand.u32 65535, %v6115_v19  ;;  %v1880_v19 = vsel %vm1752_vm12, 1, %v10064_v31  ;;  %vm1565_vm4 = vmand %vm1425_vm14, %vm5796_vm11 }
 0x389   :  { %2550 = vadd.xlane.f32.xlu1 %v2548_v33  ;;  %v2653_v33 = vcvt.s32.f32 %v2651_v50  ;;  %v1877_v50 = vsel %vm1749_vm7, 1, %v10064_v31  ;;  %vm1564_vm7 = vmand %vm1424_vm3, %vm5810_vm0  ;;  %vm1297_vm3 = vcmp.lt.f32.partialorder %v5397_v63, %v5651_v0 }
 0x38a   :  { %v2600_v11 = vcvt.s32.f32 %v2598_v32  ;;  %vm1692_vm12 = vmor %vm1296_vm6, %vm1564_vm7  ;;  %vm1358_vm7 = vcmp.lt.f32.partialorder %v5405_v5, %v5639_v62 }
 0x38b   :  { %vm1626_vm6 = vmand %vm1486_vm15, %vm5870_vm9 }
 0x38c   :  { %2669 = vadd.xlane.f32.xlu0 %v2666_v24  ;;  %v2692_v24 = vcvt.s32.f32 %v2690_v49  ;;  %v2701_v49 = vsel %vm9991_vm1, %v1877_v50, 0  ;;  %v2740_v50 = vsel %vm9991_vm1, %v1880_v19, 0  ;;  %vm1693_vm8 = vmor %vm1297_vm3, %vm1565_vm4  ;;  %vm1299_vm3 = vcmp.lt.f32.partialorder %v5418_v10, %v5649_v36 }
 0x38d   :  { %2589 = vadd.xlane.f32.xlu1 %v2587_v2  ;;  %v2714_v2 = vsel %vm9991_vm1, %v1878_v60, 0  ;;  %v6219_v60 = vpop.permute.xlu0 %713  ;;  %v2703_v32 = vshrl.u32 %v2701_v49, 16  ;;  %v2742_v26 = vshrl.u32 %v2740_v50, 16  ;;  %vm6284_vm14 = vmor %vm1358_vm7, %vm1626_vm6  ;;  %v1821_v62 = vsel %vm1693_vm8, 1, %v10064_v31 }
 0x38e   :  { %10104 = vst [vmem:[#allocation94_spill] sm:$0xff] %v6219_v60  ;;  %vm1300_vm7 = vcmp.lt.f32.partialorder %v5418_v10, %v5663_v27 }
 0x38f   :  { %v2744_v15 = vcvt.s32.f32 %v2742_v26  ;;  %v2689_v26 = vand.u32 65535, %v6187_v21 }
 0x390   :  { %2734 = vadd.xlane.f32.xlu0 %v2731_v9  ;;  %v6212_v9 = vpop.permute.xlu1 %690 }
 0x391   :  { %2656 = vadd.xlane.f32.xlu1 %v2653_v33  ;;  %10103 = vst [vmem:[#allocation93_spill] sm:$0xff] %v6212_v9  ;;  %v2716_v33 = vshrl.u32 %v2714_v2, 16 }
 0x393   :  { %v2718_v6 = vcvt.s32.f32 %v2716_v33  ;;  %v6240_v33 = vpop.permute.xlu0 %724 }
 0x394   :  { %2615 = vadd.xlane.f32.xlu0 %v2613_v61  ;;  %v6225_v61 = vpop.permute.xlu1 %698  ;;  %10106 = vst [vmem:[#allocation96_spill] sm:$0xff] %v6240_v33 }
 0x395   :  { %2695 = vadd.xlane.f32.xlu1 %v2692_v24  ;;  %10105 = vst [vmem:[#allocation95_spill] sm:$0xff] %v6225_v61  ;;  %v2702_v24 = vand.u32 65535, %v2701_v49  ;;  %v1819_v49 = vsel %vm1691_vm5, 1, %v10064_v31  ;;  %vm1426_vm5 = vcmp.eq.f32.partialorder %v5397_v63, %v5657_v41 }
 0x397   :  { %v2704_v57 = vcvt.s32.f32 %v2702_v24  ;;  %v2650_v24 = vand.u32 65535, %v6175_v18 }
 0x398   :  { %2680 = vadd.xlane.f32.xlu0 %v2678_v38  ;;  %v2741_v38 = vand.u32 65535, %v2740_v50  ;;  %v6243_v19 = vpop.permute.xlu1 %709  ;;  %v1881_v50 = vsel %vm1753_vm13, 1, %v10064_v31  ;;  %vm1427_vm13 = vcmp.eq.f32.partialorder %v5418_v10, %v5649_v36  ;;  %v1882_v36 = vsel %vm6284_vm14, 1, %v10064_v31 }
 0x399   :  { %2602 = vadd.xlane.f32.xlu1 %v2600_v11  ;;  %v2705_v11 = vcvt.s32.f32 %v2703_v32  ;;  %10107 = vst [vmem:[#allocation97_spill] sm:$0xff] %v6243_v19  ;;  %v1820_v32 = vsel %vm1692_vm12, 1, %v10064_v31  ;;  %v6271_v0 = vsel %vm9991_vm1, %v1881_v50, 0  ;;  %vm1566_vm12 = vmand %vm1426_vm5, %vm5870_vm9  ;;  %vm1428_vm5 = vcmp.eq.f32.partialorder %v5418_v10, %v5663_v27 }
 0x39a   :  { %v2743_v40 = vcvt.s32.f32 %v2741_v38  ;;  %vm1694_vm15 = vmor %vm1298_vm10, %vm1566_vm12  ;;  %vm1429_vm10 = vcmp.eq.f32.partialorder %v5418_v10, %v5655_v45  ;;  %v2766_v27 = vsel %vm9991_vm1, %v1882_v36, 0  ;;  %v2754_v12 = vand.u32 65535, %v6271_v0 }
 0x39b   :  { %vm1567_vm4 = vmand %vm1427_vm13, %vm5766_vm2  ;;  %vm1301_vm13 = vcmp.lt.f32.partialorder %v5418_v10, %v5655_v45 }
 0x39c   :  { %2721 = vadd.xlane.f32.xlu0 %v2718_v6  ;;  %v2715_v6 = vand.u32 65535, %v2714_v2  ;;  %v6261_v18 = vpop.permute.xlu1 %717  ;;  %vm1695_vm6 = vmor %vm1299_vm3, %vm1567_vm4 }
 0x39d   :  { %2641 = vadd.xlane.f32.xlu1 %v2639_v54  ;;  %v6249_v54 = vsel %vm9991_vm1, %v1819_v49, 0  ;;  %10109 = vst [vmem:[#allocation99_spill] sm:$0xff] %v6261_v18  ;;  %v1960_v49 = vsel %vm9991_vm1, %v1820_v32, 0  ;;  %vm1568_vm8 = vmand %vm1428_vm5, %vm5810_vm0  ;;  %v1823_v5 = vsel %vm1695_vm6, 1, %v10064_v31 }
 0x39e   :  { %v2717_v2 = vcvt.s32.f32 %v2715_v6  ;;  %v1948_v38 = vand.u32 65535, %v6249_v54  ;;  %v1962_v32 = vshrl.u32 %v1960_v49, 16  ;;  %vm1696_vm12 = vmor %vm1300_vm7, %vm1568_vm8  ;;  %v6332_v36 = vsel %vm9991_vm1, %v1823_v5, 0 }
 0x39f   :  { %vm1569_vm14 = vmand %vm1429_vm10, %vm5796_vm11  ;;  %v1824_v45 = vsel %vm1696_vm12, 1, %v10064_v31  ;;  %v2000_v5 = vand.u32 65535, %v6332_v36 }
 0x3a0   :  { %2706 = vadd.xlane.f32.xlu0 %v2704_v57  ;;  %v6255_v57 = vpop.permute.xlu0 %732  ;;  %v1950_v21 = vcvt.s32.f32 %v1948_v38  ;;  %v6289_v63 = vpop.permute.xlu1 %728  ;;  %v6299_v38 = vsel %vm9991_vm1, %v1821_v62, 0  ;;  %vm1697_vm4 = vmor %vm1301_vm13, %vm1569_vm14 }
 0x3a1   :  { %2708 = vadd.xlane.f32.xlu1 %v2705_v11  ;;  %10108 = vst [vmem:[#allocation98_spill] sm:$0xff] %v6255_v57  ;;  %v2652_v11 = vcvt.s32.f32 %v2650_v24  ;;  %v2755_v24 = vshrl.u32 %v6271_v0, 16  ;;  %10113 = vst [vmem:[#allocation101_spill] sm:$0xff] %v6289_v63 }
 0x3a3   :  { %v2757_v50 = vcvt.s32.f32 %v2755_v24 }
 0x3a4   :  { %2745 = vadd.xlane.f32.xlu0 %v2743_v40  ;;  %v1961_v40 = vand.u32 65535, %v1960_v49  ;;  %v6281_v6 = vpop.permute.xlu0 %743  ;;  %v1964_v49 = vcvt.s32.f32 %v1962_v32  ;;  %v10117_v32 = vld [vmem:[#allocation5_spill] sm:$0xff] }
 0x3a5   :  { %2747 = vadd.xlane.f32.xlu1 %v2744_v15  ;;  %10110 = vst [vmem:[#allocation100_spill] sm:$0xff] %v6281_v6  ;;  %v2691_v15 = vcvt.s32.f32 %v2689_v26  ;;  %v10151_v6 = vld [vmem:[#allocation7_spill] sm:$0xff] }
 0x3a6   :  { %v1963_v41 = vcvt.s32.f32 %v1961_v40 }
 0x3a8   :  { %2719 = vadd.xlane.f32.xlu0 %v2717_v2  ;;  %v2663_v2 = vand.u32 65535, %v6159_v16  ;;  %v6305_v26 = vpop.permute.xlu0 %751  ;;  %v6311_v16 = vpop.permute.xlu1 %736 }
 0x3a9   :  { %2654 = vadd.xlane.f32.xlu1 %v2652_v11  ;;  %v1822_v11 = vsel %vm1694_vm15, 1, %v10064_v31  ;;  %10114 = vst [vmem:[#allocation102_spill] sm:$0xff] %v6305_v26  ;;  %10115 = vst [vmem:[#allocation103_spill] sm:$0xff] %v6311_v16  ;;  %v6439_v16 = vsub.s32 %v3935_v39, %v5264_v58  ;;  %v10150_v26 = vld [vmem:[#allocation34_spill] sm:$0xff] }
 0x3aa   :  { %v2665_v40 = vcvt.s32.f32 %v2663_v2  ;;  %v6318_v24 = vsel %vm9991_vm1, %v1822_v11, 0  ;;  %v2768_v11 = vshrl.u32 %v2766_v27, 16 }
 0x3ab   :  { %v1988_v4 = vshrl.u32 %v6318_v24, 16 }
 0x3ac   :  { %1952 = vadd.xlane.f32.xlu0 %v1950_v21  ;;  %v1974_v21 = vand.u32 65535, %v6299_v38 }
 0x3ad   :  { %2693 = vadd.xlane.f32.xlu1 %v2691_v15  ;;  %v2728_v15 = vand.u32 65535, %v6170_v52  ;;  %v10116_v52 = vld [vmem:[#allocation31_spill] sm:$0xff] }
 0x3ae   :  { %v1976_v62 = vcvt.s32.f32 %v1974_v21  ;;  %vm1432_vm15 = vcmp.eq.f32.partialorder %v10117_v32, %v10116_v52  ;;  %v10121_v21 = vld [vmem:[#allocation28_spill] sm:$0xff]  ;;  %vm1304_vm6 = vcmp.lt.f32.partialorder %v10117_v32, %v10116_v52  ;;  %v1825_v52 = vsel %vm1697_vm4, 1, %v10064_v31 }
 0x3af   :  { %v2730_v2 = vcvt.s32.f32 %v2728_v15  ;;  %vm1433_vm5 = vcmp.eq.f32.partialorder %v10117_v32, %v10121_v21  ;;  %vm1572_vm7 = vmand %vm1432_vm15, %vm5810_vm0  ;;  %vm1305_vm13 = vcmp.lt.f32.partialorder %v10117_v32, %v10121_v21  ;;  %v10131_v21 = vld [vmem:[#allocation6_spill] sm:$0xff] }
 0x3b0   :  { %1965 = vadd.xlane.f32.xlu0 %v1963_v41  ;;  %v1987_v41 = vand.u32 65535, %v6318_v24  ;;  %vm6361_vm12 = vmand %vm1433_vm5, %vm5796_vm11  ;;  %vm1436_vm4 = vcmp.eq.f32.partialorder %v10131_v21, %v5687_v17  ;;  %v2001_v24 = vshrl.u32 %v6332_v36, 16 }
 0x3b1   :  { %2760 = vadd.xlane.f32.xlu1 %v2757_v50  ;;  %v6329_v50 = vpop.permute.xlu0 %762  ;;  %vm1700_vm14 = vmor %vm1304_vm6, %vm1572_vm7 }
 0x3b2   :  { %10118 = vst [vmem:[#allocation31_spill] sm:$0xff] %v6329_v50  ;;  %v1989_v15 = vcvt.s32.f32 %v1987_v41  ;;  %vm1701_vm5 = vmor %vm1305_vm13, %vm6361_vm12 }
 0x3b3   :  { %v1829_v41 = vsel %vm1701_vm5, 1, %v10064_v31 }
 0x3b4   :  { %1967 = vadd.xlane.f32.xlu0 %v1964_v49  ;;  %v10119_v49 = vld [vmem:[#allocation27_spill] sm:$0xff] }
 0x3b5   :  { %2667 = vadd.xlane.f32.xlu1 %v2665_v40  ;;  %vm1431_vm3 = vcmp.eq.f32.partialorder %v10117_v32, %v10119_v49  ;;  %v6337_v40 = vpop.permute.xlu1 %747  ;;  %vm1303_vm10 = vcmp.lt.f32.partialorder %v10117_v32, %v10119_v49  ;;  %v6367_v0 = vpop.permute.xlu0 %770  ;;  %v2002_v49 = vcvt.s32.f32 %v2000_v5  ;;  %v1828_v5 = vsel %vm1700_vm14, 1, %v10064_v31 }
 0x3b6   :  { %10120 = vst [vmem:[#allocation5_spill] sm:$0xff] %v6337_v40  ;;  %vm6348_vm8 = vmand %vm1431_vm3, %vm5766_vm2  ;;  %vm1435_vm14 = vcmp.eq.f32.partialorder %v10131_v21, %v10137_v3 }
 0x3b7   :  { %10126 = vst [vmem:[#allocation27_spill] sm:$0xff] %v6367_v0  ;;  %vm6376_vm3 = vmor %vm1303_vm10, %vm6348_vm8  ;;  %v2767_v0 = vand.u32 65535, %v2766_v27  ;;  %vm1308_vm8 = vcmp.lt.f32.partialorder %v10131_v21, %v5687_v17  ;;  %v10154_v17 = vld [vmem:[#allocation35_spill] sm:$0xff] }
 0x3b8   :  { %1978 = vadd.xlane.f32.xlu0 %v1976_v62  ;;  %v2770_v62 = vcvt.s32.f32 %v2768_v11  ;;  %v10127_v11 = vld [vmem:[#allocation29_spill] sm:$0xff]  ;;  %vm6399_vm10 = vmand %vm1436_vm4, %vm5810_vm0 }
 0x3b9   :  { %2732 = vadd.xlane.f32.xlu1 %v2730_v2  ;;  %v6354_v2 = vsel %vm9991_vm1, %v1824_v45, 0  ;;  %vm1430_vm15 = vcmp.eq.f32.partialorder %v5418_v10, %v10127_v11  ;;  %v6371_v45 = vpop.permute.xlu1 %755  ;;  %vm1302_vm6 = vcmp.lt.f32.partialorder %v5418_v10, %v10127_v11  ;;  %v10134_v11 = vld [vmem:[#allocation32_spill] sm:$0xff]  ;;  %vm6434_vm4 = vmor %vm1308_vm8, %vm6399_vm10 }
 0x3ba   :  { %10128 = vst [vmem:[#allocation28_spill] sm:$0xff] %v6371_v45  ;;  %v2013_v37 = vand.u32 65535, %v6354_v2  ;;  %vm1570_vm7 = vmand %vm1430_vm15, %vm5870_vm9  ;;  %vm1437_vm12 = vcmp.eq.f32.partialorder %v10131_v21, %v10134_v11 }
 0x3bb   :  { %vm6411_vm13 = vmor %vm1302_vm6, %vm1570_vm7  ;;  %vm1307_vm6 = vcmp.lt.f32.partialorder %v10131_v21, %v10137_v3 }
 0x3bc   :  { %1991 = vadd.xlane.f32.xlu0 %v1989_v15  ;;  %v2756_v15 = vcvt.s32.f32 %v2754_v12  ;;  %v2015_v27 = vcvt.s32.f32 %v2013_v37  ;;  %v6419_v37 = vsub.s32 %v5757_v30, %v5264_v58  ;;  %vm6451_vm5 = vmand %vm1437_vm12, %vm5796_vm11  ;;  %v1826_v40 = vsel %vm6411_vm13, 1, %v10064_v31 }
 0x3bd   :  { %2773 = vadd.xlane.f32.xlu1 %v2770_v62  ;;  %v6383_v62 = vsel %vm9991_vm1, %v1825_v52, 0  ;;  %v1949_v52 = vshrl.u32 %v6249_v54, 16  ;;  %v3942_v54 = vadd.s32 4294967280, %v5757_v30  ;;  %v6422_v50 = vpop.permute.xlu1 %766  ;;  %vm6466_vm7 = vmand %vm1435_vm14, %vm5766_vm2  ;;  %vm1439_vm14 = vcmp.eq.f32.partialorder %v10151_v6, %v10150_v26 }
 0x3be   :  { %v2027_v10 = vshrl.u32 %v6383_v62, 16  ;;  %10138 = vst [vmem:[#allocation29_spill] sm:$0xff] %v6422_v50  ;;  %v2026_v42 = vand.u32 65535, %v6383_v62  ;;  %vm6513_vm13 = vmor %vm1307_vm6, %vm6466_vm7  ;;  %vm1313_vm6 = vcmp.lt.f32.partialorder %v10151_v6, %v10154_v17 }
 0x3bf   :  { %v1831_v35 = vsel %vm6513_vm13, 1, %v10064_v31 }
 0x3c0   :  { %2004 = vadd.xlane.f32.xlu0 %v2002_v49  ;;  %v2769_v49 = vcvt.s32.f32 %v2767_v0  ;;  %v1827_v0 = vsel %vm6376_vm3, 1, %v10064_v31  ;;  %vm1309_vm3 = vcmp.lt.f32.partialorder %v10131_v21, %v10134_v11  ;;  %v2029_v1 = vcvt.s32.f32 %v2027_v10 }
 0x3c1   :  { %v6393_v45 = vpop.xlane.xlu0 %2370  ;;  %2758 = vadd.xlane.f32.xlu1 %v2756_v15  ;;  %v6409_v15 = vsel %vm9991_vm1, %v1828_v5, 0  ;;  %v10139_v5 = vld [vmem:[#allocation33_spill] sm:$0xff]  ;;  %v1975_v10 = vshrl.u32 %v6299_v38, 16  ;;  %v6487_v38 = vsub.s32 %v3942_v54, %v5264_v58  ;;  %vm6498_vm12 = vmor %vm1309_vm3, %vm6451_vm5  ;;  %v6523_v18 = vsel %vm9991_vm1, %v1827_v0, 0 }
 0x3c2   :  { %vm1434_vm15 = vcmp.eq.f32.partialorder %v10117_v32, %v10139_v5  ;;  %v2066_v39 = vshrl.u32 %v6409_v15, 16  ;;  %vm1306_vm8 = vcmp.lt.f32.partialorder %v10117_v32, %v10139_v5  ;;  %vm1311_vm3 = vcmp.lt.f32.partialorder %v10151_v6, %v10150_v26  ;;  %vm6550_vm5 = vmand %vm1439_vm14, %vm5766_vm2 }
 0x3c3   :  { %vm6479_vm10 = vmand %vm1434_vm15, %vm5870_vm9  ;;  %vm1441_vm15 = vcmp.eq.f32.partialorder %v10151_v6, %v10154_v17  ;;  %v1977_v12 = vcvt.s32.f32 %v1975_v10  ;;  %v6555_v32 = vsel %vm9991_vm1, %v1826_v40, 0  ;;  %v2028_v40 = vcvt.s32.f32 %v2026_v42  ;;  %v10165_v42 = vld [vmem:[#allocation36_spill] sm:$0xff] }
 0x3c4   :  { %2017 = vadd.xlane.f32.xlu0 %v2015_v27  ;;  %v3949_v27 = vadd.s32 4294967272, %v5757_v30  ;;  %v6457_v30 = vsel %vm9991_vm1, %v1829_v41, 0  ;;  %v2068_v57 = vcvt.s32.f32 %v2066_v39  ;;  %vm6567_vm7 = vmand %vm1441_vm15, %vm5796_vm11  ;;  %v2053_v5 = vshrl.u32 %v6523_v18, 16 }
 0x3c5   :  { %v6442_v50 = vpop.xlane.xlu0 %2422  ;;  %2771 = vadd.xlane.f32.xlu1 %v2769_v49  ;;  %v1951_v49 = vcvt.s32.f32 %v1949_v52  ;;  %v1832_v52 = vsel %vm6434_vm4, 1, %v10064_v31  ;;  %v2079_v36 = vshrl.u32 %v6457_v30, 16  ;;  %vm6530_vm4 = vmor %vm1306_vm8, %vm6479_vm10  ;;  %v2078_v33 = vand.u32 65535, %v6457_v30 }
 0x3c6   :  { %v6535_v62 = vsub.s32 %v3949_v27, %v5264_v58  ;;  %v6538_v39 = vsel %vm9991_vm1, %v1832_v52, 0  ;;  %v10162_v27 = vld [vmem:[#allocation38_spill] sm:$0xff]  ;;  %vm6582_vm10 = vmor %vm1311_vm3, %vm6550_vm5  ;;  %v10168_v58 = vld [vmem:[#allocation37_spill] sm:$0xff]  ;;  %v2425_v63 = vcvt.f32.s32 %v6442_v50  ;;  %vm1310_vm5 = vcmp.lt.f32.partialorder %v10131_v21, %v10165_v42 }
 0x3c7   :  { %vm1440_vm8 = vcmp.eq.f32.partialorder %v10151_v6, %v10162_v27  ;;  %v2081_v41 = vcvt.s32.f32 %v2079_v36  ;;  %v2118_v52 = vshrl.u32 %v6538_v39, 16  ;;  %v2040_v36 = vshrl.u32 %v6555_v32, 16  ;;  %vm6600_vm14 = vmor %vm1313_vm6, %vm6567_vm7 }
 0x3c8   :  { %2032 = vadd.xlane.f32.xlu0 %v2029_v1  ;;  %v6519_v1 = vpop.permute.xlu1 %774  ;;  %vm1312_vm15 = vcmp.lt.f32.partialorder %v10151_v6, %v10162_v27  ;;  %v1837_v11 = vsel %vm6600_vm14, 1, %v10064_v31  ;;  %v6674_v47 = vcvt.s32.f32 %v2078_v33  ;;  %v2039_v17 = vand.u32 65535, %v6555_v32 }
 0x3c9   :  { %v6504_v54 = vpop.xlane.xlu0 %2448  ;;  %1954 = vadd.xlane.f32.xlu1 %v1951_v49  ;;  %10155 = vst [vmem:[#allocation6_spill] sm:$0xff] %v6519_v1  ;;  %v2014_v49 = vshrl.u32 %v6354_v2, 16  ;;  %v1990_v1 = vcvt.s32.f32 %v1988_v4  ;;  %v1833_v2 = vsel %vm6498_vm12, 1, %v10064_v31  ;;  %v2003_v4 = vcvt.s32.f32 %v2001_v24 }
 0x3ca   :  { %vm1438_vm12 = vcmp.eq.f32.partialorder %v10131_v21, %v10165_v42  ;;  %v6589_v51 = vsel %vm9991_vm1, %v1833_v2, 0  ;;  %v6607_v2 = vsel %vm9991_vm1, %v1831_v35, 0  ;;  %v2065_v35 = vand.u32 65535, %v6409_v15 }
 0x3cb   :  { %v2016_v24 = vcvt.s32.f32 %v2014_v49  ;;  %v1830_v49 = vsel %vm6530_vm4, 1, %v10064_v31  ;;  %vm6617_vm4 = vmand %vm1440_vm8, %vm5810_vm0  ;;  %v1835_v15 = vsel %vm6582_vm10, 1, %v10064_v31  ;;  %v6672_v43 = vcvt.s32.f32 %v2040_v36 }
 0x3cc   :  { %2071 = vadd.xlane.f32.xlu0 %v2068_v57  ;;  %vm6629_vm3 = vmand %vm1438_vm12, %vm5870_vm9  ;;  %v2067_v26 = vcvt.s32.f32 %v2065_v35  ;;  %v2426_v27 = vshll.u32 %v2425_v63, 16  ;;  %v6690_v33 = vsel %vm9991_vm1, %v1835_v15, 0  ;;  %v10182_v63 = vld [vmem:[#allocation40_spill] sm:$0xff]  ;;  %v2117_v32 = vand.u32 65535, %v6538_v39  ;;  %v10183_v15 = vld [vmem:[#allocation39_spill] sm:$0xff] }
 0x3cd   :  { %v6571_v57 = vpop.xlane.xlu0 %2487  ;;  %1980 = vadd.xlane.f32.xlu1 %v1977_v12  ;;  %vm6665_vm8 = vmor %vm1312_vm15, %vm6617_vm4  ;;  %vm1442_vm14 = vcmp.eq.f32.partialorder %v10151_v6, %v10182_v63  ;;  %v6708_v42 = vsel %vm9991_vm1, %v1837_v11, 0  ;;  %v2157_v39 = vshrl.u32 %v6690_v33, 16  ;;  %v6724_v11 = vcvt.s32.f32 %v2039_v17  ;;  %v10187_v17 = vld [vmem:[#allocation10_spill] sm:$0xff] }
 0x3ce   :  { %v2384_v10 = vpop.xlane.xlu1 %2383  ;;  %vm6682_vm10 = vmor %vm1310_vm5, %vm6629_vm3  ;;  %vm1314_vm15 = vcmp.lt.f32.partialorder %v10151_v6, %v10182_v63  ;;  %v2490_v6 = vcvt.f32.s32 %v6571_v57 }
 0x3cf   :  { %v2386_v12 = vcvt.f32.s32 %v2384_v10  ;;  %v10169_v10 = vld [vmem:[#allocation9_spill] sm:$0xff]  ;;  %vm6736_vm4 = vmand %vm1442_vm14, %vm5870_vm9 }
 0x3d0   :  { %vm1443_vm13 = vcmp.eq.f32.partialorder %v10169_v10, %v10168_v58  ;;  %2084 = vadd.xlane.f32.xlu0 %v2081_v41  ;;  %v6622_v41 = vcvt.s32.f32 %v2053_v5  ;;  %v2105_v5 = vshrl.u32 %v6607_v2, 16  ;;  %vm1315_vm7 = vcmp.lt.f32.partialorder %v10169_v10, %v10168_v58 }
 0x3d1   :  { %v2387_v3 = vshll.u32 %v2386_v12, 16  ;;  %v2382_v0 = vpop.xlane.xlu0 %2381  ;;  %1993 = vadd.xlane.f32.xlu1 %v1990_v1  ;;  %v2120_v12 = vcvt.s32.f32 %v2118_v52  ;;  %v2131_v1 = vshrl.u32 %v6589_v51, 16  ;;  %vm6647_vm6 = vmand %vm1443_vm13, %vm5766_vm2  ;;  %v6653_v52 = vsel %vm9991_vm1, %v1830_v49, 0 }
 0x3d2   :  { %v2385_v61 = vcvt.f32.s32 %v2382_v0  ;;  %v6634_v60 = vpop.xlane.xlu1 %2435  ;;  %v2052_v49 = vand.u32 65535, %v6523_v18  ;;  %vm6697_vm12 = vmor %vm1315_vm7, %vm6647_vm6  ;;  %v6712_v35 = vcvt.s32.f32 %v2105_v5  ;;  %vm1445_vm13 = vcmp.eq.f32.partialorder %v10169_v10, %v10183_v15 }
 0x3d3   :  { %v2133_v58 = vcvt.s32.f32 %v2131_v1  ;;  %v2183_v0 = vshrl.u32 %v6708_v42, 16  ;;  %vm6758_vm5 = vmand %vm1445_vm13, %vm5796_vm11  ;;  %v2091_v34 = vand.u32 65535, %v6653_v52  ;;  %vm1317_vm7 = vcmp.lt.f32.partialorder %v10169_v10, %v10183_v15 }
 0x3d4   :  { %v6669_v19 = vadd.s32 %v2387_v3, %v2385_v61  ;;  %2123 = vadd.xlane.f32.xlu0 %v2120_v12  ;;  %v6714_v30 = vcvt.s32.f32 %v2052_v49  ;;  %v1834_v12 = vsel %vm6682_vm10, 1, %v10064_v31  ;;  %v10186_v49 = vld [vmem:[#allocation41_spill] sm:$0xff]  ;;  %v2373_v61 = vcvt.f32.s32 %v6393_v45 }
 0x3d5   :  { %v2421_v46 = vpop.xlane.xlu0 %2420  ;;  %2006 = vadd.xlane.f32.xlu1 %v2003_v4  ;;  %v2092_v4 = vshrl.u32 %v6653_v52, 16  ;;  %vm1447_vm3 = vcmp.eq.f32.partialorder %v10187_v17, %v10186_v49  ;;  %v2104_v45 = vand.u32 65535, %v6607_v2  ;;  %v6783_v52 = vsel %vm9991_vm1, %v1834_v12, 0 }
 0x3d6   :  { %v2424_v18 = vcvt.f32.s32 %v2421_v46  ;;  %v6686_v3 = vpop.xlane.xlu1 %2396  ;;  %v1836_v46 = vsel %vm6665_vm8, 1, %v10064_v31  ;;  %vm6774_vm8 = vmor %vm1314_vm15, %vm6736_vm4  ;;  %vm1319_vm10 = vcmp.lt.f32.partialorder %v10187_v17, %v10186_v49  ;;  %v6800_v63 = vcvt.s32.f32 %v2183_v0 }
 0x3d7   :  { %v6743_v5 = vsel %vm9991_vm1, %v1836_v46, 0  ;;  %v10190_v46 = vld [vmem:[#allocation42_spill] sm:$0xff]  ;;  %v6802_v12 = vcvt.s32.f32 %v2157_v39  ;;  %v2374_v1 = vshll.u32 %v2373_v61, 16  ;;  %vm6821_vm15 = vmor %vm1317_vm7, %vm6758_vm5  ;;  %v6825_v0 = vcvt.s32.f32 %v2091_v34  ;;  %v10203_v39 = vld [vmem:[#allocation43_spill] sm:$0xff] }
 0x3d8   :  { %v6710_v36 = vadd.s32 %v2426_v27, %v2424_v18  ;;  %2030 = vadd.xlane.f32.xlu0 %v2028_v40  ;;  %v1839_v40 = vsel %vm6697_vm12, 1, %v10064_v31  ;;  %v6749_v27 = vcvt.s32.f32 %v2117_v32  ;;  %v6751_v18 = vcvt.s32.f32 %v2092_v4  ;;  %vm6795_vm12 = vmand %vm1447_vm3, %vm5766_vm2 }
 0x3d9   :  { %v6721_v50 = vpop.xlane.xlu0 %2461  ;;  %2019 = vadd.xlane.f32.xlu1 %v2016_v24  ;;  %vm1444_vm6 = vcmp.eq.f32.partialorder %v10169_v10, %v10190_v46  ;;  %v2156_v4 = vand.u32 65535, %v6690_v33  ;;  %v2170_v2 = vshrl.u32 %v6743_v5, 16  ;;  %vm1316_vm14 = vcmp.lt.f32.partialorder %v10169_v10, %v10190_v46  ;;  %vm6839_vm4 = vmor %vm1319_vm10, %vm6795_vm12 }
 0x3da   :  { %v6740_v24 = vpop.xlane.xlu1 %2474  ;;  %vm6811_vm13 = vmand %vm1444_vm6, %vm5810_vm0  ;;  %v6827_v23 = vcvt.s32.f32 %v2104_v45  ;;  %v2144_v48 = vshrl.u32 %v6783_v52, 16  ;;  %v2130_v46 = vand.u32 65535, %v6589_v51  ;;  %vm1449_vm5 = vcmp.eq.f32.partialorder %v10187_v17, %v10203_v39 }
 0x3db   :  { %v2172_v21 = vcvt.s32.f32 %v2170_v2  ;;  %v6844_v45 = vcvt.s32.f32 %v2156_v4  ;;  %vm6851_vm3 = vmor %vm1316_vm14, %vm6811_vm13  ;;  %vm9997_vm6 = vcmask 130112   ;;  %v3647_v15 = vcvt.s32.f32 %v6710_v36 }
 0x3dc   :  { %2069 = vadd.xlane.f32.xlu0 %v2067_v26  ;;  %v6786_v26 = vsel %vm9991_vm1, %v1839_v40, 0  ;;  %v6863_v55 = vcvt.s32.f32 %v2144_v48  ;;  %v2491_v48 = vshll.u32 %v2490_v6, 16  ;;  %v2143_v36 = vand.u32 65535, %v6783_v52  ;;  %vm6903_vm10 = vmand %vm1449_vm5, %vm5796_vm11 }
 0x3dd   :  { %v6778_v9 = vpop.xlane.xlu0 %2526  ;;  %2058 = vadd.xlane.f32.xlu1 %v6622_v41  ;;  %v2451_v41 = vcvt.f32.s32 %v6504_v54  ;;  %v3644_v54 = vcvt.s32.f32 %v6669_v19  ;;  %v2209_v61 = vshrl.u32 %v6786_v26, 16  ;;  %v1838_v19 = vsel %vm6774_vm8, 1, %v10064_v31 }
 0x3de   :  { %v2369_v33 = vpop.xlane.xlu1 %2368  ;;  %vm1321_vm8 = vcmp.lt.f32.partialorder %v10187_v17, %v10203_v39  ;;  %v2529_v39 = vcvt.f32.s32 %v6778_v9 }
 0x3df   :  { %v2372_v44 = vcvt.f32.s32 %v2369_v33  ;;  %v2452_v49 = vshll.u32 %v2451_v41, 16  ;;  %v4955_v4 = vadd.f32 -15.5, %v3644_v54  ;;  %v6866_v41 = vsel %vm9991_vm1, %v1838_v19, 0 }
 0x3e0   :  { %2136 = vadd.xlane.f32.xlu0 %v2133_v58  ;;  %v6868_v57 = vcvt.s32.f32 %v2209_v61  ;;  %v1840_v54 = vsel %vm6851_vm3, 1, %v10064_v31 }
 0x3e1   :  { %v2375_v34 = vadd.s32 %v2374_v1, %v2372_v44  ;;  %v2447_v58 = vpop.xlane.xlu0 %2446  ;;  %2045 = vadd.xlane.f32.xlu1 %v6672_v43  ;;  %v2438_v44 = vcvt.f32.s32 %v6634_v60  ;;  %v1841_v43 = vsel %vm6821_vm15, 1, %v10064_v31  ;;  %v1843_v60 = vsel %vm6839_vm4, 1, %v10064_v31  ;;  %vm6942_vm15 = vmor %vm1321_vm8, %vm6903_vm10 }
 0x3e2   :  { %v2450_v33 = vcvt.f32.s32 %v2447_v58  ;;  %v6857_v1 = vpop.xlane.xlu1 %2409  ;;  %v6913_v52 = vsel %vm9991_vm1, %v1843_v60, 0  ;;  %v10209_v60 = vld [vmem:[#allocation45_spill] sm:$0xff] }
 0x3e3   :  { %v3643_v2 = vcvt.s32.f32 %v2375_v34  ;;  %v2439_v19 = vshll.u32 %v2438_v44, 16 }
 0x3e4   :  { %v2453_v40 = vadd.s32 %v2452_v49, %v2450_v33  ;;  %2175 = vadd.xlane.f32.xlu0 %v2172_v21  ;;  %v4096_v21 = vrot.slane %v4955_v4, %v6439_v16  ;;  %v10204_v33 = vld [vmem:[#allocation44_spill] sm:$0xff] }
 0x3e5   :  { %v4954_v51 = vadd.f32 -15.5, %v3643_v2  ;;  %v2486_v34 = vpop.xlane.xlu0 %2485  ;;  %2110 = vadd.xlane.f32.xlu1 %v6712_v35  ;;  %vm1446_vm7 = vcmp.eq.f32.partialorder %v10169_v10, %v10204_v33  ;;  %v2196_v35 = vshrl.u32 %v6866_v41, 16  ;;  %vm1318_vm12 = vcmp.lt.f32.partialorder %v10169_v10, %v10204_v33 }
 0x3e6   :  { %v2489_v61 = vcvt.f32.s32 %v2486_v34  ;;  %v2434_v58 = vpop.xlane.xlu1 %2433  ;;  %v3649_v14 = vcvt.s32.f32 %v2453_v40  ;;  %vm6923_vm14 = vmand %vm1446_vm7, %vm5870_vm9  ;;  %vm3947_vm7 = vcmask 195712  }
 0x3e7   :  { %v4092_v49 = vrot.slane %v4954_v51, %v6419_v37  ;;  %v2437_v32 = vcvt.f32.s32 %v2434_v58  ;;  %v2169_v51 = vand.u32 65535, %v6743_v5  ;;  %v2208_v5 = vand.u32 65535, %v6786_v26  ;;  %vm6958_vm4 = vmor %vm1318_vm12, %vm6923_vm14 }
 0x3e8   :  { %v6884_v2 = vadd.s32 %v2491_v48, %v2489_v61  ;;  %2082 = vadd.xlane.f32.xlu0 %v6674_v47  ;;  %v4958_v48 = vadd.f32 -15.5, %v3647_v15  ;;  %v10210_v61 = vld [vmem:[#allocation14_spill] sm:$0xff]  ;;  %v4960_v26 = vadd.f32 -15.5, %v3649_v14  ;;  %v6932_v58 = vcvt.s32.f32 %v2196_v35 }
 0x3e9   :  { %v6889_v6 = vsel %vm9997_vm6, %v4096_v21, %v4092_v49  ;;  %v2440_v44 = vadd.s32 %v2439_v19, %v2437_v32  ;;  %v6891_v4 = vpop.xlane.xlu0 %2552  ;;  %2056 = vadd.xlane.f32.xlu1 %v6714_v30  ;;  %v6910_v30 = vsel %vm9991_vm1, %v1840_v54, 0  ;;  %v6927_v19 = vcvt.s32.f32 %v2130_v46  ;;  %v10217_v47 = vld [vmem:[#allocation46_spill] sm:$0xff] }
 0x3ea   :  { %v6907_v40 = vpop.xlane.xlu1 %2500  ;;  %vm1451_vm13 = vcmp.eq.f32.partialorder %v10210_v61, %v10209_v60  ;;  %v6935_v21 = vsel %vm9991_vm1, %v1841_v43, 0  ;;  %v2222_v14 = vshrl.u32 %v6910_v30, 16  ;;  %v6951_v43 = vcvt.s32.f32 %v2143_v36 }
 0x3eb   :  { %v3648_v54 = vcvt.s32.f32 %v2440_v44  ;;  %vm1323_vm3 = vcmp.lt.f32.partialorder %v10210_v61, %v10209_v60  ;;  %v6967_v35 = vcvt.s32.f32 %v2169_v51  ;;  %v6969_v44 = vcvt.s32.f32 %v2208_v5  ;;  %vm6976_vm5 = vmand %vm1451_vm13, %vm5766_vm2 }
 0x3ec   :  { %2121 = vadd.xlane.f32.xlu0 %v6749_v27  ;;  %v2261_v27 = vshrl.u32 %v6913_v52, 16  ;;  %v4111_v33 = vrot.slane %v4958_v48, %v6419_v37  ;;  %v2399_v36 = vcvt.f32.s32 %v6686_v3  ;;  %v6986_v51 = vsel %vm6942_vm15, 1, %v10064_v31  ;;  %vm7004_vm10 = vmor %vm1323_vm3, %vm6976_vm5 }
 0x3ed   :  { %v4959_v46 = vadd.f32 -15.5, %v3648_v54  ;;  %v6946_v49 = vpop.xlane.xlu0 %2591  ;;  %2097 = vadd.xlane.f32.xlu1 %v6751_v18  ;;  %v2464_v18 = vcvt.f32.s32 %v6721_v50  ;;  %vm1448_vm8 = vcmp.eq.f32.partialorder %v10187_v17, %v10217_v47  ;;  %v4120_v5 = vrot.slane %v4960_v26, %v6487_v38 }
 0x3ee   :  { %v6965_v32 = vpop.xlane.xlu1 %2539  ;;  %v2235_v34 = vshrl.u32 %v6935_v21, 16  ;;  %v1842_v3 = vsel %vm6958_vm4, 1, %v10064_v31  ;;  %v2224_v15 = vcvt.s32.f32 %v2222_v14  ;;  %vm1320_vm12 = vcmp.lt.f32.partialorder %v10187_v17, %v10217_v47  ;;  %vm7017_vm14 = vmand %vm1448_vm8, %vm5810_vm0 }
 0x3ef   :  { %v4115_v50 = vrot.slane %v4959_v46, %v6439_v16  ;;  %v2182_v46 = vand.u32 65535, %v6708_v42  ;;  %v2465_v26 = vshll.u32 %v2464_v18, 16  ;;  %v2477_v60 = vcvt.f32.s32 %v6740_v24  ;;  %vm1716_vm13 = vmor %vm1320_vm12, %vm7017_vm14  ;;  %v10222_v24 = vld [vmem:[#allocation47_spill] sm:$0xff] }
 0x3f0   :  { %2188 = vadd.xlane.f32.xlu0 %v6800_v63  ;;  %v7022_v18 = vcvt.s32.f32 %v2261_v27  ;;  %v7024_v10 = vcvt.s32.f32 %v2235_v34  ;;  %vm1453_vm15 = vcmp.eq.f32.partialorder %v10210_v61, %v10222_v24  ;;  %v2530_v27 = vshll.u32 %v2529_v39, 16 }
 0x3f1   :  { %v4116_v48 = vsel %vm9997_vm6, %v4115_v50, %v4111_v33  ;;  %v2460_v54 = vpop.xlane.xlu0 %2459  ;;  %2162 = vadd.xlane.f32.xlu1 %v6802_v12  ;;  %v2400_v12 = vshll.u32 %v2399_v36, 16  ;;  %v7033_v36 = vcvt.s32.f32 %v2182_v46  ;;  %v2478_v63 = vshll.u32 %v2477_v60, 16  ;;  %vm7061_vm8 = vmand %vm1453_vm15, %vm5796_vm11 }
 0x3f2   :  { %v2463_v7 = vcvt.f32.s32 %v2460_v54  ;;  %v4121_v33 = vsel %vm3947_vm7, %v4120_v5, %v4116_v48  ;;  %v2395_v50 = vpop.xlane.xlu1 %2394  ;;  %v7027_v5 = vsel %vm9991_vm1, %v1842_v3, 0  ;;  %v1847_v48 = vsel %vm7004_vm10, 1, %v10064_v31 }
 0x3f3   :  { %v2398_v9 = vcvt.f32.s32 %v2395_v50  ;;  %v10223_v50 = vld [vmem:[#allocation48_spill] sm:$0xff]  ;;  %v2248_v47 = vshrl.u32 %v7027_v5, 16  ;;  %v1844_v39 = vsel %vm1716_vm13, 1, %v10064_v31  ;;  %vm9998_vm3 = vcmask 261312  }
 0x3f4   :  { %v2466_v14 = vadd.s32 %v2465_v26, %v2463_v7  ;;  %2227 = vadd.xlane.f32.xlu0 %v2224_v15  ;;  %v2195_v7 = vand.u32 65535, %v6866_v41  ;;  %vm1450_vm4 = vcmp.eq.f32.partialorder %v10187_v17, %v10223_v50  ;;  %vm1325_vm5 = vcmp.lt.f32.partialorder %v10210_v61, %v10222_v24 }
 0x3f5   :  { %v2401_v54 = vadd.s32 %v2400_v12, %v2398_v9  ;;  %v2525_v53 = vpop.xlane.xlu0 %2524  ;;  %2043 = vadd.xlane.f32.xlu1 %v6724_v11  ;;  %v3652_v11 = vcvt.s32.f32 %v6884_v2  ;;  %vm1322_vm10 = vcmp.lt.f32.partialorder %v10187_v17, %v10223_v50  ;;  %vm7074_vm12 = vmand %vm1450_vm4, %vm5870_vm9 }
 0x3f6   :  { %v3650_v34 = vcvt.s32.f32 %v2466_v14  ;;  %v2528_v3 = vcvt.f32.s32 %v2525_v53  ;;  %v2473_v15 = vpop.xlane.xlu1 %2472  ;;  %vm7099_vm14 = vmor %vm1325_vm5, %vm7061_vm8 }
 0x3f7   :  { %v3645_v46 = vcvt.s32.f32 %v2401_v54  ;;  %v2476_v26 = vcvt.f32.s32 %v2473_v15  ;;  %v4963_v54 = vadd.f32 -15.5, %v3652_v11  ;;  %vm7119_vm15 = vmor %vm1322_vm10, %vm7074_vm12  ;;  %v1849_v50 = vsel %vm7099_vm14, 1, %v10064_v31 }
 0x3f8   :  { %v4961_v41 = vadd.f32 -15.5, %v3650_v34  ;;  %v7046_v42 = vadd.s32 %v2530_v27, %v2528_v3  ;;  %2095 = vadd.xlane.f32.xlu0 %v6825_v0  ;;  %v7080_v3 = vsel %vm9991_vm1, %v1847_v48, 0 }
 0x3f9   :  { %v4956_v53 = vadd.f32 -15.5, %v3645_v46  ;;  %v2479_v12 = vadd.s32 %v2478_v63, %v2476_v26  ;;  %v7051_v60 = vpop.xlane.xlu0 %2565  ;;  %2108 = vadd.xlane.f32.xlu1 %v6827_v23  ;;  %v2221_v23 = vand.u32 65535, %v6910_v30  ;;  %v7087_v30 = vsel %vm9991_vm1, %v1844_v39, 0 }
 0x3fa   :  { %v4125_v2 = vrot.slane %v4961_v41, %v6535_v62  ;;  %v2514_v9 = vpop.xlane.xlu1 %2513  ;;  %v2260_v63 = vand.u32 65535, %v6913_v52  ;;  %v7092_v46 = vsel %vm9991_vm1, %v6986_v51, 0  ;;  %v7112_v51 = vcvt.s32.f32 %v2248_v47 }
 0x3fb   :  { %v4101_v27 = vrot.slane %v4956_v53, %v6487_v38  ;;  %v3651_v34 = vcvt.s32.f32 %v2479_v12  ;;  %v2516_v41 = vcvt.f32.s32 %v2514_v9  ;;  %v7124_v53 = vcvt.s32.f32 %v2195_v7 }
 0x3fc   :  { %v7083_v15 = vsel %vm9998_vm3, %v4125_v2, %v4121_v33  ;;  %2160 = vadd.xlane.f32.xlu0 %v6844_v45  ;;  %v10230_v33 = vld [vmem:[#allocation49_spill] sm:$0xff]  ;;  %v10231_v45 = vld [vmem:[#allocation8_spill] sm:$0xff]  ;;  %v7126_v12 = vcvt.s32.f32 %v2221_v23  ;;  %v4134_v47 = vrot.slane %v4963_v54, %v6439_v16  ;;  %v2274_v17 = vshrl.u32 %v7087_v30, 16  ;;  %v10236_v23 = vld [vmem:[#allocation50_spill] sm:$0xff] }
 0x3fd   :  { %vm1519_vm13 = vcmp.eq.f32.partialorder %v10231_v45, %v10230_v33  ;;  %v7107_v11 = vsel %vm3947_vm7, %v4101_v27, %v6889_v6  ;;  %v4962_v52 = vadd.f32 -15.5, %v3651_v34  ;;  %v7109_v26 = vpop.xlane.xlu0 %2630  ;;  %2149 = vadd.xlane.f32.xlu1 %v6863_v55  ;;  %v2313_v6 = vshrl.u32 %v7080_v3, 16 }
 0x3fe   :  { %v2579_v39 = vpop.xlane.xlu1 %2578  ;;  %v2412_v55 = vcvt.f32.s32 %v6857_v1  ;;  %vm1391_vm4 = vcmp.lt.f32.partialorder %v10231_v45, %v10230_v33  ;;  %vm7142_vm5 = vmand %vm1519_vm13, %vm5766_vm2  ;;  %v7147_v7 = vcvt.s32.f32 %v2260_v63  ;;  %v2287_v2 = vshrl.u32 %v7092_v46, 16 }
 0x3ff   :  { %v4130_v0 = vrot.slane %v4962_v52, %v6419_v37  ;;  %v1846_v9 = vsel %vm7119_vm15, 1, %v10064_v31  ;;  %vm1452_vm8 = vcmp.eq.f32.partialorder %v10210_v61, %v10236_v23  ;;  %v2247_v27 = vand.u32 65535, %v7027_v5  ;;  %vm7167_vm12 = vmor %vm1391_vm4, %vm7142_vm5  ;;  %v10243_v52 = vld [vmem:[#allocation52_spill] sm:$0xff] }
 0x400   :  { %2201 = vadd.xlane.f32.xlu0 %v6932_v58  ;;  %vm1324_vm10 = vcmp.lt.f32.partialorder %v10210_v61, %v10236_v23  ;;  %v2517_v58 = vshll.u32 %v2516_v41, 16  ;;  %v2581_v34 = vcvt.f32.s32 %v2579_v39  ;;  %v2413_v24 = vshll.u32 %v2412_v55, 16  ;;  %vm7179_vm14 = vmand %vm1452_vm8, %vm5810_vm0  ;;  %v10244_v23 = vld [vmem:[#allocation51_spill] sm:$0xff] }
 0x401   :  { %v7156_v14 = vsel %vm9997_vm6, %v4134_v47, %v4130_v0  ;;  %v2512_v54 = vpop.xlane.xlu0 %2511  ;;  %2214 = vadd.xlane.f32.xlu1 %v6868_v57  ;;  %v2503_v57 = vcvt.f32.s32 %v6907_v40  ;;  %v7172_v47 = vcvt.s32.f32 %v2274_v17  ;;  %v7184_v39 = vcvt.s32.f32 %v2313_v6  ;;  %vm7207_vm13 = vmor %vm1324_vm10, %vm7179_vm14 }
 0x402   :  { %v2515_v63 = vcvt.f32.s32 %v2512_v54  ;;  %v2408_v48 = vpop.xlane.xlu1 %2407  ;;  %v7186_v55 = vcvt.s32.f32 %v2287_v2  ;;  %v7189_v40 = vsel %vm9991_vm1, %v1846_v9, 0  ;;  %v7192_v1 = vcvt.s32.f32 %v2247_v27 }
 0x403   :  { %v2411_v5 = vcvt.f32.s32 %v2408_v48  ;;  %v2234_v54 = vand.u32 65535, %v6935_v21  ;;  %v2312_v48 = vand.u32 65535, %v7080_v3  ;;  %v2542_v6 = vcvt.f32.s32 %v6965_v32 }
 0x404   :  { %v2518_v33 = vadd.s32 %v2517_v58, %v2515_v63  ;;  %2266 = vadd.xlane.f32.xlu0 %v7022_v18  ;;  %v7199_v18 = vsel %vm7167_vm12, 1, %v10064_v31  ;;  %v2582_v2 = vshll.u32 %v2581_v34, 16  ;;  %v2504_v21 = vshll.u32 %v2503_v57, 16 }
 0x405   :  { %v2414_v0 = vadd.s32 %v2413_v24, %v2411_v5  ;;  %v2577_v17 = vpop.xlane.xlu0 %2576  ;;  %2134 = vadd.xlane.f32.xlu1 %v6927_v19  ;;  %v2300_v63 = vshrl.u32 %v7189_v40, 16  ;;  %vm1454_vm15 = vcmp.eq.f32.partialorder %v10210_v61, %v10243_v52  ;;  %v2273_v24 = vand.u32 65535, %v7087_v30 }
 0x406   :  { %v2580_v9 = vcvt.f32.s32 %v2577_v17  ;;  %v2499_v58 = vpop.xlane.xlu1 %2498  ;;  %v3654_v32 = vcvt.s32.f32 %v2518_v33  ;;  %vm1521_vm4 = vcmp.eq.f32.partialorder %v10231_v45, %v10244_v23  ;;  %v1848_v33 = vsel %vm7207_vm13, 1, %v10064_v31  ;;  %vm7236_vm10 = vmand %vm1454_vm15, %vm5870_vm9 }
 0x407   :  { %v3646_v3 = vcvt.s32.f32 %v2414_v0  ;;  %v2502_v27 = vcvt.f32.s32 %v2499_v58  ;;  %v7224_v0 = vsel %vm9991_vm1, %v1849_v50, 0  ;;  %vm1326_vm5 = vcmp.lt.f32.partialorder %v10210_v61, %v10243_v52  ;;  %vm7254_vm14 = vmand %vm1521_vm4, %vm5796_vm11  ;;  %v10251_v52 = vld [vmem:[#allocation53_spill] sm:$0xff] }
 0x408   :  { %v7214_v34 = vadd.s32 %v2582_v2, %v2580_v9  ;;  %2147 = vadd.xlane.f32.xlu0 %v6951_v43  ;;  %v2543_v43 = vshll.u32 %v2542_v6, 16  ;;  %vm9989_vm8 = vcmask 1041409   ;;  %v3655_v50 = vcvt.s32.f32 %v7046_v42  ;;  %vm7271_vm13 = vmor %vm1326_vm5, %vm7236_vm10 }
 0x409   :  { %v4957_v5 = vadd.f32 -15.5, %v3646_v3  ;;  %v2505_v41 = vadd.s32 %v2504_v21, %v2502_v27  ;;  %v7220_v57 = vpop.xlane.xlu0 %2617  ;;  %2173 = vadd.xlane.f32.xlu1 %v6967_v35  ;;  %vm1393_vm12 = vcmp.lt.f32.partialorder %v10231_v45, %v10244_v23  ;;  %v4965_v6 = vadd.f32 -15.5, %v3654_v32  ;;  %v10252_v35 = vld [vmem:[#allocation11_spill] sm:$0xff] }
 0x40a   :  { %v2538_v30 = vpop.xlane.xlu1 %2537  ;;  %v7245_v58 = vcvt.s32.f32 %v2300_v63  ;;  %v7247_v19 = vcvt.s32.f32 %v2234_v54  ;;  %v2339_v61 = vshrl.u32 %v7224_v0, 16  ;;  %vm1523_vm15 = vcmp.eq.f32.partialorder %v10252_v35, %v10251_v52  ;;  %vm7296_vm5 = vmor %vm1393_vm12, %vm7254_vm14 }
 0x40b   :  { %v4106_v17 = vrot.slane %v4957_v5, %v6535_v62  ;;  %v3653_v2 = vcvt.s32.f32 %v2505_v41  ;;  %v2541_v9 = vcvt.f32.s32 %v2538_v30  ;;  %v7282_v41 = vcvt.s32.f32 %v2273_v24  ;;  %vm7330_vm14 = vmand %vm1523_vm15, %vm5766_vm2 }
 0x40c   :  { %2212 = vadd.xlane.f32.xlu0 %v6969_v44  ;;  %v7264_v44 = vsel %vm9991_vm1, %v1848_v33, 0  ;;  %v4966_v33 = vadd.f32 -15.5, %v3655_v50  ;;  %vm9987_vm4 = vcmask 1042434   ;;  %v1850_v24 = vsel %vm7271_vm13, 1, %v10064_v31  ;;  %v10255_v50 = vld [vmem:[#allocation54_spill] sm:$0xff] }
 0x40d   :  { %v4107_v21 = vsel %vm9998_vm3, %v4106_v17, %v7107_v11  ;;  %v4964_v3 = vadd.f32 -15.5, %v3653_v2  ;;  %v2544_v27 = vadd.s32 %v2543_v43, %v2541_v9  ;;  %v7260_v32 = vpop.xlane.xlu0 %2682  ;;  %2240 = vadd.xlane.f32.xlu1 %v7024_v10  ;;  %v2568_v11 = vcvt.f32.s32 %v7051_v60 }
 0x40e   :  { %v4255_v63 = vsel %vm9989_vm8, %v7083_v15, %v4107_v21  ;;  %v7278_v5 = vpop.xlane.xlu1 %2604  ;;  %v7280_v10 = vcvt.s32.f32 %v2312_v48  ;;  %v4144_v60 = vrot.slane %v4965_v6, %v6535_v62  ;;  %v2326_v15 = vshrl.u32 %v7264_v44, 16 }
 0x40f   :  { %v4139_v43 = vrot.slane %v4964_v3, %v6487_v38  ;;  %v3656_v30 = vcvt.s32.f32 %v2544_v27  ;;  %vm1520_vm10 = vcmp.eq.f32.partialorder %v10231_v45, %v10255_v50  ;;  %v2569_v9 = vshll.u32 %v2568_v11, 16 }
 0x410   :  { %2253 = vadd.xlane.f32.xlu0 %v7112_v51  ;;  %v2633_v23 = vcvt.f32.s32 %v7109_v26  ;;  %v2555_v3 = vcvt.f32.s32 %v6891_v4  ;;  %v4149_v27 = vrot.slane %v4966_v33, %v6419_v37  ;;  %vm1395_vm12 = vcmp.lt.f32.partialorder %v10252_v35, %v10251_v52  ;;  %vm7349_vm15 = vmand %vm1520_vm10, %vm5810_vm0 }
 0x411   :  { %v4140_v51 = vsel %vm3947_vm7, %v4139_v43, %v7156_v14  ;;  %v4967_v17 = vadd.f32 -15.5, %v3656_v30  ;;  %v2564_v2 = vpop.xlane.xlu0 %2563  ;;  %2279 = vadd.xlane.f32.xlu1 %v7172_v47  ;;  %v7321_v47 = vsel %vm7296_vm5, 1, %v10064_v31  ;;  %v2299_v11 = vand.u32 65535, %v7189_v40  ;;  %vm7359_vm5 = vmor %vm1395_vm12, %vm7330_vm14 }
 0x412   :  { %v4145_v6 = vsel %vm9998_vm3, %v4144_v60, %v4140_v51  ;;  %v2567_v42 = vcvt.f32.s32 %v2564_v2  ;;  %v7310_v21 = vpop.xlane.xlu1 %2643  ;;  %vm1392_vm13 = vcmp.lt.f32.partialorder %v10231_v45, %v10255_v50  ;;  %v2286_v43 = vand.u32 65535, %v7092_v46  ;;  %v10262_v46 = vld [vmem:[#allocation55_spill] sm:$0xff] }
 0x413   :  { %v4153_v54 = vrot.slane %v4967_v17, %v6439_v16  ;;  %v7316_v14 = vsel %vm9987_vm4, %v4145_v6, %v4255_v63  ;;  %v2325_v30 = vand.u32 65535, %v7264_v44  ;;  %v2634_v40 = vshll.u32 %v2633_v23, 16  ;;  %vm7378_vm12 = vmor %vm1392_vm13, %vm7349_vm15 }
 0x414   :  { %v2570_v26 = vadd.s32 %v2569_v9, %v2567_v42  ;;  %2318 = vadd.xlane.f32.xlu0 %v7184_v39  ;;  %v2328_v51 = vcvt.s32.f32 %v2326_v15  ;;  %v2350_v17 = vsel %vm9991_vm1, %v1850_v24, 0  ;;  %vm1525_vm10 = vcmp.eq.f32.partialorder %v10252_v35, %v10262_v46 }
 0x415   :  { %v7339_v63 = vsel %vm9997_vm6, %v4153_v54, %v4149_v27  ;;  %v2629_v33 = vpop.xlane.xlu0 %2628  ;;  %2186 = vadd.xlane.f32.xlu1 %v7033_v36  ;;  %v2556_v44 = vshll.u32 %v2555_v3, 16  ;;  %v2594_v2 = vcvt.f32.s32 %v6946_v49  ;;  %v7369_v24 = vcvt.s32.f32 %v2339_v61  ;;  %vm1665_vm13 = vmand %vm1525_vm10, %vm5796_vm11 }
 0x416   :  { %v2632_v60 = vcvt.f32.s32 %v2629_v33  ;;  %v2551_v48 = vpop.xlane.xlu1 %2550  ;;  %v3658_v23 = vcvt.s32.f32 %v2570_v26  ;;  %v7371_v6 = vcvt.s32.f32 %v2299_v11  ;;  %v2352_v3 = vshrl.u32 %v2350_v17, 16 }
 0x417   :  { %v2554_v9 = vcvt.f32.s32 %v2551_v48  ;;  %v7389_v61 = vsel %vm9991_vm1, %v7199_v18, 0  ;;  %v1919_v50 = vsel %vm7359_vm5, 1, %v10064_v31  ;;  %vm1397_vm14 = vcmp.lt.f32.partialorder %v10252_v35, %v10262_v46 }
 0x418   :  { %v7366_v15 = vadd.s32 %v2634_v40, %v2632_v60  ;;  %2199 = vadd.xlane.f32.xlu0 %v7124_v53  ;;  %v7385_v53 = vcvt.s32.f32 %v2286_v43  ;;  %v2351_v27 = vand.u32 65535, %v2350_v17  ;;  %v7401_v54 = vcvt.s32.f32 %v2325_v30  ;;  %v10265_v43 = vld [vmem:[#allocation56_spill] sm:$0xff]  ;;  %vm7411_vm5 = vmor %vm1397_vm14, %vm1665_vm13 }
 0x419   :  { %v2557_v49 = vadd.s32 %v2556_v44, %v2554_v9  ;;  %v7382_v42 = vpop.xlane.xlu0 %2669  ;;  %2225 = vadd.xlane.f32.xlu1 %v7126_v12  ;;  %v2595_v4 = vshll.u32 %v2594_v2, 16  ;;  %v3659_v18 = vcvt.s32.f32 %v7214_v34  ;;  %v1916_v33 = vsel %vm7378_vm12, 1, %v10064_v31 }
 0x41a   :  { %v2590_v12 = vpop.xlane.xlu1 %2589  ;;  %vm1394_vm15 = vcmp.lt.f32.partialorder %v10231_v45, %v10265_v43  ;;  %v4969_v39 = vadd.f32 -15.5, %v3658_v23  ;;  %v3197_v40 = vshrl.u32 %v7389_v61, 16  ;;  %vm1522_vm10 = vcmp.eq.f32.partialorder %v10231_v45, %v10265_v43 }
 0x41b   :  { %v3657_v26 = vcvt.s32.f32 %v2557_v49  ;;  %v2593_v11 = vcvt.f32.s32 %v2590_v12  ;;  %v7420_v17 = vcvt.s32.f32 %v2352_v3  ;;  %v2620_v36 = vcvt.f32.s32 %v7220_v57  ;;  %vm7443_vm12 = vmand %vm1522_vm10, %vm5870_vm9  ;;  %v10271_v12 = vld [vmem:[#allocation12_spill] sm:$0xff] }
 0x41c   :  { %2264 = vadd.xlane.f32.xlu0 %v7147_v7  ;;  %v7425_v46 = vcvt.s32.f32 %v2351_v27  ;;  %v2338_v44 = vand.u32 65535, %v7224_v0  ;;  %v7429_v2 = vsel %vm9991_vm1, %v1919_v50, 0  ;;  %v4970_v9 = vadd.f32 -15.5, %v3659_v18  ;;  %v10270_v50 = vld [vmem:[#allocation57_spill] sm:$0xff]  ;;  %v10272_v27 = vld [vmem:[#allocation58_spill] sm:$0xff]  ;;  %vm7468_vm10 = vmor %vm1394_vm15, %vm7443_vm12 }
 0x41d   :  { %v4968_v34 = vadd.f32 -15.5, %v3657_v26  ;;  %v2596_v60 = vadd.s32 %v2595_v4, %v2593_v11  ;;  %v7417_v48 = vpop.xlane.xlu0 %2734  ;;  %2292 = vadd.xlane.f32.xlu1 %v7186_v55  ;;  %v7433_v49 = vsel %vm9991_vm1, %v1916_v33, 0  ;;  %v1921_v55 = vsel %vm7411_vm5, 1, %v10064_v31 }
 0x41e   :  { %v7423_v7 = vpop.xlane.xlu1 %2656  ;;  %v4163_v0 = vrot.slane %v4969_v39, %v6535_v62  ;;  %v7451_v3 = vsel %vm9991_vm1, %v7321_v47, 0  ;;  %vm9988_vm14 = vcmask 1043459   ;;  %vm1527_vm13 = vcmp.eq.f32.partialorder %v10271_v12, %v10270_v50 }
 0x41f   :  { %v4158_v23 = vrot.slane %v4968_v34, %v6487_v38  ;;  %v3660_v52 = vcvt.s32.f32 %v2596_v60  ;;  %vm1524_vm5 = vcmp.eq.f32.partialorder %v10252_v35, %v10272_v27  ;;  %v2621_v11 = vshll.u32 %v2620_v36, 16  ;;  %vm7486_vm15 = vmand %vm1527_vm13, %vm5766_vm2 }
 0x420   :  { %2305 = vadd.xlane.f32.xlu0 %v7245_v58  ;;  %v2685_v58 = vcvt.f32.s32 %v7260_v32  ;;  %vm1399_vm4 = vcmp.lt.f32.partialorder %v10271_v12, %v10270_v50  ;;  %vm1396_vm12 = vcmp.lt.f32.partialorder %v10252_v35, %v10272_v27  ;;  %vm7510_vm13 = vmand %vm1524_vm5, %vm5810_vm0  ;;  %v3663_v27 = vcvt.s32.f32 %v7366_v15 }
 0x421   :  { %v4159_v4 = vsel %vm3947_vm7, %v4158_v23, %v7339_v63  ;;  %v4971_v18 = vadd.f32 -15.5, %v3660_v52  ;;  %v2616_v26 = vpop.xlane.xlu0 %2615  ;;  %2331 = vadd.xlane.f32.xlu1 %v2328_v51  ;;  %v4168_v63 = vrot.slane %v4970_v9, %v6419_v37  ;;  %v2607_v51 = vcvt.f32.s32 %v7278_v5 }
 0x422   :  { %v4164_v33 = vsel %vm9998_vm3, %v4163_v0, %v4159_v4  ;;  %v2619_v47 = vcvt.f32.s32 %v2616_v26  ;;  %v7461_v39 = vpop.xlane.xlu1 %2695  ;;  %v3249_v5 = vshrl.u32 %v7429_v2, 16  ;;  %v7499_v9 = vcvt.s32.f32 %v3197_v40 }
 0x423   :  { %v4172_v32 = vrot.slane %v4971_v18, %v6439_v16  ;;  %v7477_v34 = vsel %vm9988_vm14, %v4164_v33, %v7316_v14  ;;  %v3210_v14 = vshrl.u32 %v7433_v49, 16  ;;  %v3223_v23 = vshrl.u32 %v7451_v3, 16 }
 0x424   :  { %v2622_v43 = vadd.s32 %v2621_v11, %v2619_v47  ;;  %2251 = vadd.xlane.f32.xlu0 %v7192_v1  ;;  %v1918_v1 = vsel %vm7468_vm10, 1, %v10064_v31  ;;  %v2686_v57 = vshll.u32 %v2685_v58, 16  ;;  %v7514_v40 = vcvt.s32.f32 %v2338_v44  ;;  %vm7521_vm10 = vmor %vm1399_vm4, %vm7486_vm15 }
 0x425   :  { %v7496_v60 = vsel %vm9997_vm6, %v4172_v32, %v4168_v63  ;;  %v2681_v36 = vpop.xlane.xlu0 %2680  ;;  %2238 = vadd.xlane.f32.xlu1 %v7247_v19  ;;  %v2608_v18 = vshll.u32 %v2607_v51, 16  ;;  %v2646_v26 = vcvt.f32.s32 %v7310_v21  ;;  %v7527_v33 = vsel %vm9991_vm1, %v1921_v55, 0  ;;  %vm7541_vm4 = vmor %vm1396_vm12, %vm7510_vm13 }
 0x426   :  { %v2684_v0 = vcvt.f32.s32 %v2681_v36  ;;  %v2603_v19 = vpop.xlane.xlu1 %2602  ;;  %v3662_v58 = vcvt.s32.f32 %v2622_v43  ;;  %v7532_v44 = vcvt.s32.f32 %v3249_v5  ;;  %v7534_v30 = vcvt.s32.f32 %v3210_v14  ;;  %v10283_v14 = vld [vmem:[#allocation59_spill] sm:$0xff] }
 0x427   :  { %v2606_v11 = vcvt.f32.s32 %v2603_v19  ;;  %v7548_v63 = vcvt.s32.f32 %v3223_v23  ;;  %v3248_v51 = vand.u32 65535, %v7429_v2  ;;  %v1923_v32 = vsel %vm7521_vm10, 1, %v10064_v31 }
 0x428   :  { %v7529_v47 = vadd.s32 %v2686_v57, %v2684_v0  ;;  %2316 = vadd.xlane.f32.xlu0 %v7280_v10  ;;  %v3209_v10 = vand.u32 65535, %v7433_v49  ;;  %v3275_v43 = vshrl.u32 %v7527_v33, 16  ;;  %vm1529_vm5 = vcmp.eq.f32.partialorder %v10271_v12, %v10283_v14  ;;  %v10284_v57 = vld [vmem:[#allocation60_spill] sm:$0xff] }
 0x429   :  { %v2609_v55 = vadd.s32 %v2608_v18, %v2606_v11  ;;  %v7545_v50 = vpop.xlane.xlu0 %2721  ;;  %2277 = vadd.xlane.f32.xlu1 %v7282_v41  ;;  %v2647_v41 = vshll.u32 %v2646_v26, 16  ;;  %v1920_v49 = vsel %vm7541_vm4, 1, %v10064_v31  ;;  %vm1401_vm15 = vcmp.lt.f32.partialorder %v10271_v12, %v10283_v14  ;;  %vm7579_vm10 = vmand %vm1529_vm5, %vm5796_vm11 }
 0x42a   :  { %v2642_v45 = vpop.xlane.xlu1 %2641  ;;  %v4973_v52 = vadd.f32 -15.5, %v3662_v58  ;;  %v7567_v15 = vsel %vm9991_vm1, %v1918_v1, 0  ;;  %vm1398_vm12 = vcmp.lt.f32.partialorder %v10252_v35, %v10284_v57  ;;  %vm1526_vm13 = vcmp.eq.f32.partialorder %v10252_v35, %v10284_v57 }
 0x42b   :  { %v3661_v36 = vcvt.s32.f32 %v2609_v55  ;;  %v2645_v23 = vcvt.f32.s32 %v2642_v45  ;;  %v4974_v1 = vadd.f32 -15.5, %v3663_v27  ;;  %v7584_v26 = vsel %vm9991_vm1, %v1923_v32, 0  ;;  %vm7599_vm4 = vmand %vm1526_vm13, %vm5870_vm9  ;;  %v10289_v32 = vld [vmem:[#allocation61_spill] sm:$0xff] }
 0x42c   :  { %2357 = vadd.xlane.f32.xlu0 %v7420_v17  ;;  %v7586_v11 = vcvt.s32.f32 %v3275_v43  ;;  %v7588_v58 = vcvt.s32.f32 %v3209_v10  ;;  %v7592_v45 = vsel %vm9991_vm1, %v1920_v49, 0  ;;  %v10290_v43 = vld [vmem:[#allocation15_spill] sm:$0xff]  ;;  %v10291_v10 = vld [vmem:[#allocation62_spill] sm:$0xff]  ;;  %vm9990_vm8 = vcmask 1044484   ;;  %vm7614_vm13 = vmor %vm1401_vm15, %vm7579_vm10 }
 0x42d   :  { %v4972_v0 = vadd.f32 -15.5, %v3661_v36  ;;  %v2648_v19 = vadd.s32 %v2647_v41, %v2645_v23  ;;  %v2707_v4 = vpop.xlane.xlu0 %2706  ;;  %2344 = vadd.xlane.f32.xlu1 %v7369_v24  ;;  %vm1531_vm5 = vcmp.eq.f32.partialorder %v10290_v43, %v10289_v32  ;;  %vm1528_vm14 = vcmp.eq.f32.partialorder %v10271_v12, %v10291_v10  ;;  %vm7630_vm15 = vmor %vm1398_vm12, %vm7599_vm4 }
 0x42e   :  { %v2709_v18 = vpop.xlane.xlu1 %2708  ;;  %v4182_v41 = vrot.slane %v4973_v52, %v6535_v62  ;;  %v2659_v52 = vcvt.f32.s32 %v7423_v7  ;;  %v2724_v17 = vcvt.f32.s32 %v7545_v50  ;;  %v1925_v50 = vsel %vm7614_vm13, 1, %v10064_v31  ;;  %vm7651_vm12 = vmand %vm1528_vm14, %vm5810_vm0 }
 0x42f   :  { %v4177_v24 = vrot.slane %v4972_v0, %v6487_v38  ;;  %v3664_v21 = vcvt.s32.f32 %v2648_v19  ;;  %v2711_v55 = vcvt.f32.s32 %v2709_v18  ;;  %v2710_v0 = vcvt.f32.s32 %v2707_v4  ;;  %vm1671_vm4 = vmand %vm1531_vm5, %vm5766_vm2 }
 0x430   :  { %2303 = vadd.xlane.f32.xlu0 %v7371_v6  ;;  %v4187_v6 = vrot.slane %v4974_v1, %v6419_v37  ;;  %vm1400_vm10 = vcmp.lt.f32.partialorder %v10271_v12, %v10291_v10  ;;  %v3236_v27 = vshrl.u32 %v7567_v15, 16  ;;  %vm1403_vm14 = vcmp.lt.f32.partialorder %v10290_v43, %v10289_v32 }
 0x431   :  { %v4178_v23 = vsel %vm3947_vm7, %v4177_v24, %v7496_v60  ;;  %v4975_v49 = vadd.f32 -15.5, %v3664_v21  ;;  %v2712_v19 = vshll.u32 %v2711_v55, 16  ;;  %v2746_v18 = vpop.xlane.xlu0 %2745  ;;  %2290 = vadd.xlane.f32.xlu1 %v7385_v53  ;;  %vm7678_vm13 = vmor %vm1400_vm10, %vm7651_vm12  ;;  %v3261_v60 = vand.u32 65535, %v7592_v45 }
 0x432   :  { %v2748_v14 = vpop.xlane.xlu1 %2747  ;;  %v4183_v5 = vsel %vm9998_vm3, %v4182_v41, %v4178_v23  ;;  %v2749_v24 = vcvt.f32.s32 %v2746_v18  ;;  %v1922_v41 = vsel %vm7630_vm15, 1, %v10064_v31  ;;  %vm7698_vm5 = vmor %vm1403_vm14, %vm1671_vm4  ;;  %v7711_v32 = vcvt.s32.f32 %v3236_v27 }
 0x433   :  { %v4191_v53 = vrot.slane %v4975_v49, %v6439_v16  ;;  %v7635_v4 = vadd.s32 %v2712_v19, %v2710_v0  ;;  %v2750_v1 = vcvt.f32.s32 %v2748_v14  ;;  %v7639_v7 = vsel %vm9990_vm8, %v4183_v5, %v7477_v34 }
 0x434   :  { %2355 = vadd.xlane.f32.xlu0 %v7425_v46  ;;  %v3262_v34 = vshrl.u32 %v7592_v45, 16  ;;  %v3301_v5 = vshrl.u32 %v7584_v26, 16  ;;  %v2725_v46 = vshll.u32 %v2724_v17, 16  ;;  %v2660_v49 = vshll.u32 %v2659_v52, 16 }
 0x435   :  { %v7659_v57 = vsel %vm9997_vm6, %v4191_v53, %v4187_v6  ;;  %v2751_v21 = vshll.u32 %v2750_v1, 16  ;;  %v2720_v55 = vpop.xlane.xlu0 %2719  ;;  %2329 = vadd.xlane.f32.xlu1 %v7401_v54  ;;  %v2698_v0 = vcvt.f32.s32 %v7461_v39  ;;  %v7688_v17 = vcvt.s32.f32 %v3248_v51  ;;  %v10308_v39 = vld [vmem:[#allocation13_spill] sm:$0xff] }
 0x436   :  { %v2723_v36 = vcvt.f32.s32 %v2720_v55  ;;  %v2655_v23 = vpop.xlane.xlu1 %2654  ;;  %v10300_v14 = vand.u32 65535, %v7389_v61  ;;  %v3264_v2 = vcvt.s32.f32 %v3262_v34  ;;  %v7706_v61 = vsel %vm9991_vm1, %v1922_v41, 0  ;;  %v10303_v41 = vld [vmem:[#allocation63_spill] sm:$0xff] }
 0x437   :  { %v7683_v19 = vadd.s32 %v2751_v21, %v2749_v24  ;;  %v2658_v18 = vcvt.f32.s32 %v2655_v23  ;;  %v1924_v51 = vsel %vm7678_vm13, 1, %v10064_v31  ;;  %v3222_v35 = vand.u32 65535, %v7451_v3 }
 0x438   :  { %v2726_v6 = vadd.s32 %v2725_v46, %v2723_v36  ;;  %3202 = vadd.xlane.f32.xlu0 %v7499_v9  ;;  %v7692_v10 = vcvt.s32.f32 %v10300_v14  ;;  %v3303_v9 = vcvt.s32.f32 %v3301_v5  ;;  %v7715_v24 = vsel %vm9991_vm1, %v1925_v50, 0 }
 0x439   :  { %v2661_v52 = vadd.s32 %v2660_v49, %v2658_v18  ;;  %v7702_v53 = vpop.xlane.xlu0 %1952  ;;  %2342 = vadd.xlane.f32.xlu1 %v7514_v40  ;;  %v2699_v21 = vshll.u32 %v2698_v0, 16  ;;  %v3667_v40 = vcvt.s32.f32 %v7529_v47  ;;  %v1927_v55 = vsel %vm7698_vm5, 1, %v10064_v31  ;;  %v10304_v49 = vld [vmem:[#allocation64_spill] sm:$0xff] }
 0x43a   :  { %v2694_v1 = vpop.xlane.xlu1 %2693  ;;  %vm1533_vm15 = vcmp.eq.f32.partialorder %v10290_v43, %v10303_v41  ;;  %v3669_v27 = vcvt.s32.f32 %v7635_v4  ;;  %v3288_v46 = vshrl.u32 %v7706_v61, 16  ;;  %v3670_v50 = vcvt.s32.f32 %v2726_v6 }
 0x43b   :  { %v3665_v34 = vcvt.s32.f32 %v2661_v52  ;;  %v2697_v5 = vcvt.f32.s32 %v2694_v1  ;;  %v7728_v47 = vsel %vm9991_vm1, %v1924_v51, 0  ;;  %vm1405_vm10 = vcmp.lt.f32.partialorder %v10290_v43, %v10303_v41  ;;  %vm7746_vm4 = vmand %vm1533_vm15, %vm5796_vm11 }
 0x43c   :  { %3254 = vadd.xlane.f32.xlu0 %v7532_v44  ;;  %vm1530_vm12 = vcmp.eq.f32.partialorder %v10271_v12, %v10304_v49  ;;  %v2672_v4 = vcvt.f32.s32 %v7382_v42  ;;  %v3327_v0 = vshrl.u32 %v7715_v24, 16  ;;  %vm1402_vm14 = vcmp.lt.f32.partialorder %v10271_v12, %v10304_v49  ;;  %v10307_v42 = vld [vmem:[#allocation65_spill] sm:$0xff] }
 0x43d   :  { %v4976_v36 = vadd.f32 -15.5, %v3665_v34  ;;  %v2700_v23 = vadd.s32 %v2699_v21, %v2697_v5  ;;  %v1966_v54 = vpop.xlane.xlu0 %1965  ;;  %3215 = vadd.xlane.f32.xlu1 %v7534_v30  ;;  %v4978_v18 = vadd.f32 -15.5, %v3667_v40  ;;  %vm1407_vm13 = vcmp.lt.f32.partialorder %v10308_v39, %v10307_v42  ;;  %vm7759_vm5 = vmand %vm1530_vm12, %vm5870_vm9 }
 0x43e   :  { %v7735_v44 = vpop.xlane.xlu1 %2760  ;;  %v4980_v52 = vadd.f32 -15.5, %v3669_v27  ;;  %v3314_v51 = vshrl.u32 %v7728_v47, 16  ;;  %v7755_v1 = vsel %vm9991_vm1, %v1927_v55, 0  ;;  %vm1535_vm15 = vcmp.eq.f32.partialorder %v10308_v39, %v10307_v42  ;;  %v10311_v27 = vld [vmem:[#allocation66_spill] sm:$0xff]  ;;  %vm7778_vm1 = vmor %vm1405_vm10, %vm7746_vm4 }
 0x43f   :  { %v4196_v30 = vrot.slane %v4976_v36, %v6487_v38  ;;  %v3668_v6 = vcvt.s32.f32 %v2700_v23  ;;  %v4981_v40 = vadd.f32 -15.5, %v3670_v50  ;;  %vm1532_vm12 = vcmp.eq.f32.partialorder %v10290_v43, %v10311_v27  ;;  %vm7790_vm8 = vmor %vm1402_vm14, %vm7759_vm5 }
 0x440   :  { %3228 = vadd.xlane.f32.xlu0 %v7548_v63  ;;  %v2673_v55 = vshll.u32 %v2672_v4, 16  ;;  %v4206_v50 = vrot.slane %v4978_v18, %v6419_v37  ;;  %vm1536_vm10 = vcmp.eq.f32.partialorder %v10308_v39, %v5907_v20  ;;  %v4215_v41 = vrot.slane %v4980_v52, %v6487_v38  ;;  %vm7802_vm4 = vmand %vm1535_vm15, %vm5766_vm2 }
 0x441   :  { %v7767_v34 = vsel %vm3947_vm7, %v4196_v30, %v7659_v57  ;;  %v4979_v63 = vadd.f32 -15.5, %v3668_v6  ;;  %v1968_v5 = vpop.xlane.xlu0 %1967  ;;  %3267 = vadd.xlane.f32.xlu1 %v3264_v2  ;;  %v2737_v2 = vcvt.f32.s32 %v7417_v48  ;;  %v1969_v48 = vcvt.f32.s32 %v1966_v54  ;;  %vm7816_vm14 = vmand %vm1532_vm12, %vm5810_vm0 }
 0x442   :  { %v1970_v36 = vcvt.f32.s32 %v1968_v5  ;;  %v2668_v23 = vpop.xlane.xlu1 %2667  ;;  %v4220_v12 = vrot.slane %v4981_v40, %v6535_v62  ;;  %v3316_v54 = vcvt.s32.f32 %v3314_v51  ;;  %vm1408_vm5 = vcmp.lt.f32.partialorder %v10308_v39, %v5907_v20  ;;  %vm7831_vm15 = vmand %vm1536_vm10, %vm5810_vm0 }
 0x443   :  { %v4210_v30 = vrot.slane %v4979_v63, %v6439_v16  ;;  %v2671_v6 = vcvt.f32.s32 %v2668_v23  ;;  %v3672_v52 = vcvt.s32.f32 %v7683_v19  ;;  %v1926_v19 = vsel %vm7790_vm8, 1, %v10064_v31  ;;  %vm7844_vm12 = vmor %vm1407_vm13, %vm7802_vm4 }
 0x444   :  { %v1971_v14 = vshll.u32 %v1970_v36, 16  ;;  %3306 = vadd.xlane.f32.xlu0 %v3303_v9  ;;  %v3300_v4 = vand.u32 65535, %v7584_v26  ;;  %vm10324_vm8 = vcmp.lt.f32.partialorder %v10290_v43, %v10311_v27  ;;  %v7872_v26 = vcvt.s32.f32 %v3222_v35 }
 0x445   :  { %v4211_v49 = vsel %vm9997_vm6, %v4210_v30, %v4206_v50  ;;  %v2674_v21 = vadd.s32 %v2673_v55, %v2671_v6  ;;  %v7808_v63 = vpop.xlane.xlu0 %1978  ;;  %3280 = vadd.xlane.f32.xlu1 %v7586_v11  ;;  %v2738_v55 = vshll.u32 %v2737_v2, 16  ;;  %v3290_v2 = vcvt.s32.f32 %v3288_v46  ;;  %vm7864_vm13 = vmor %vm10324_vm8, %vm7816_vm14 }
 0x446   :  { %v7823_v40 = vadd.s32 %v1971_v14, %v1969_v48  ;;  %v2733_v5 = vpop.xlane.xlu1 %2732  ;;  %v4216_v11 = vsel %vm3947_vm7, %v4215_v41, %v4211_v49  ;;  %v7853_v6 = vcvt.s32.f32 %v3261_v60  ;;  %v1929_v41 = vsel %vm7778_vm1, 1, %v10064_v31  ;;  %vm7879_vm1 = vmor %vm1408_vm5, %vm7831_vm15 }
 0x447   :  { %v3666_v36 = vcvt.s32.f32 %v2674_v21  ;;  %v2736_v23 = vcvt.f32.s32 %v2733_v5  ;;  %v4221_v50 = vsel %vm9998_vm3, %v4220_v12, %v4216_v11  ;;  %v4983_v27 = vadd.f32 -15.5, %v3672_v52 }
 0x448   :  { %3213 = vadd.xlane.f32.xlu0 %v7588_v58  ;;  %v2763_v57 = vcvt.f32.s32 %v7735_v44  ;;  %v3353_v14 = vshrl.u32 %v7755_v1, 16  ;;  %v7887_v3 = vcvt.s32.f32 %v3327_v0  ;;  %vm10329_vm10 = vcmask 261120   ;;  %v10330_v44 = vld [vmem:[#allocation16_spill] sm:$0xff] }
 0x449   :  { %v4977_v46 = vadd.f32 -15.5, %v3666_v36  ;;  %v2739_v42 = vadd.s32 %v2738_v55, %v2736_v23  ;;  %v7868_v45 = vpop.xlane.xlu0 %1991  ;;  %3319 = vadd.xlane.f32.xlu1 %v3316_v54  ;;  %v7891_v12 = vsel %vm10329_vm10, %v1926_v19, 0  ;;  %vm9996_vm4 = vcmask 1045509   ;;  %vm10331_vm5 = vmmov %vm10329_vm10 }
 0x44a   :  { %v2774_v48 = vpop.xlane.xlu1 %2773  ;;  %v1931_v20 = vsel %vm7844_vm12, 1, %v10064_v31  ;;  %vm1487_vm14 = vcmp.eq.f32.partialorder %v10330_v44, %v6046_v13  ;;  %v7900_v49 = vsel %vm10331_vm5, %v1929_v41, 0  ;;  %vm9992_vm15 = vcmask 1046534  }
 0x44b   :  { %v4201_v35 = vrot.slane %v4977_v46, %v6535_v62  ;;  %v3671_v18 = vcvt.s32.f32 %v2739_v42  ;;  %v1928_v0 = vsel %vm7864_vm13, 1, %v10064_v31  ;;  %v1932_v21 = vsel %vm7879_vm1, 1, %v10064_v31  ;;  %vm7923_vm8 = vmand %vm1487_vm14, %vm5766_vm2 }
 0x44c   :  { %3252 = vadd.xlane.f32.xlu0 %v7688_v17  ;;  %vm1359_vm12 = vcmp.lt.f32.partialorder %v10330_v44, %v6046_v13  ;;  %v4229_v52 = vrot.slane %v4983_v27, %v6439_v16  ;;  %v2764_v5 = vshll.u32 %v2763_v57, 16  ;;  %v2776_v55 = vcvt.f32.s32 %v2774_v48  ;;  %vm10334_vm1 = vmmov %vm10331_vm5  ;;  %v10340_v27 = vld [vmem:[#allocation19_spill] sm:$0xff] }
 0x44d   :  { %v4982_v54 = vadd.f32 -15.5, %v3671_v18  ;;  %v7908_v9 = vpop.xlane.xlu0 %2004  ;;  %3200 = vadd.xlane.f32.xlu1 %v7692_v10  ;;  %v4202_v17 = vsel %vm9998_vm3, %v4201_v35, %v7767_v34  ;;  %v3355_v19 = vcvt.s32.f32 %v3353_v14  ;;  %v7931_v30 = vcvt.s32.f32 %v3300_v4  ;;  %vm7949_vm10 = vmor %vm1359_vm12, %vm7923_vm8 }
 0x44e   :  { %v2759_v11 = vpop.xlane.xlu1 %2758  ;;  %v4259_v51 = vsel %vm9996_vm4, %v4202_v17, %v7639_v7  ;;  %v3274_v7 = vand.u32 65535, %v7527_v33  ;;  %v3313_v41 = vand.u32 65535, %v7728_v47  ;;  %vm1489_vm13 = vcmp.eq.f32.partialorder %v10330_v44, %v6064_v29  ;;  %vm10337_vm14 = vmmov %vm10334_vm1 }
 0x44f   :  { %v4225_v34 = vrot.slane %v4982_v54, %v6419_v37  ;;  %v2762_v36 = vcvt.f32.s32 %v2759_v11  ;;  %v7929_v23 = vsel %vm9992_vm15, %v4221_v50, %v4259_v51  ;;  %v7941_v42 = vsel %vm10334_vm1, %v1928_v0, 0  ;;  %vm10338_vm5 = vmmov %vm10334_vm1 }
 0x450   :  { %3293 = vadd.xlane.f32.xlu0 %v3290_v2  ;;  %v3340_v2 = vshrl.u32 %v7891_v12, 16  ;;  %v7955_v4 = vsel %vm10337_vm14, %v1931_v20, 0  ;;  %v7959_v60 = vsel %vm10338_vm5, %v1932_v21, 0  ;;  %vm1491_vm1 = vcmp.eq.f32.partialorder %v10340_v27, %v6085_v56  ;;  %vm7970_vm8 = vmand %vm1489_vm13, %vm5796_vm11 }
 0x451   :  { %v2765_v58 = vadd.s32 %v2764_v5, %v2762_v36  ;;  %v7937_v46 = vpop.xlane.xlu0 %2017  ;;  %3241 = vadd.xlane.f32.xlu1 %v7711_v32  ;;  %v4230_v50 = vsel %vm9997_vm6, %v4229_v52, %v4225_v34  ;;  %v3379_v32 = vshrl.u32 %v7900_v49, 16  ;;  %10339 = vst [vmem:[#allocation32_spill] sm:$0xff] %v7959_v60  ;;  %v2777_v57 = vshll.u32 %v2776_v55, 16  ;;  %vm7994_vm5 = vmand %vm1491_vm1, %vm5766_vm2 }
 0x452   :  { %v2772_v47 = vpop.xlane.xlu1 %2771  ;;  %vm1361_vm12 = vcmp.lt.f32.partialorder %v10330_v44, %v6064_v29  ;;  %v3366_v35 = vshrl.u32 %v7941_v42, 16  ;;  %v7975_v18 = vcvt.s32.f32 %v3274_v7  ;;  %v7977_v20 = vcvt.s32.f32 %v3313_v41 }
 0x453   :  { %v3673_v13 = vcvt.s32.f32 %v2765_v58  ;;  %v2775_v48 = vcvt.f32.s32 %v2772_v47  ;;  %v1883_v0 = vsel %vm7949_vm10, 1, %v10064_v31  ;;  %vm1488_vm14 = vcmp.eq.f32.partialorder %v10330_v44, %v6091_v28  ;;  %vm8005_vm10 = vmor %vm1361_vm12, %vm7970_vm8 }
 0x454   :  { %3358 = vadd.xlane.f32.xlu0 %v3355_v19  ;;  %vm1363_vm13 = vcmp.lt.f32.partialorder %v10340_v27, %v6085_v56  ;;  %v3342_v11 = vcvt.s32.f32 %v3340_v2  ;;  %v3405_v51 = vshrl.u32 %v7955_v4, 16  ;;  %v3418_v10 = vshrl.u32 %v7959_v60, 16  ;;  %vm8019_vm15 = vmand %vm1488_vm14, %vm5810_vm0 }
 0x455   :  { %v4984_v21 = vadd.f32 -15.5, %v3673_v13  ;;  %v2778_v54 = vadd.s32 %v2777_v57, %v2775_v48  ;;  %v7984_v17 = vpop.xlane.xlu0 %2032  ;;  %3265 = vadd.xlane.f32.xlu1 %v7853_v6  ;;  %v8010_v19 = vcvt.s32.f32 %v3379_v32  ;;  %vm1360_vm1 = vcmp.lt.f32.partialorder %v10330_v44, %v6091_v28  ;;  %vm8033_vm8 = vmor %vm1363_vm13, %vm7994_vm5  ;;  %v10352_v13 = vld [vmem:[#allocation82_spill] sm:$0xff] }
 0x456   :  { %v1955_v5 = vpop.xlane.xlu1 %1954  ;;  %v1956_v7 = vcvt.f32.s32 %v7702_v53  ;;  %v3368_v41 = vcvt.s32.f32 %v3366_v35  ;;  %vm10349_vm12 = vcmask 261120   ;;  %v3612_v47 = vcvt.s32.f32 %v7823_v40  ;;  %vm8054_vm13 = vmor %vm1360_vm1, %vm8019_vm15 }
 0x457   :  { %v4234_v34 = vrot.slane %v4984_v21, %v6487_v38  ;;  %v3674_v55 = vcvt.s32.f32 %v2778_v54  ;;  %v1957_v36 = vcvt.f32.s32 %v1955_v5  ;;  %v8026_v58 = vsel %vm10349_vm12, %v1883_v0, 0 }
 0x458   :  { %3226 = vadd.xlane.f32.xlu0 %v7872_v26  ;;  %v1885_v57 = vsel %vm8005_vm10, 1, %v10064_v31  ;;  %vm1493_vm14 = vcmp.eq.f32.partialorder %v10340_v27, %v10352_v13  ;;  %v3407_v48 = vcvt.s32.f32 %v3405_v51  ;;  %v8047_v14 = vcvt.s32.f32 %v3418_v10 }
 0x459   :  { %v4985_v2 = vadd.f32 -15.5, %v3674_v55  ;;  %v1958_v32 = vshll.u32 %v1957_v36, 16  ;;  %v8038_v53 = vpop.xlane.xlu0 %2071  ;;  %3332 = vadd.xlane.f32.xlu1 %v7887_v3  ;;  %v4235_v26 = vsel %vm3947_vm7, %v4234_v34, %v4230_v50  ;;  %vm9993_vm5 = vcmask 1047559   ;;  %vm8069_vm15 = vmand %vm1493_vm14, %vm5796_vm11  ;;  %v10358_v34 = vld [vmem:[#allocation20_spill] sm:$0xff] }
 0x45a   :  { %v1981_v56 = vpop.xlane.xlu1 %1980  ;;  %v1887_v0 = vsel %vm8033_vm8, 1, %v10064_v31  ;;  %vm1365_vm10 = vcmp.lt.f32.partialorder %v10340_v27, %v10352_v13  ;;  %v1982_v21 = vcvt.f32.s32 %v7808_v63  ;;  %v2781_v28 = vshrl.u32 %v8026_v58, 16 }
 0x45b   :  { %v4239_v3 = vrot.slane %v4985_v2, %v6535_v62  ;;  %v1959_v50 = vadd.s32 %v1958_v32, %v1956_v7  ;;  %v1983_v35 = vcvt.f32.s32 %v1981_v56  ;;  %v4923_v52 = vadd.f32 -15.5, %v3612_v47  ;;  %v10360_v7 = vld [vmem:[#allocation85_spill] sm:$0xff]  ;;  %vm8095_vm14 = vmor %vm1365_vm10, %vm8069_vm15 }
 0x45c   :  { %3304 = vadd.xlane.f32.xlu0 %v7931_v30  ;;  %v1884_v63 = vsel %vm8054_vm13, 1, %v10064_v31  ;;  %v10357_v30 = vld [vmem:[#allocation84_spill] sm:$0xff]  ;;  %v8082_v36 = vsel %vm10349_vm12, %v1885_v57, 0  ;;  %vm1492_vm8 = vcmp.eq.f32.partialorder %v10340_v27, %v10360_v7  ;;  %v2783_v32 = vcvt.s32.f32 %v2781_v28 }
 0x45d   :  { %v3611_v5 = vcvt.s32.f32 %v1959_v50  ;;  %v1984_v51 = vshll.u32 %v1983_v35, 16  ;;  %v8073_v10 = vpop.xlane.xlu0 %2084  ;;  %3371 = vadd.xlane.f32.xlu1 %v3368_v41  ;;  %v4240_v6 = vsel %vm9998_vm3, %v4239_v3, %v4235_v26  ;;  %vm1495_vm1 = vcmp.eq.f32.partialorder %v10358_v34, %v10357_v30  ;;  %vm8123_vm15 = vmand %vm1492_vm8, %vm5810_vm0 }
 0x45e   :  { %v1994_v55 = vpop.xlane.xlu1 %1993  ;;  %v8086_v29 = vsel %vm9993_vm5, %v4240_v6, %v7929_v23  ;;  %vm1367_vm13 = vcmp.lt.f32.partialorder %v10358_v34, %v10357_v30  ;;  %v1995_v23 = vcvt.f32.s32 %v7868_v45  ;;  %v8103_v26 = vsel %vm10349_vm12, %v1887_v0, 0  ;;  %vm8107_vm5 = vmand %vm1495_vm1, %vm5766_vm2  ;;  %v10375_v45 = vld [vmem:[#allocation89_spill] sm:$0xff] }
 0x45f   :  { %10359 = vst [vmem:[#allocation30_spill] sm:$0xff] %v8086_v29  ;;  %v4922_v41 = vadd.f32 -15.5, %v3611_v5  ;;  %v1985_v33 = vadd.s32 %v1984_v51, %v1982_v21  ;;  %v1996_v47 = vcvt.f32.s32 %v1994_v55  ;;  %v3939_v13 = vrot.slane %v4923_v52, %v6439_v16  ;;  %vm10367_vm1 = vmmov %vm10349_vm12  ;;  %v10368_v51 = vld [vmem:[#allocation83_spill] sm:$0xff] }
 0x460   :  { %3345 = vadd.xlane.f32.xlu0 %v3342_v11  ;;  %vm1364_vm10 = vcmp.lt.f32.partialorder %v10340_v27, %v10360_v7  ;;  %v2035_v11 = vcvt.f32.s32 %v7984_v17  ;;  %v2807_v0 = vshrl.u32 %v8082_v36, 16  ;;  %v8130_v21 = vsel %vm10367_vm1, %v1884_v63, 0  ;;  %vm8145_vm1 = vmor %vm1367_vm13, %vm8107_vm5 }
 0x461   :  { %v3934_v56 = vrot.slane %v4922_v41, %v6419_v37  ;;  %v3613_v40 = vcvt.s32.f32 %v1985_v33  ;;  %v1997_v3 = vshll.u32 %v1996_v47, 16  ;;  %v8113_v50 = vpop.xlane.xlu0 %2123  ;;  %3278 = vadd.xlane.f32.xlu1 %v7975_v18  ;;  %v1889_v5 = vsel %vm8095_vm14, 1, %v10064_v31  ;;  %vm8155_vm14 = vmor %vm1364_vm10, %vm8123_vm15 }
 0x462   :  { %v2007_v35 = vpop.xlane.xlu1 %2006  ;;  %vm1362_vm8 = vcmp.lt.f32.partialorder %v10330_v44, %v10368_v51  ;;  %vm1490_vm12 = vcmp.eq.f32.partialorder %v10330_v44, %v10368_v51  ;;  %v2833_v6 = vshrl.u32 %v8103_v26, 16  ;;  %v2008_v55 = vcvt.f32.s32 %v7908_v9 }
 0x463   :  { %v3941_v18 = vsel %vm9997_vm6, %v3939_v13, %v3934_v56  ;;  %v4924_v28 = vadd.f32 -15.5, %v3613_v40  ;;  %v1998_v54 = vadd.s32 %v1997_v3, %v1995_v23  ;;  %v2009_v52 = vcvt.f32.s32 %v2007_v35  ;;  %vm8169_vm5 = vmand %vm1490_vm12, %vm5870_vm9 }
 0x464   :  { %3410 = vadd.xlane.f32.xlu0 %v3407_v48  ;;  %v2036_v48 = vshll.u32 %v2035_v11, 16  ;;  %v2074_v2 = vcvt.f32.s32 %v8038_v53  ;;  %v2794_v7 = vshrl.u32 %v8130_v21, 16  ;;  %v1891_v53 = vsel %vm8145_vm1, 1, %v10064_v31  ;;  %vm8190_vm10 = vmor %vm1362_vm8, %vm8169_vm5 }
 0x465   :  { %v3946_v30 = vrot.slane %v4924_v28, %v6487_v38  ;;  %v3614_v41 = vcvt.s32.f32 %v1998_v54  ;;  %v2010_v33 = vshll.u32 %v2009_v52, 16  ;;  %v2031_v47 = vpop.xlane.xlu0 %2030  ;;  %3317 = vadd.xlane.f32.xlu1 %v7977_v20  ;;  %v1888_v3 = vsel %vm8155_vm14, 1, %v10064_v31 }
 0x466   :  { %v2034_v23 = vcvt.f32.s32 %v2031_v47  ;;  %v2020_v57 = vpop.xlane.xlu1 %2019  ;;  %vm1496_vm13 = vcmp.eq.f32.partialorder %v10358_v34, %v10375_v45  ;;  %v2021_v35 = vcvt.f32.s32 %v7937_v46  ;;  %v2075_v63 = vshll.u32 %v2074_v2, 16 }
 0x467   :  { %v3948_v13 = vsel %vm3947_vm7, %v3946_v30, %v3941_v18  ;;  %v4925_v56 = vadd.f32 -15.5, %v3614_v41  ;;  %v2011_v20 = vadd.s32 %v2010_v33, %v2008_v55  ;;  %v2022_v40 = vcvt.f32.s32 %v2020_v57  ;;  %vm1636_vm12 = vmand %vm1496_vm13, %vm5810_vm0  ;;  %v10379_v41 = vld [vmem:[#allocation86_spill] sm:$0xff] }
 0x468   :  { %v2037_v11 = vadd.s32 %v2036_v48, %v2034_v23  ;;  %2786 = vadd.xlane.f32.xlu0 %v2783_v32  ;;  %v2835_v30 = vcvt.s32.f32 %v2833_v6  ;;  %vm1368_vm15 = vcmp.lt.f32.partialorder %v10358_v34, %v10375_v45  ;;  %vm10378_vm8 = vcmask 261120  }
 0x469   :  { %v3953_v18 = vrot.slane %v4925_v56, %v6535_v62  ;;  %v3615_v28 = vcvt.s32.f32 %v2011_v20  ;;  %v2023_v54 = vshll.u32 %v2022_v40, 16  ;;  %v2070_v52 = vpop.xlane.xlu0 %2069  ;;  %3384 = vadd.xlane.f32.xlu1 %v8010_v19  ;;  %v8207_v51 = vsel %vm10378_vm8, %v1891_v53, 0  ;;  %vm10380_vm14 = vmmov %vm10378_vm8 }
 0x46a   :  { %v3617_v32 = vcvt.s32.f32 %v2037_v11  ;;  %v2073_v55 = vcvt.f32.s32 %v2070_v52  ;;  %v8194_v46 = vpop.xlane.xlu1 %2058  ;;  %vm1497_vm1 = vcmp.eq.f32.partialorder %v10358_v34, %v10379_v41  ;;  %v8214_v33 = vsel %vm10380_vm14, %v1888_v3, 0  ;;  %vm10381_vm5 = vmmov %vm10378_vm8  ;;  %v10382_v3 = vld [vmem:[#allocation87_spill] sm:$0xff] }
 0x46b   :  { %v8204_v44 = vsel %vm9998_vm3, %v3953_v18, %v3948_v13  ;;  %v2024_v19 = vadd.s32 %v2023_v54, %v2021_v35  ;;  %v4926_v47 = vadd.f32 -15.5, %v3615_v28  ;;  %v8220_v23 = vsel %vm10381_vm5, %v1889_v5, 0  ;;  %vm1764_vm13 = vmor %vm1368_vm15, %vm1636_vm12 }
 0x46c   :  { %v8211_v6 = vadd.s32 %v2075_v63, %v2073_v55  ;;  %2838 = vadd.xlane.f32.xlu0 %v2835_v30  ;;  %v1886_v57 = vsel %vm8190_vm10, 1, %v10064_v31  ;;  %v4928_v9 = vadd.f32 -15.5, %v3617_v32  ;;  %v2809_v56 = vcvt.s32.f32 %v2807_v0  ;;  %vm1637_vm10 = vmand %vm1497_vm1, %vm5796_vm11  ;;  %v10386_v63 = vld [vmem:[#allocation93_spill] sm:$0xff]  ;;  %v10387_v32 = vld [vmem:[#allocation22_spill] sm:$0xff] }
 0x46d   :  { %v3616_v48 = vcvt.s32.f32 %v2024_v19  ;;  %v8216_v2 = vpop.xlane.xlu0 %2136  ;;  %3423 = vadd.xlane.f32.xlu1 %v8047_v14  ;;  %v2885_v20 = vshrl.u32 %v8207_v51, 16  ;;  %vm1369_vm8 = vcmp.lt.f32.partialorder %v10358_v34, %v10379_v41  ;;  %v2796_v5 = vcvt.s32.f32 %v2794_v7  ;;  %vm10385_vm1 = vmmov %vm10381_vm5 }
 0x46e   :  { %v8228_v13 = vpop.xlane.xlu1 %2045  ;;  %v2846_v40 = vshrl.u32 %v8214_v33, 16  ;;  %v2780_v53 = vand.u32 65535, %v8026_v58  ;;  %v2859_v0 = vshrl.u32 %v8220_v23, 16  ;;  %vm1494_vm15 = vcmp.eq.f32.partialorder %v10340_v27, %v10382_v3  ;;  %vm8250_vm12 = vmor %vm1369_vm8, %vm1637_vm10 }
 0x46f   :  { %v4927_v14 = vadd.f32 -15.5, %v3616_v48  ;;  %v1892_v45 = vsel %vm1764_vm13, 1, %v10064_v31  ;;  %v3959_v11 = vrot.slane %v4926_v47, %v6419_v37  ;;  %v2087_v58 = vcvt.f32.s32 %v8073_v10  ;;  %vm8272_vm13 = vmand %vm1494_vm15, %vm5870_vm9 }
 0x470   :  { %2812 = vadd.xlane.f32.xlu0 %v2809_v56  ;;  %v3968_v28 = vrot.slane %v4928_v9, %v6487_v38  ;;  %v2887_v52 = vcvt.s32.f32 %v2885_v20  ;;  %v8259_v17 = vsel %vm10385_vm1, %v1886_v57, 0  ;;  %vm1500_vm14 = vcmp.eq.f32.partialorder %v10387_v32, %v10386_v63  ;;  %vm10390_vm8 = vmmov %vm10385_vm1  ;;  %v10391_v57 = vld [vmem:[#allocation88_spill] sm:$0xff] }
 0x471   :  { %v3963_v35 = vrot.slane %v4927_v14, %v6439_v16  ;;  %v8248_v18 = vpop.xlane.xlu0 %2175  ;;  %2799 = vadd.xlane.f32.xlu1 %v2796_v5  ;;  %v2061_v30 = vcvt.f32.s32 %v8194_v46  ;;  %v2848_v19 = vcvt.s32.f32 %v2846_v40  ;;  %vm1366_vm5 = vcmp.lt.f32.partialorder %v10340_v27, %v10382_v3  ;;  %vm1640_vm1 = vmand %vm1500_vm14, %vm5810_vm0 }
 0x472   :  { %v8256_v54 = vpop.xlane.xlu1 %2110  ;;  %v2782_v41 = vcvt.s32.f32 %v2780_v53  ;;  %v8277_v47 = vsel %vm10390_vm8, %v1892_v45, 0  ;;  %v1893_v48 = vsel %vm8250_vm12, 1, %v10064_v31  ;;  %vm1499_vm10 = vcmp.eq.f32.partialorder %v10387_v32, %v10391_v57  ;;  %vm8301_vm12 = vmor %vm1366_vm5, %vm8272_vm13 }
 0x473   :  { %v3964_v55 = vsel %vm9997_vm6, %v3963_v35, %v3959_v11  ;;  %v2861_v56 = vcvt.s32.f32 %v2859_v0  ;;  %v2820_v20 = vshrl.u32 %v8259_v17, 16  ;;  %vm1372_vm15 = vcmp.lt.f32.partialorder %v10387_v32, %v10386_v63  ;;  %vm8314_vm8 = vmand %vm1499_vm10, %vm5766_vm2 }
 0x474   :  { %2890 = vadd.xlane.f32.xlu0 %v2887_v52  ;;  %v8280_v46 = vsel %vm3947_vm7, %v3968_v28, %v3964_v55  ;;  %v2088_v14 = vshll.u32 %v2087_v58, 16  ;;  %v2126_v5 = vcvt.f32.s32 %v8113_v50  ;;  %v3620_v45 = vcvt.s32.f32 %v8211_v6  ;;  %vm8321_vm5 = vmor %vm1372_vm15, %vm1640_vm1 }
 0x475   :  { %v2083_v9 = vpop.xlane.xlu0 %2082  ;;  %2851 = vadd.xlane.f32.xlu1 %v2848_v19  ;;  %v2062_v11 = vshll.u32 %v2061_v30, 16  ;;  %v2898_v7 = vshrl.u32 %v8277_v47, 16  ;;  %vm1371_vm14 = vcmp.lt.f32.partialorder %v10387_v32, %v10391_v57  ;;  %v2822_v28 = vcvt.s32.f32 %v2820_v20 }
 0x476   :  { %v2086_v40 = vcvt.f32.s32 %v2083_v9  ;;  %v2057_v53 = vpop.xlane.xlu1 %2056  ;;  %v2845_v52 = vand.u32 65535, %v8214_v33  ;;  %v2793_v55 = vand.u32 65535, %v8130_v21  ;;  %v2127_v30 = vshll.u32 %v2126_v5, 16  ;;  %vm1767_vm10 = vmor %vm1371_vm14, %vm8314_vm8 }
 0x477   :  { %v2060_v35 = vcvt.f32.s32 %v2057_v53  ;;  %vm10398_vm13 = vcmask 261120   ;;  %v1890_v63 = vsel %vm8301_vm12, 1, %v10064_v31  ;;  %v4931_v33 = vadd.f32 -15.5, %v3620_v45 }
 0x478   :  { %v2089_v50 = vadd.s32 %v2088_v14, %v2086_v40  ;;  %2784 = vadd.xlane.f32.xlu0 %v2782_v41  ;;  %v8330_v41 = vsel %vm10398_vm13, %v1893_v48, 0  ;;  %v1896_v20 = vsel %vm8321_vm5, 1, %v10064_v31  ;;  %v2832_v5 = vand.u32 65535, %v8103_v26  ;;  %v10399_v40 = vld [vmem:[#allocation91_spill] sm:$0xff]  ;;  %vm10401_vm12 = vmmov %vm10398_vm13 }
 0x479   :  { %v2063_v3 = vadd.s32 %v2062_v11, %v2060_v35  ;;  %v2122_v58 = vpop.xlane.xlu0 %2121  ;;  %2864 = vadd.xlane.f32.xlu1 %v2861_v56  ;;  %v2900_v56 = vcvt.s32.f32 %v2898_v7  ;;  %vm1498_vm15 = vcmp.eq.f32.partialorder %v10358_v34, %v10399_v40  ;;  %v2795_v57 = vcvt.s32.f32 %v2793_v55  ;;  %v10400_v35 = vld [vmem:[#allocation90_spill] sm:$0xff]  ;;  %vm10402_vm14 = vmmov %vm10401_vm12  ;;  %v10405_v55 = vld [vmem:[#allocation92_spill] sm:$0xff] }
 0x47a   :  { %v3621_v19 = vcvt.s32.f32 %v2089_v50  ;;  %v2125_v10 = vcvt.f32.s32 %v2122_v58  ;;  %v8327_v9 = vpop.xlane.xlu1 %2097  ;;  %v2911_v45 = vshrl.u32 %v8330_v41, 16  ;;  %v1895_v11 = vsel %vm1767_vm10, 1, %v10064_v31  ;;  %vm8372_vm5 = vmand %vm1498_vm15, %vm5870_vm9 }
 0x47b   :  { %v3619_v21 = vcvt.s32.f32 %v2063_v3  ;;  %vm1501_vm1 = vcmp.eq.f32.partialorder %v10387_v32, %v10400_v35  ;;  %v2847_v27 = vcvt.s32.f32 %v2845_v52  ;;  %v8357_v26 = vsel %vm10401_vm12, %v1890_v63, 0  ;;  %vm10409_vm15 = vmmov %vm10401_vm12 }
 0x47c   :  { %v4932_v14 = vadd.f32 -15.5, %v3621_v19  ;;  %v8343_v48 = vadd.s32 %v2127_v30, %v2125_v10  ;;  %2825 = vadd.xlane.f32.xlu0 %v2822_v28  ;;  %v3982_v50 = vrot.slane %v4931_v33, %v6439_v16  ;;  %v2048_v6 = vcvt.f32.s32 %v8228_v13  ;;  %v10406_v30 = vld [vmem:[#allocation23_spill] sm:$0xff]  ;;  %vm8388_vm10 = vmand %vm1501_vm1, %vm5796_vm11 }
 0x47d   :  { %v4930_v53 = vadd.f32 -15.5, %v3619_v21  ;;  %v8348_v0 = vpop.xlane.xlu0 %2188  ;;  %2903 = vadd.xlane.f32.xlu1 %v2900_v56  ;;  %v8363_v58 = vsel %vm10402_vm14, %v1896_v20, 0  ;;  %vm1370_vm8 = vcmp.lt.f32.partialorder %v10358_v34, %v10399_v40  ;;  %v2834_v13 = vcvt.s32.f32 %v2832_v5 }
 0x47e   :  { %v8354_v7 = vpop.xlane.xlu1 %2162  ;;  %v3987_v52 = vrot.slane %v4932_v14, %v6487_v38  ;;  %vm1503_vm13 = vcmp.eq.f32.partialorder %v10406_v30, %v10405_v55  ;;  %v2913_v63 = vcvt.s32.f32 %v2911_v45  ;;  %v2872_v33 = vshrl.u32 %v8357_v26, 16  ;;  %vm8407_vm1 = vmor %vm1370_vm8, %vm8372_vm5 }
 0x47f   :  { %v3978_v3 = vrot.slane %v4930_v53, %v6419_v37  ;;  %v2100_v56 = vcvt.f32.s32 %v8327_v9  ;;  %v2950_v5 = vshrl.u32 %v8363_v58, 16  ;;  %v8398_v53 = vsel %vm10409_vm15, %v1895_v11, 0  ;;  %vm8419_vm15 = vmand %vm1503_vm13, %vm5766_vm2 }
 0x480   :  { %2849 = vadd.xlane.f32.xlu0 %v2847_v27  ;;  %vm1373_vm12 = vcmp.lt.f32.partialorder %v10387_v32, %v10400_v35  ;;  %v2049_v9 = vshll.u32 %v2048_v6, 16  ;;  %v2113_v45 = vcvt.f32.s32 %v8256_v54  ;;  %vm1375_vm14 = vcmp.lt.f32.partialorder %v10406_v30, %v10405_v55 }
 0x481   :  { %v3983_v19 = vsel %vm9997_vm6, %v3982_v50, %v3978_v3  ;;  %v8380_v10 = vpop.xlane.xlu0 %2227  ;;  %2797 = vadd.xlane.f32.xlu1 %v2795_v57  ;;  %v2806_v34 = vand.u32 65535, %v8082_v36  ;;  %v2858_v40 = vand.u32 65535, %v8220_v23  ;;  %v10414_v50 = vld [vmem:[#allocation97_spill] sm:$0xff]  ;;  %v2874_v28 = vcvt.s32.f32 %v2872_v33  ;;  %vm8434_vm5 = vmor %vm1373_vm12, %vm8388_vm10 }
 0x482   :  { %v2044_v20 = vpop.xlane.xlu1 %2043  ;;  %v8394_v14 = vsel %vm3947_vm7, %v3987_v52, %v3983_v19  ;;  %vm1504_vm8 = vcmp.eq.f32.partialorder %v10406_v30, %v10414_v50  ;;  %v2937_v52 = vshrl.u32 %v8398_v53, 16  ;;  %v1894_v23 = vsel %vm8407_vm1, 1, %v10064_v31  ;;  %vm8446_vm13 = vmor %vm1375_vm14, %vm8419_vm15 }
 0x483   :  { %v2047_v27 = vcvt.f32.s32 %v2044_v20  ;;  %v2101_v19 = vshll.u32 %v2100_v56, 16  ;;  %v2114_v35 = vshll.u32 %v2113_v45, 16  ;;  %v3624_v21 = vcvt.s32.f32 %v8343_v48  ;;  %vm8458_vm12 = vmand %vm1504_vm8, %vm5810_vm0 }
 0x484   :  { %2916 = vadd.xlane.f32.xlu0 %v2913_v63  ;;  %vm1376_vm10 = vcmp.lt.f32.partialorder %v10406_v30, %v10414_v50  ;;  %v3235_v48 = vand.u32 65535, %v7567_v15  ;;  %v1897_v57 = vsel %vm8434_vm5, 1, %v10064_v31  ;;  %v2939_v29 = vcvt.s32.f32 %v2937_v52 }
 0x485   :  { %v2050_v6 = vadd.s32 %v2049_v9, %v2047_v27  ;;  %v2096_v3 = vpop.xlane.xlu0 %2095  ;;  %2836 = vadd.xlane.f32.xlu1 %v2834_v13  ;;  %v2952_v13 = vcvt.s32.f32 %v2950_v5  ;;  %v2884_v5 = vand.u32 65535, %v8207_v51  ;;  %v2860_v60 = vcvt.s32.f32 %v2858_v40  ;;  %vm1772_vm14 = vmor %vm1376_vm10, %vm8458_vm12 }
 0x486   :  { %v2099_v63 = vcvt.f32.s32 %v2096_v3  ;;  %v2109_v20 = vpop.xlane.xlu1 %2108  ;;  %v2808_v3 = vcvt.s32.f32 %v2806_v34  ;;  %vm10421_vm1 = vcmask 261120   ;;  %v1899_v51 = vsel %vm8446_vm13, 1, %v10064_v31 }
 0x487   :  { %v3618_v9 = vcvt.s32.f32 %v2050_v6  ;;  %v2112_v27 = vcvt.f32.s32 %v2109_v20  ;;  %v2886_v40 = vcvt.s32.f32 %v2884_v5  ;;  %v2897_v52 = vand.u32 65535, %v8277_v47  ;;  %vm10422_vm15 = vmmov %vm10421_vm1 }
 0x488   :  { %v2102_v55 = vadd.s32 %v2101_v19, %v2099_v63  ;;  %2955 = vadd.xlane.f32.xlu0 %v2952_v13  ;;  %v8470_v19 = vsel %vm10421_vm1, %v1894_v23, 0  ;;  %v8483_v23 = vsel %vm10422_vm15, %v1897_v57, 0  ;;  %v2165_v13 = vcvt.f32.s32 %v8354_v7  ;;  %vm10424_vm5 = vmmov %vm10421_vm1  ;;  %v10425_v57 = vld [vmem:[#allocation94_spill] sm:$0xff] }
 0x489   :  { %v4929_v45 = vadd.f32 -15.5, %v3618_v9  ;;  %v2115_v11 = vadd.s32 %v2114_v35, %v2112_v27  ;;  %v2161_v6 = vpop.xlane.xlu0 %2160  ;;  %2877 = vadd.xlane.f32.xlu1 %v2874_v28  ;;  %v4935_v28 = vadd.f32 -15.5, %v3624_v21  ;;  %v2924_v21 = vshrl.u32 %v8470_v19, 16 }
 0x48a   :  { %v3622_v20 = vcvt.s32.f32 %v2102_v55  ;;  %v8467_v54 = vpop.xlane.xlu1 %2149  ;;  %v1900_v9 = vsel %vm1772_vm14, 1, %v10064_v31  ;;  %vm10423_vm8 = vcmask 1041409   ;;  %v8498_v7 = vsel %vm10424_vm5, %v1899_v51, 0 }
 0x48b   :  { %v3973_v34 = vrot.slane %v4929_v45, %v6535_v62  ;;  %v3623_v36 = vcvt.s32.f32 %v2115_v11  ;;  %v4001_v55 = vrot.slane %v4935_v28, %v6439_v16  ;;  %v2164_v5 = vcvt.f32.s32 %v2161_v6  ;;  %v10427_v28 = vld [vmem:[#allocation95_spill] sm:$0xff] }
 0x48c   :  { %v4933_v63 = vadd.f32 -15.5, %v3622_v20  ;;  %2810 = vadd.xlane.f32.xlu0 %v2808_v3  ;;  %vm1505_vm13 = vcmp.eq.f32.partialorder %v10406_v30, %v10425_v57  ;;  %v2899_v45 = vcvt.s32.f32 %v2897_v52  ;;  %v2963_v11 = vshrl.u32 %v8483_v23, 16 }
 0x48d   :  { %v3974_v33 = vsel %vm9998_vm3, %v3973_v34, %v8280_v46  ;;  %v4934_v35 = vadd.f32 -15.5, %v3623_v36  ;;  %v8488_v50 = vpop.xlane.xlu0 %2201  ;;  %2942 = vadd.xlane.f32.xlu1 %v2939_v29  ;;  %v2139_v46 = vcvt.f32.s32 %v8216_v2  ;;  %v2166_v3 = vshll.u32 %v2165_v13, 16  ;;  %vm8535_vm5 = vmand %vm1505_vm13, %vm5796_vm11 }
 0x48e   :  { %v4242_v27 = vsel %vm10423_vm8, %v3974_v33, %v8204_v44  ;;  %v3992_v47 = vrot.slane %v4933_v63, %v6535_v62  ;;  %v8495_v56 = vpop.xlane.xlu1 %2214  ;;  %v2989_v51 = vshrl.u32 %v8498_v7, 16  ;;  %vm10426_vm10 = vcmask 1042434   ;;  %v10428_v33 = vld [vmem:[#allocation67_spill] sm:$0xff] }
 0x48f   :  { %v3997_v29 = vrot.slane %v4934_v35, %v6419_v37  ;;  %vm1502_vm12 = vcmp.eq.f32.partialorder %v10387_v32, %v10427_v28  ;;  %v2926_v36 = vcvt.s32.f32 %v2924_v21  ;;  %v8521_v63 = vsel %vm10421_vm1, %v1900_v9, 0  ;;  %v10429_v35 = vld [vmem:[#allocation68_spill] sm:$0xff] }
 0x490   :  { %v3993_v44 = vsel %vm9998_vm3, %v3992_v47, %v8394_v14  ;;  %2888 = vadd.xlane.f32.xlu0 %v2886_v40  ;;  %v2152_v14 = vcvt.f32.s32 %v8467_v54  ;;  %v2140_v40 = vshll.u32 %v2139_v46, 16  ;;  %v2178_v52 = vcvt.f32.s32 %v8248_v18  ;;  %vm8551_vm4 = vmand %vm1502_vm12, %vm5870_vm9  ;;  %v10434_v46 = vld [vmem:[#allocation101_spill] sm:$0xff] }
 0x491   :  { %v8509_v20 = vsel %vm9997_vm6, %v4001_v55, %v3997_v29  ;;  %v8511_v2 = vpop.xlane.xlu0 %2266  ;;  %2862 = vadd.xlane.f32.xlu1 %v2860_v60  ;;  %v8515_v6 = vsel %vm10426_vm10, %v3993_v44, %v4242_v27  ;;  %v2167_v13 = vadd.s32 %v2166_v3, %v2164_v5  ;;  %vm1537_vm14 = vcmp.eq.f32.partialorder %v10308_v39, %v10428_v33  ;;  %v10435_v55 = vld [vmem:[#allocation24_spill] sm:$0xff] }
 0x492   :  { %v2135_v34 = vpop.xlane.xlu1 %2134  ;;  %vm1534_vm15 = vcmp.eq.f32.partialorder %v10290_v43, %v10429_v35  ;;  %vm1377_vm8 = vcmp.lt.f32.partialorder %v10406_v30, %v10425_v57  ;;  %v2819_v18 = vand.u32 65535, %v8259_v17  ;;  %vm1409_vm10 = vcmp.lt.f32.partialorder %v10308_v39, %v10428_v33  ;;  %vm8572_vm12 = vmand %vm1537_vm14, %vm5796_vm11 }
 0x493   :  { %v2138_v60 = vcvt.f32.s32 %v2135_v34  ;;  %vm1374_vm1 = vcmp.lt.f32.partialorder %v10387_v32, %v10427_v28  ;;  %v2991_v27 = vcvt.s32.f32 %v2989_v51  ;;  %v2965_v47 = vcvt.s32.f32 %v2963_v11  ;;  %vm8563_vm13 = vmor %vm1377_vm8, %vm8535_vm5 }
 0x494   :  { %2929 = vadd.xlane.f32.xlu0 %v2926_v36  ;;  %vm1508_vm6 = vcmp.eq.f32.partialorder %v10435_v55, %v10434_v46  ;;  %v2153_v29 = vshll.u32 %v2152_v14, 16  ;;  %v2179_v3 = vshll.u32 %v2178_v52, 16  ;;  %v3627_v51 = vcvt.s32.f32 %v2167_v13  ;;  %vm8584_vm8 = vmor %vm1374_vm1, %vm8551_vm4 }
 0x495   :  { %v2141_v21 = vadd.s32 %v2140_v40, %v2138_v60  ;;  %v2148_v9 = vpop.xlane.xlu0 %2147  ;;  %2901 = vadd.xlane.f32.xlu1 %v2899_v45  ;;  %v3002_v45 = vshrl.u32 %v8521_v63, 16  ;;  %v10440_v40 = vld [vmem:[#allocation96_spill] sm:$0xff]  ;;  %v2821_v60 = vcvt.s32.f32 %v2819_v18  ;;  %v3352_v52 = vand.u32 65535, %v7755_v1  ;;  %vm8604_vm5 = vmand %vm1508_vm6, %vm5810_vm0 }
 0x496   :  { %v2151_v5 = vcvt.f32.s32 %v2148_v9  ;;  %v2174_v44 = vpop.xlane.xlu1 %2173  ;;  %vm1507_vm3 = vcmp.eq.f32.partialorder %v10435_v55, %v10440_v40  ;;  %v2871_v18 = vand.u32 65535, %v8357_v26  ;;  %vm1379_vm14 = vcmp.lt.f32.partialorder %v10435_v55, %v10440_v40  ;;  %vm8625_vm6 = vmand %vm1534_vm15, %vm5870_vm9 }
 0x497   :  { %v3625_v34 = vcvt.s32.f32 %v2141_v21  ;;  %v2177_v36 = vcvt.f32.s32 %v2174_v44  ;;  %vm1380_vm4 = vcmp.lt.f32.partialorder %v10435_v55, %v10434_v46  ;;  %vm8615_vm1 = vmand %vm1507_vm3, %vm5766_vm2  ;;  %v3004_v44 = vcvt.s32.f32 %v3002_v45 }
 0x498   :  { %v2154_v57 = vadd.s32 %v2153_v29, %v2151_v5  ;;  %2994 = vadd.xlane.f32.xlu0 %v2991_v27  ;;  %v2910_v29 = vand.u32 65535, %v8330_v41  ;;  %v1901_v27 = vsel %vm8563_vm13, 1, %v10064_v31  ;;  %v1898_v45 = vsel %vm8584_vm8, 1, %v10064_v31  ;;  %vm8642_vm15 = vmor %vm1380_vm4, %vm8604_vm5 }
 0x499   :  { %v4936_v54 = vadd.f32 -15.5, %v3625_v34  ;;  %v2180_v21 = vadd.s32 %v2179_v3, %v2177_v36  ;;  %v8588_v9 = vpop.xlane.xlu0 %2212  ;;  %2968 = vadd.xlane.f32.xlu1 %v2965_v47  ;;  %v4938_v47 = vadd.f32 -15.5, %v3627_v51  ;;  %v10449_v3 = vld [vmem:[#allocation69_spill] sm:$0xff]  ;;  %v3326_v36 = vand.u32 65535, %v7715_v24  ;;  %vm8655_vm8 = vmor %vm1379_vm14, %vm8615_vm1 }
 0x49a   :  { %v3626_v41 = vcvt.s32.f32 %v2154_v57  ;;  %v8608_v26 = vpop.xlane.xlu1 %2240  ;;  %v10450_v34 = vld [vmem:[#allocation17_spill] sm:$0xff]  ;;  %v2912_v24 = vcvt.s32.f32 %v2910_v29  ;;  %vm10455_vm4 = vcmask 261120   ;;  %v2191_v29 = vcvt.f32.s32 %v8348_v0  ;;  %vm8675_vm14 = vmor %vm1409_vm10, %vm8572_vm12 }
 0x49b   :  { %v4006_v17 = vrot.slane %v4936_v54, %v6487_v38  ;;  %v3628_v5 = vcvt.s32.f32 %v2180_v21  ;;  %vm1411_vm3 = vcmp.lt.f32.partialorder %v10450_v34, %v10449_v3  ;;  %vm1539_vm13 = vcmp.eq.f32.partialorder %v10450_v34, %v10449_v3 }
 0x49c   :  { %v4937_v51 = vadd.f32 -15.5, %v3626_v41  ;;  %2823 = vadd.xlane.f32.xlu0 %v2821_v60  ;;  %v2936_v41 = vand.u32 65535, %v8398_v53  ;;  %v4016_v28 = vrot.slane %v4938_v47, %v6419_v37  ;;  %v1904_v0 = vsel %vm8642_vm15, 1, %v10064_v31 }
 0x49d   :  { %v4007_v54 = vsel %vm3947_vm7, %v4006_v17, %v8509_v20  ;;  %v4939_v21 = vadd.f32 -15.5, %v3628_v5  ;;  %v8648_v60 = vpop.xlane.xlu0 %2253  ;;  %3007 = vadd.xlane.f32.xlu1 %v3004_v44  ;;  %v2949_v20 = vand.u32 65535, %v8363_v58  ;;  %v8665_v17 = vsel %vm10455_vm4, %v1901_v27, 0  ;;  %v10458_v58 = vld [vmem:[#allocation73_spill] sm:$0xff] }
 0x49e   :  { %v4011_v46 = vrot.slane %v4937_v51, %v6535_v62  ;;  %v8660_v32 = vpop.xlane.xlu1 %2279  ;;  %v2873_v5 = vcvt.s32.f32 %v2871_v18  ;;  %vm1540_vm5 = vcmp.eq.f32.partialorder %v10450_v34, %v10458_v58  ;;  %vm10459_vm1 = vcmask 261312  }
 0x49f   :  { %v4020_v40 = vrot.slane %v4939_v21, %v6439_v16  ;;  %v8686_v18 = vsel %vm10455_vm4, %v1898_v45, 0  ;;  %vm10460_vm10 = vcmp.lt.f32.partialorder %v10290_v43, %v10429_v35  ;;  %v1903_v14 = vsel %vm8655_vm8, 1, %v10064_v31  ;;  %vm8727_vm4 = vmand %vm1540_vm5, %vm5810_vm0 }
 0x4a0   :  { %v4012_v53 = vsel %vm10459_vm1, %v4011_v46, %v4007_v54  ;;  %2914 = vadd.xlane.f32.xlu0 %v2912_v24  ;;  %vm8693_vm12 = vmor %vm10460_vm10, %vm8625_vm6  ;;  %vm10463_vm15 = vcmask 130112   ;;  %v3015_v51 = vshrl.u32 %v8665_v17, 16  ;;  %vm10464_vm1 = vcmask 1043459  }
 0x4a1   :  { %v8701_v27 = vsel %vm10463_vm15, %v4020_v40, %v4016_v28  ;;  %v8703_v47 = vpop.xlane.xlu0 %2318  ;;  %2875 = vadd.xlane.f32.xlu1 %v2873_v5  ;;  %v8708_v11 = vsel %vm10464_vm1, %v4012_v53, %v8515_v6  ;;  %vm8715_vm6 = vmand %vm1539_vm13, %vm5766_vm2  ;;  %vm1412_vm8 = vcmp.lt.f32.partialorder %v10450_v34, %v10458_v58  ;;  %v2204_v35 = vcvt.f32.s32 %v8488_v50 }
 0x4a2   :  { %v2187_v45 = vpop.xlane.xlu1 %2186  ;;  %v2951_v57 = vcvt.s32.f32 %v2949_v20  ;;  %v2938_v54 = vcvt.s32.f32 %v2936_v41  ;;  %v2192_v21 = vshll.u32 %v2191_v29, 16  ;;  %v2976_v13 = vshrl.u32 %v8686_v18, 16  ;;  %vm8768_vm5 = vmor %vm1412_vm8, %vm8727_vm4 }
 0x4a3   :  { %v2190_v24 = vcvt.f32.s32 %v2187_v45  ;;  %vm10469_vm13 = vcmask 261120   ;;  %v1933_v50 = vsel %vm8675_vm14, 1, %v10064_v31  ;;  %v10471_v41 = vand.u32 65535, %v7706_v61  ;;  %vm8755_vm14 = vmor %vm1411_vm3, %vm8715_vm6 }
 0x4a4   :  { %v8733_v46 = vsel %vm10469_vm13, %v1904_v0, 0  ;;  %2953 = vadd.xlane.f32.xlu0 %v2951_v57  ;;  %vm10470_vm10 = vmmov %vm10469_vm13  ;;  %v8745_v29 = vcvt.s32.f32 %v3235_v48  ;;  %v1930_v40 = vsel %vm8693_vm12, 1, %v10064_v31  ;;  %v3017_v0 = vcvt.s32.f32 %v3015_v51 }
 0x4a5   :  { %v8739_v20 = vsel %vm10470_vm10, %v1903_v14, 0  ;;  %v3289_v28 = vcvt.s32.f32 %v10471_v41  ;;  %v2193_v44 = vadd.s32 %v2192_v21, %v2190_v24  ;;  %v2200_v61 = vpop.xlane.xlu0 %2199  ;;  %2940 = vadd.xlane.f32.xlu1 %v2938_v54  ;;  %v8761_v15 = vcvt.s32.f32 %v3352_v52  ;;  %vm10476_vm3 = vmmov %vm10470_vm10 }
 0x4a6   :  { %v2230_v3 = vcvt.f32.s32 %v8380_v10  ;;  %v2205_v53 = vshll.u32 %v2204_v35, 16  ;;  %v2203_v33 = vcvt.f32.s32 %v2200_v61  ;;  %v2226_v14 = vpop.xlane.xlu1 %2225  ;;  %v3054_v51 = vshrl.u32 %v8733_v46, 16  ;;  %vm10477_vm12 = vmmov %vm10476_vm3 }
 0x4a7   :  { %v3629_v43 = vcvt.s32.f32 %v2193_v44  ;;  %v2978_v1 = vcvt.s32.f32 %v2976_v13  ;;  %v3041_v52 = vshrl.u32 %v8739_v20, 16  ;;  %v8775_v45 = vcvt.s32.f32 %v3326_v36  ;;  %vm10478_vm15 = vmmov %vm10476_vm3 }
 0x4a8   :  { %v2217_v57 = vcvt.f32.s32 %v8495_v56  ;;  %v2206_v58 = vadd.s32 %v2205_v53, %v2203_v33  ;;  %v2229_v54 = vcvt.f32.s32 %v2226_v14  ;;  %3020 = vadd.xlane.f32.xlu0 %v3017_v0  ;;  %v8779_v6 = vsel %vm10476_vm3, %v1930_v40, 0  ;;  %vm10480_vm6 = vmmov %vm10476_vm3 }
 0x4a9   :  { %v1935_v10 = vsel %vm8755_vm14, 1, %v10064_v31  ;;  %v1936_v35 = vsel %vm8768_vm5, 1, %v10064_v31  ;;  %v4940_v21 = vadd.f32 -15.5, %v3629_v43  ;;  %v8787_v24 = vpop.xlane.xlu0 %2264  ;;  %2981 = vadd.xlane.f32.xlu1 %v2978_v1  ;;  %v8790_v56 = vsel %vm10477_vm12, %v1933_v50, 0 }
 0x4aa   :  { %v2231_v36 = vshll.u32 %v2230_v3, 16  ;;  %v2216_v13 = vcvt.f32.s32 %v8588_v9  ;;  %v3630_v41 = vcvt.s32.f32 %v2206_v58  ;;  %v8793_v40 = vpop.xlane.xlu1 %2292  ;;  %v3056_v44 = vcvt.s32.f32 %v3054_v51  ;;  %v10479_v3 = vld [vmem:[#allocation99_spill] sm:$0xff] }
 0x4ab   :  { %v4025_v5 = vrot.slane %v4940_v21, %v6487_v38  ;;  %v3043_v61 = vcvt.s32.f32 %v3041_v52  ;;  %v3392_v0 = vshrl.u32 %v8779_v6, 16  ;;  %v3365_v48 = vand.u32 65535, %v7941_v42 }
 0x4ac   :  { %v2218_v53 = vshll.u32 %v2217_v57, 16  ;;  %v4941_v33 = vadd.f32 -15.5, %v3630_v41  ;;  %v2232_v14 = vadd.s32 %v2231_v36, %v2229_v54  ;;  %3059 = vadd.xlane.f32.xlu0 %v3056_v44  ;;  %v8799_v50 = vsel %vm10478_vm15, %v1935_v10, 0  ;;  %v10481_v10 = vld [vmem:[#allocation98_spill] sm:$0xff]  ;;  %v10485_v41 = vld [vmem:[#allocation100_spill] sm:$0xff]  ;;  %v10486_v44 = vld [vmem:[#allocation25_spill] sm:$0xff] }
 0x4ad   :  { %vm1506_vm1 = vcmp.eq.f32.partialorder %v10406_v30, %v10479_v3  ;;  %v4026_v9 = vsel %vm3947_vm7, %v4025_v5, %v8701_v27  ;;  %v8805_v51 = vpop.xlane.xlu0 %2305  ;;  %3046 = vadd.xlane.f32.xlu1 %v3043_v61  ;;  %v3431_v43 = vshrl.u32 %v8790_v56, 16  ;;  %v8809_v42 = vsel %vm10480_vm6, %v1936_v35, 0 }
 0x4ae   :  { %v2219_v1 = vadd.s32 %v2218_v53, %v2216_v13  ;;  %v2256_v52 = vcvt.f32.s32 %v8648_v60  ;;  %v4030_v57 = vrot.slane %v4941_v33, %v6535_v62  ;;  %v8813_v58 = vpop.xlane.xlu1 %2331  ;;  %v3339_v54 = vand.u32 65535, %v7891_v12  ;;  %vm8827_vm13 = vmand %vm1506_vm1, %vm5870_vm9 }
 0x4af   :  { %vm1509_vm8 = vcmp.eq.f32.partialorder %v10435_v55, %v10481_v10  ;;  %v2243_v27 = vcvt.f32.s32 %v8608_v26  ;;  %v3394_v21 = vcvt.s32.f32 %v3392_v0  ;;  %v3457_v36 = vshrl.u32 %v8799_v50, 16 }
 0x4b0   :  { %vm1378_vm4 = vcmp.lt.f32.partialorder %v10406_v30, %v10479_v3  ;;  %v3632_v35 = vcvt.s32.f32 %v2232_v14  ;;  %3291 = vadd.xlane.f32.xlu0 %v3289_v28  ;;  %v3470_v13 = vshrl.u32 %v8809_v42, 16  ;;  %vm10484_vm10 = vcmask 261312   ;;  %vm8849_vm12 = vmand %vm1509_vm8, %vm5796_vm11 }
 0x4b1   :  { %v4031_v26 = vsel %vm10484_vm10, %v4030_v57, %v4026_v9  ;;  %vm1511_vm14 = vcmp.eq.f32.partialorder %v10486_v44, %v10485_v41  ;;  %v2252_v5 = vpop.xlane.xlu0 %2251  ;;  %3239 = vadd.xlane.f32.xlu1 %v8745_v29  ;;  %v2923_v61 = vand.u32 65535, %v8470_v19  ;;  %v2988_v0 = vand.u32 65535, %v8498_v7  ;;  %vm8858_vm15 = vmor %vm1378_vm4, %vm8827_vm13 }
 0x4b2   :  { %vm10487_vm5 = vcmask 1044484   ;;  %vm1381_vm3 = vcmp.lt.f32.partialorder %v10435_v55, %v10481_v10  ;;  %v3631_v29 = vcvt.s32.f32 %v2219_v1  ;;  %v2257_v19 = vshll.u32 %v2256_v52, 16  ;;  %v2239_v7 = vpop.xlane.xlu1 %2238  ;;  %vm8869_vm6 = vmand %vm1511_vm14, %vm5766_vm2 }
 0x4b3   :  { %v8840_v53 = vsel %vm10487_vm5, %v4031_v26, %v8708_v11  ;;  %v2255_v33 = vcvt.f32.s32 %v2252_v5  ;;  %v2244_v14 = vshll.u32 %v2243_v27, 16  ;;  %v2242_v9 = vcvt.f32.s32 %v2239_v7  ;;  %vm8880_vm8 = vmor %vm1381_vm3, %vm8849_vm12 }
 0x4b4   :  { %v3367_v57 = vcvt.s32.f32 %v3365_v48  ;;  %v3433_v26 = vcvt.s32.f32 %v3431_v43  ;;  %vm1383_vm1 = vcmp.lt.f32.partialorder %v10486_v44, %v10485_v41  ;;  %v4943_v30 = vadd.f32 -15.5, %v3632_v35  ;;  %3356 = vadd.xlane.f32.xlu0 %v8761_v15 }
 0x4b5   :  { %v2258_v3 = vadd.s32 %v2257_v19, %v2255_v33  ;;  %v2962_v52 = vand.u32 65535, %v8483_v23  ;;  %v2282_v43 = vcvt.f32.s32 %v8660_v32  ;;  %v2245_v27 = vadd.s32 %v2244_v14, %v2242_v9  ;;  %v8885_v60 = vpop.xlane.xlu0 %2316  ;;  %3330 = vadd.xlane.f32.xlu1 %v8775_v45  ;;  %vm8900_vm4 = vmor %vm1383_vm1, %vm8869_vm6 }
 0x4b6   :  { %v3459_v35 = vcvt.s32.f32 %v3457_v36  ;;  %v8888_v15 = vcvt.s32.f32 %v3470_v13  ;;  %v4942_v23 = vadd.f32 -15.5, %v3631_v29  ;;  %v2278_v28 = vpop.xlane.xlu1 %2277  ;;  %v2925_v19 = vcvt.s32.f32 %v2923_v61  ;;  %v10498_v61 = vld [vmem:[#allocation71_spill] sm:$0xff] }
 0x4b7   :  { %v3634_v5 = vcvt.s32.f32 %v2258_v3  ;;  %v8890_v33 = vcvt.s32.f32 %v2988_v0  ;;  %v1902_v10 = vsel %vm8858_vm15, 1, %v10064_v31  ;;  %v2269_v45 = vcvt.f32.s32 %v8511_v2  ;;  %v10499_v3 = vld [vmem:[#allocation70_spill] sm:$0xff] }
 0x4b8   :  { %v3633_v36 = vcvt.s32.f32 %v2245_v27  ;;  %v2281_v13 = vcvt.f32.s32 %v2278_v28  ;;  %vm1538_vm13 = vcmp.eq.f32.partialorder %v10308_v39, %v10498_v61  ;;  %v1905_v0 = vsel %vm8880_vm8, 1, %v10064_v31  ;;  %3397 = vadd.xlane.f32.xlu0 %v3394_v21 }
 0x4b9   :  { %v4039_v29 = vrot.slane %v4943_v30, %v6439_v16  ;;  %v4945_v7 = vadd.f32 -15.5, %v3634_v5  ;;  %v8911_v41 = vcvt.s32.f32 %v2962_v52  ;;  %v2283_v11 = vshll.u32 %v2282_v43, 16  ;;  %v2358_v1 = vpop.xlane.xlu0 %2357  ;;  %3369 = vadd.xlane.f32.xlu1 %v3367_v57  ;;  %v10500_v30 = vld [vmem:[#allocation5_spill] sm:$0xff] }
 0x4ba   :  { %v2268_v14 = vcvt.f32.s32 %v8787_v24  ;;  %v2295_v2 = vcvt.f32.s32 %v8793_v40  ;;  %v4944_v9 = vadd.f32 -15.5, %v3633_v36  ;;  %vm1541_vm10 = vcmp.eq.f32.partialorder %v10450_v34, %v10499_v3  ;;  %v8923_v52 = vpop.xlane.xlu1 %2344 }
 0x4bb   :  { %v1907_v48 = vsel %vm8900_vm4, 1, %v10064_v31  ;;  %vm1512_vm14 = vcmp.eq.f32.partialorder %v10486_v44, %v10500_v30  ;;  %v4035_v21 = vrot.slane %v4942_v23, %v6419_v37  ;;  %vm10501_vm5 = vcmask 261120  }
 0x4bc   :  { %v8926_v24 = vsel %vm10501_vm5, %v1902_v10, 0  ;;  %vm1410_vm3 = vcmp.lt.f32.partialorder %v10308_v39, %v10498_v61  ;;  %v2270_v40 = vshll.u32 %v2269_v45, 16  ;;  %v2308_v57 = vcvt.f32.s32 %v8805_v51  ;;  %3462 = vadd.xlane.f32.xlu0 %v3459_v35  ;;  %vm8946_vm6 = vmand %vm1512_vm14, %vm5810_vm0 }
 0x4bd   :  { %v4044_v43 = vrot.slane %v4944_v9, %v6487_v38  ;;  %v2284_v27 = vadd.s32 %v2283_v11, %v2281_v13  ;;  %vm1384_vm12 = vcmp.lt.f32.partialorder %v10486_v44, %v10500_v30  ;;  %v2321_v5 = vcvt.f32.s32 %v8703_v47  ;;  %v2304_v45 = vpop.xlane.xlu0 %2303  ;;  %3436 = vadd.xlane.f32.xlu1 %v3433_v26  ;;  %v10507_v11 = vld [vmem:[#allocation18_spill] sm:$0xff] }
 0x4be   :  { %vm10502_vm15 = vcmask 130112   ;;  %v4049_v28 = vrot.slane %v4945_v7, %v6535_v62  ;;  %v2271_v10 = vadd.s32 %v2270_v40, %v2268_v14  ;;  %v2296_v32 = vshll.u32 %v2295_v2, 16  ;;  %v10506_v7 = vld [vmem:[#allocation72_spill] sm:$0xff] }
 0x4bf   :  { %v4040_v23 = vsel %vm10502_vm15, %v4039_v29, %v4035_v21  ;;  %v2334_v36 = vcvt.f32.s32 %v8813_v58  ;;  %vm1413_vm1 = vcmp.lt.f32.partialorder %v10450_v34, %v10499_v3  ;;  %v2320_v35 = vcvt.f32.s32 %v8885_v60  ;;  %v2291_v29 = vpop.xlane.xlu1 %2290  ;;  %vm8968_vm15 = vmor %vm1384_vm12, %vm8946_vm6 }
 0x4c0   :  { %v4045_v51 = vsel %vm3947_vm7, %v4044_v43, %v4040_v23  ;;  %v2360_v13 = vcvt.f32.s32 %v2358_v1  ;;  %v2307_v58 = vcvt.f32.s32 %v2304_v45  ;;  %vm10505_vm8 = vcmask 261312   ;;  %2927 = vadd.xlane.f32.xlu0 %v2925_v19  ;;  %vm8981_vm12 = vmand %vm1538_vm13, %vm5870_vm9 }
 0x4c1   :  { %v4050_v26 = vsel %vm10505_vm8, %v4049_v28, %v4045_v51  ;;  %vm1415_vm4 = vcmp.lt.f32.partialorder %v10507_v11, %v10506_v7  ;;  %v2309_v14 = vshll.u32 %v2308_v57, 16  ;;  %v3636_v2 = vcvt.s32.f32 %v2284_v27  ;;  %v2356_v19 = vpop.xlane.xlu0 %2355  ;;  %3475 = vadd.xlane.f32.xlu1 %v8888_v15  ;;  %vm8997_vm13 = vmand %vm1541_vm10, %vm5796_vm11 }
 0x4c2   :  { %v2294_v9 = vcvt.f32.s32 %v2291_v29  ;;  %vm10508_vm5 = vcmask 1045509   ;;  %v2322_v40 = vshll.u32 %v2321_v5, 16  ;;  %v3028_v43 = vshrl.u32 %v8926_v24, 16 }
 0x4c3   :  { %v8956_v21 = vsel %vm10508_vm5, %v4050_v26, %v8840_v53  ;;  %v3001_v60 = vand.u32 65535, %v8521_v63  ;;  %vm10509_vm14 = vcmask 261120   ;;  %v3635_v53 = vcvt.s32.f32 %v2271_v10  ;;  %v2330_v51 = vpop.xlane.xlu1 %2329  ;;  %vm9009_vm5 = vmor %vm1410_vm3, %vm8981_vm12 }
 0x4c4   :  { %v8961_v1 = vsel %vm10509_vm14, %v1905_v0, 0  ;;  %v2310_v27 = vadd.s32 %v2309_v14, %v2307_v58  ;;  %v2297_v5 = vadd.s32 %v2296_v32, %v2294_v9  ;;  %vm10512_vm8 = vmmov %vm10509_vm14  ;;  %v2335_v0 = vshll.u32 %v2334_v36, 16  ;;  %2992 = vadd.xlane.f32.xlu0 %v8890_v33 }
 0x4c5   :  { %v8974_v63 = vsel %vm10512_vm8, %v1907_v48, 0  ;;  %v2323_v23 = vadd.s32 %v2322_v40, %v2320_v35  ;;  %v2361_v28 = vshll.u32 %v2360_v13, 16  ;;  %v2359_v45 = vcvt.f32.s32 %v2356_v19  ;;  %v9001_v14 = vpop.xlane.xlu0 %3202  ;;  %2966 = vadd.xlane.f32.xlu1 %v8911_v41  ;;  %vm10522_vm14 = vmmov %vm10512_vm8 }
 0x4c6   :  { %v4947_v10 = vadd.f32 -15.5, %v3636_v2  ;;  %v2347_v15 = vcvt.f32.s32 %v8923_v52  ;;  %v3637_v32 = vcvt.s32.f32 %v2297_v5  ;;  %v2333_v48 = vcvt.f32.s32 %v2330_v51  ;;  %v10521_v5 = vld [vmem:[#allocation77_spill] sm:$0xff] }
 0x4c7   :  { %vm1543_vm6 = vcmp.eq.f32.partialorder %v10507_v11, %v10506_v7  ;;  %v1908_v36 = vsel %vm8968_vm15, 1, %v10064_v31  ;;  %v2362_v47 = vadd.s32 %v2361_v28, %v2359_v45  ;;  %v3003_v35 = vcvt.s32.f32 %v3001_v60  ;;  %v2343_v9 = vpop.xlane.xlu1 %2342  ;;  %vm9036_vm15 = vmor %vm1413_vm1, %vm8997_vm13 }
 0x4c8   :  { %v4946_v13 = vadd.f32 -15.5, %v3635_v53  ;;  %v3638_v58 = vcvt.s32.f32 %v2310_v27  ;;  %v4948_v29 = vadd.f32 -15.5, %v3637_v32  ;;  %v2336_v26 = vadd.s32 %v2335_v0, %v2333_v48  ;;  %vm9020_vm10 = vmand %vm1543_vm6, %vm5766_vm2 }
 0x4c9   :  { %v3639_v2 = vcvt.s32.f32 %v2323_v23  ;;  %v3030_v40 = vcvt.s32.f32 %v3028_v43  ;;  %v3093_v60 = vshrl.u32 %v8974_v63, 16  ;;  %v3067_v57 = vshrl.u32 %v8961_v1, 16  ;;  %3005 = vadd.xlane.f32.xlu1 %v3003_v35  ;;  %vm9051_vm1 = vmor %vm1415_vm4, %vm9020_vm10 }
 0x4ca   :  { %v4058_v39 = vrot.slane %v4947_v10, %v6439_v16  ;;  %v2348_v61 = vshll.u32 %v2347_v15, 16  ;;  %v3640_v53 = vcvt.s32.f32 %v2336_v26  ;;  %v2346_v27 = vcvt.f32.s32 %v2343_v9  ;;  %v9041_v10 = vpop.xlane.xlu0 %3254  ;;  %vm10530_vm13 = vmmov %vm10522_vm14 }
 0x4cb   :  { %vm1544_vm3 = vcmp.eq.f32.partialorder %v10507_v11, %v10521_v5  ;;  %v4063_v43 = vrot.slane %v4948_v29, %v6487_v38  ;;  %v3642_v19 = vcvt.s32.f32 %v2362_v47  ;;  %3033 = vadd.xlane.f32.xlu0 %v3030_v40  ;;  %v9029_v0 = vsel %vm10522_vm14, %v1908_v36, 0  ;;  %v3216_v48 = vpop.xlane.xlu1 %3215 }
 0x4cc   :  { %v4054_v28 = vrot.slane %v4946_v13, %v6419_v37  ;;  %v4949_v45 = vadd.f32 -15.5, %v3638_v58  ;;  %v4951_v51 = vadd.f32 -15.5, %v3640_v53  ;;  %v2349_v30 = vadd.s32 %v2348_v61, %v2346_v27  ;;  %vm9062_vm12 = vmand %vm1544_vm3, %vm5810_vm0 }
 0x4cd   :  { %v1934_v15 = vsel %vm9009_vm5, 1, %v10064_v31  ;;  %vm1416_vm8 = vcmp.lt.f32.partialorder %v10507_v11, %v10521_v5  ;;  %v4950_v32 = vadd.f32 -15.5, %v3639_v2  ;;  %v3095_v36 = vcvt.s32.f32 %v3093_v60  ;;  %vm10533_vm3 = vmmov %vm10530_vm13 }
 0x4ce   :  { %v3641_v7 = vcvt.s32.f32 %v2349_v30  ;;  %v3069_v35 = vcvt.s32.f32 %v3067_v57  ;;  %v3106_v52 = vshrl.u32 %v9029_v0, 16  ;;  %vm10529_vm4 = vcmask 130112   ;;  %v9075_v60 = vpop.xlane.xlu0 %3228  ;;  %vm1812_vm6 = vmor %vm1416_vm8, %vm9062_vm12 }
 0x4cf   :  { %v4059_v13 = vsel %vm10529_vm4, %v4058_v39, %v4054_v28  ;;  %v4953_v58 = vadd.f32 -15.5, %v3642_v19  ;;  %v4077_v29 = vrot.slane %v4951_v51, %v6439_v16  ;;  %3098 = vadd.xlane.f32.xlu0 %v3095_v36  ;;  %v3404_v26 = vand.u32 65535, %v7955_v4  ;;  %v9086_v41 = vpop.xlane.xlu1 %3267  ;;  %vm10532_vm10 = vmmov %vm10529_vm4 }
 0x4d0   :  { %v4064_v33 = vsel %vm3947_vm7, %v4063_v43, %v4059_v13  ;;  %v1937_v2 = vsel %vm9036_vm15, 1, %v10064_v31  ;;  %v4068_v9 = vrot.slane %v4949_v45, %v6535_v62  ;;  %v4952_v40 = vadd.f32 -15.5, %v3641_v7  ;;  %3072 = vadd.xlane.f32.xlu1 %v3069_v35  ;;  %vm10534_vm14 = vmmov %vm10533_vm3  ;;  %v10542_v13 = vld [vmem:[#allocation32_spill] sm:$0xff] }
 0x4d1   :  { %v1939_v57 = vsel %vm9051_vm1, 1, %v10064_v31  ;;  %v4073_v4 = vrot.slane %v4950_v32, %v6419_v37  ;;  %v3341_v39 = vcvt.s32.f32 %v3339_v54  ;;  %v9091_v61 = vsel %vm10530_vm13, %v1934_v15, 0  ;;  %v10535_v15 = vld [vmem:[#allocation103_spill] sm:$0xff]  ;;  %vm10539_vm4 = vmmov %vm10533_vm3 }
 0x4d2   :  { %v4082_v53 = vrot.slane %v4952_v40, %v6487_v38  ;;  %v3108_v27 = vcvt.s32.f32 %v3106_v52  ;;  %vm10531_vm5 = vcmask 261312   ;;  %v3378_v19 = vand.u32 65535, %v7900_v49  ;;  %v9102_v54 = vpop.xlane.xlu0 %3306 }
 0x4d3   :  { %v4069_v43 = vsel %vm10531_vm5, %v4068_v9, %v4064_v33  ;;  %v4087_v5 = vrot.slane %v4953_v58, %v6535_v62  ;;  %3343 = vadd.xlane.f32.xlu0 %v3341_v39  ;;  %v3406_v23 = vcvt.s32.f32 %v3404_v26  ;;  %v4078_v28 = vsel %vm10532_vm10, %v4077_v29, %v4073_v4  ;;  %v9111_v32 = vpop.xlane.xlu1 %3280  ;;  %vm10536_vm1 = vmmov %vm10531_vm5  ;;  %v10543_v29 = vld [vmem:[#allocation102_spill] sm:$0xff]  ;;  %v10549_v4 = vld [vmem:[#allocation31_spill] sm:$0xff] }
 0x4d4   :  { %v9099_v45 = vsel %vm10533_vm3, %v1937_v2, 0  ;;  %v1940_v12 = vsel %vm1812_vm6, 1, %v10064_v31  ;;  %3111 = vadd.xlane.f32.xlu1 %v3108_v27  ;;  %v4083_v51 = vsel %vm3947_vm7, %v4082_v53, %v4078_v28  ;;  %v3444_v30 = vshrl.u32 %v9091_v61, 16  ;;  %vm9119_vm6 = vmpackc.low %vm10539_vm4, %vm10539_vm4  ;;  %v10550_v39 = vld [vmem:[#allocation26_spill] sm:$0xff] }
 0x4d5   :  { %v9107_v49 = vsel %vm10534_vm14, %v1939_v57, 0  ;;  %vm1510_vm15 = vcmp.eq.f32.partialorder %v10435_v55, %v10535_v15  ;;  %v3218_v3 = vcvt.f32.s32 %v3216_v48  ;;  %v4088_v36 = vsel %vm10536_vm1, %v4087_v5, %v4083_v51  ;;  %vm10544_vm5 = vmmov %vm10533_vm3  ;;  %v10545_v48 = vld [vmem:[#allocation30_spill] sm:$0xff] }
 0x4d6   :  { %vm10537_vm8 = vcmask 1046534   ;;  %vm10538_vm12 = vcmask 1047559   ;;  %v3380_v35 = vcvt.s32.f32 %v3378_v19  ;;  %v3417_v58 = vand.u32 65535, %v10542_v13  ;;  %vm9136_vm3 = vmand %vm1510_vm15, %vm5870_vm9  ;;  %v3214_v2 = vpop.xlane.xlu0 %3213 }
 0x4d7   :  { %v4252_v47 = vsel %vm10537_vm8, %v4069_v43, %v8956_v21  ;;  %vm1513_vm13 = vcmp.eq.f32.partialorder %v10486_v44, %v10543_v29  ;;  %3408 = vadd.xlane.f32.xlu0 %v3406_v23  ;;  %v3483_v21 = vshrl.u32 %v9099_v45, 16  ;;  %vm1382_vm10 = vcmp.lt.f32.partialorder %v10435_v55, %v10535_v15  ;;  %vm10548_vm14 = vmmov %vm10539_vm4  ;;  %v9149_v19 = vpop.xlane.xlu1 %3319 }
 0x4d8   :  { %v4254_v7 = vsel %vm10538_vm12, %v4088_v36, %v4252_v47  ;;  %3382 = vadd.xlane.f32.xlu1 %v3380_v35  ;;  %v3446_v9 = vcvt.s32.f32 %v3444_v30  ;;  %v3509_v40 = vshrl.u32 %v9107_v49, 16  ;;  %v9142_v57 = vsel %vm10548_vm14, %v1940_v12, 0  ;;  %vm9156_vm15 = vmand %vm1513_vm13, %vm5796_vm11 }
 0x4d9   :  { %5098 = vmatprep.mubr.msk.f32.mxu1 %vm10544_vm5, %v4254_v7  ;;  %v5108_v26 = vpack.c.bf16 %v10545_v48, %v4254_v7  ;;  %vm1515_vm1 = vcmp.eq.f32.partialorder %v10550_v39, %v10549_v4  ;;  %v3257_v53 = vcvt.f32.s32 %v9041_v10  ;;  %v3219_v27 = vshll.u32 %v3218_v3, 16  ;;  %vm9170_vm12 = vmor %vm1382_vm10, %vm9136_vm3 }
 0x4da   :  { %v3217_v43 = vcvt.f32.s32 %v3214_v2  ;;  %v3205_v23 = vcvt.f32.s32 %v9001_v14  ;;  %v3419_v10 = vcvt.s32.f32 %v3417_v58  ;;  %vm1385_vm8 = vcmp.lt.f32.partialorder %v10486_v44, %v10543_v29  ;;  %vm9181_vm13 = vmand %vm1515_vm1, %vm5766_vm2  ;;  %v3253_v51 = vpop.xlane.xlu0 %3252 }
 0x4db   :  { %5110 = vmatprep.subr.msk.bf16.mxu1 %vm9119_vm6, %v5108_v26  ;;  %3449 = vadd.xlane.f32.xlu0 %v3446_v9  ;;  %vm1387_vm4 = vcmp.lt.f32.partialorder %v10550_v39, %v10549_v4  ;;  %v3485_v55 = vcvt.s32.f32 %v3483_v21  ;;  %v3522_v30 = vshrl.u32 %v9142_v57, 16  ;;  %v3258_v15 = vshll.u32 %v3257_v53, 16  ;;  %v3201_v36 = vpop.xlane.xlu1 %3200  ;;  %vm1781_vm5 = vmor %vm1385_vm8, %vm9156_vm15  ;;  %v10559_v21 = vld [vmem:[#allocation29_spill] sm:$0xff] }
 0x4dc   :  { %5113 = vmatpush3.bf16.xpose.msk.msra.mxu1 %vm9119_vm6, %v5108_v26  ;;  %v3220_v12 = vadd.s32 %v3219_v27, %v3217_v43  ;;  %3421 = vadd.xlane.f32.xlu1 %v3419_v10  ;;  %v3256_v3 = vcvt.f32.s32 %v3253_v51  ;;  %v3511_v47 = vcvt.s32.f32 %v3509_v40  ;;  %v2975_v7 = vand.u32 65535, %v8686_v18  ;;  %vm9200_vm10 = vmor %vm1387_vm4, %vm9181_vm13  ;;  %v10568_v18 = vld [vmem:[#allocation21_spill] sm:$0xff] }
 0x4dd   :  { %v1906_v35 = vsel %vm9170_vm12, 1, %v10064_v31  ;;  %v3206_v13 = vshll.u32 %v3205_v23, 16  ;;  %v3204_v26 = vcvt.f32.s32 %v3201_v36  ;;  %vm1516_vm3 = vcmp.eq.f32.partialorder %v10550_v39, %v10559_v21  ;;  %vm10560_vm1 = vmmov %vm10548_vm14 }
 0x4de   :  { %v3708_v58 = vcvt.s32.f32 %v3220_v12  ;;  %v3259_v29 = vadd.s32 %v3258_v15, %v3256_v3  ;;  %v3040_v33 = vand.u32 65535, %v8739_v20  ;;  %v9207_v9 = vpop.xlane.xlu0 %3293  ;;  %v3524_v40 = vcvt.s32.f32 %v3522_v30  ;;  %vm1656_vm8 = vmand %vm1516_vm3, %vm5810_vm0 }
 0x4df   :  { %3514 = vadd.xlane.f32.xlu0 %v3511_v47  ;;  %v3207_v2 = vadd.s32 %v3206_v13, %v3204_v26  ;;  %v3014_v53 = vand.u32 65535, %v8665_v17  ;;  %v1909_v4 = vsel %vm1781_vm5, 1, %v10064_v31  ;;  %v3270_v27 = vcvt.f32.s32 %v9086_v41  ;;  %v9214_v43 = vpop.xlane.xlu1 %3241  ;;  %vm10562_vm13 = vmmov %vm10560_vm1  ;;  %v10566_v26 = vld [vmem:[#allocation74_spill] sm:$0xff] }
 0x4e0   :  { %3488 = vadd.xlane.f32.xlu1 %v3485_v55  ;;  %v2977_v5 = vcvt.s32.f32 %v2975_v7  ;;  %v9217_v23 = vsel %vm10560_vm1, %v1906_v35, 0  ;;  %v1911_v20 = vsel %vm9200_vm10, 1, %v10064_v31  ;;  %vm1388_vm15 = vcmp.lt.f32.partialorder %v10550_v39, %v10559_v21  ;;  %vm10563_vm10 = vmmov %vm10560_vm1 }
 0x4e1   :  { %v5019_v17 = vadd.f32 -15.5, %v3708_v58  ;;  %v3707_v41 = vcvt.s32.f32 %v3207_v2  ;;  %v3042_v10 = vcvt.s32.f32 %v3040_v33  ;;  %v3016_v14 = vcvt.s32.f32 %v3014_v53  ;;  %vm1784_vm5 = vmor %vm1388_vm15, %vm1656_vm8 }
 0x4e2   :  { %v9233_v12 = vpop.xlane.xlu0 %3358  ;;  %v3080_v51 = vshrl.u32 %v9217_v23, 16  ;;  %v9237_v55 = vsel %vm10562_vm13, %v1909_v4, 0  ;;  %v3231_v30 = vcvt.f32.s32 %v9075_v60  ;;  %v3271_v15 = vshll.u32 %v3270_v27, 16 }
 0x4e3   :  { %5099 = vmatmul.mubr.msk.f32.vlgmr.msra.gmra.mrb[0].mxu1 %vm10548_vm14, %v10545_v48  ;;  %v10561_v48 = vld [vmem:[#allocation75_spill] sm:$0xff]  ;;  %2979 = vadd.xlane.f32.xlu0 %v2977_v5  ;;  %v5018_v28 = vadd.f32 -15.5, %v3707_v41  ;;  %v3266_v3 = vpop.xlane.xlu1 %3265  ;;  %v3053_v36 = vand.u32 65535, %v8733_v46  ;;  %v9242_v47 = vsel %vm10563_vm10, %v1911_v20, 0  ;;  %v4564_v35 = vrot.slane %v5019_v17, %v6439_v16 }
 0x4e4   :  { %vm1414_vm12 = vcmp.lt.f32.partialorder %v10450_v34, %v10561_v48  ;;  %vm1542_vm4 = vcmp.eq.f32.partialorder %v10450_v34, %v10561_v48  ;;  %3527 = vadd.xlane.f32.xlu1 %v3524_v40  ;;  %v3711_v13 = vcvt.s32.f32 %v3259_v29  ;;  %v3269_v58 = vcvt.f32.s32 %v3266_v3  ;;  %v10567_v46 = vld [vmem:[#allocation79_spill] sm:$0xff] }
 0x4e5   :  { %vm9249_vm3 = vmand %vm1542_vm4, %vm5870_vm9  ;;  %v4560_v60 = vrot.slane %v5018_v28, %v6419_v37  ;;  %vm1545_vm14 = vcmp.eq.f32.partialorder %v10507_v11, %v10566_v26  ;;  %vm1547_vm1 = vcmp.eq.f32.partialorder %v10568_v18, %v10567_v46  ;;  %v3119_v21 = vshrl.u32 %v9237_v55, 16 }
 0x4e6   :  { %v1912_v33 = vsel %vm1784_vm5, 1, %v10064_v31  ;;  %vm10569_vm15 = vcmask 130112   ;;  %v3272_v40 = vadd.s32 %v3271_v15, %v3269_v58  ;;  %v3227_v53 = vpop.xlane.xlu0 %3226  ;;  %v3082_v29 = vcvt.s32.f32 %v3080_v51  ;;  %vm9267_vm8 = vmor %vm1414_vm12, %vm9249_vm3 }
 0x4e7   :  { %3044 = vadd.xlane.f32.xlu0 %v3042_v10  ;;  %v4565_v2 = vsel %vm10569_vm15, %v4564_v35, %v4560_v60  ;;  %v3232_v27 = vshll.u32 %v3231_v30, 16  ;;  %v3309_v5 = vcvt.f32.s32 %v9102_v54  ;;  %v3230_v20 = vcvt.f32.s32 %v3227_v53  ;;  %v9272_v17 = vpop.xlane.xlu1 %3332  ;;  %vm9282_vm12 = vmand %vm1545_vm14, %vm5796_vm11 }
 0x4e8   :  { %3018 = vadd.xlane.f32.xlu1 %v3016_v14  ;;  %v3145_v41 = vshrl.u32 %v9242_v47, 16  ;;  %vm1417_vm4 = vcmp.lt.f32.partialorder %v10507_v11, %v10566_v26  ;;  %v5022_v48 = vadd.f32 -15.5, %v3711_v13  ;;  %v3712_v10 = vcvt.s32.f32 %v3272_v40  ;;  %vm9293_vm5 = vmand %vm1547_vm1, %vm5766_vm2 }
 0x4e9   :  { %v3055_v54 = vcvt.s32.f32 %v3053_v36  ;;  %vm1419_vm13 = vcmp.lt.f32.partialorder %v10568_v18, %v10567_v46  ;;  %v3233_v14 = vadd.s32 %v3232_v27, %v3230_v20  ;;  %v3391_v51 = vand.u32 65535, %v8779_v6  ;;  %vm9309_vm2 = vmor %vm1417_vm4, %vm9282_vm12 }
 0x4ea   :  { %v9299_v30 = vsel %vm10563_vm10, %v1912_v33, 0  ;;  %v1938_v15 = vsel %vm9267_vm8, 1, %v10064_v31  ;;  %v5023_v3 = vadd.f32 -15.5, %v3712_v10  ;;  %v3305_v59 = vpop.xlane.xlu0 %3304  ;;  %v3121_v36 = vcvt.s32.f32 %v3119_v21  ;;  %vm9320_vm3 = vmor %vm1419_vm13, %vm9293_vm5 }
 0x4eb   :  { %3085 = vadd.xlane.f32.xlu0 %v3082_v29  ;;  %v3310_v6 = vshll.u32 %v3309_v5, 16  ;;  %v3709_v35 = vcvt.s32.f32 %v3233_v14  ;;  %v3308_v13 = vcvt.f32.s32 %v3305_v59  ;;  %v9313_v60 = vpop.xlane.xlu1 %3371  ;;  %v3147_v58 = vcvt.s32.f32 %v3145_v41  ;;  %v10580_v29 = vld [vmem:[#allocation76_spill] sm:$0xff]  ;;  %vm10581_vm1 = vmmov %vm10569_vm15 }
 0x4ec   :  { %3057 = vadd.xlane.f32.xlu1 %v3055_v54  ;;  %v3283_v26 = vcvt.f32.s32 %v9111_v32  ;;  %v4579_v33 = vrot.slane %v5022_v48, %v6419_v37  ;;  %v4583_v40 = vrot.slane %v5023_v3, %v6439_v16  ;;  %v3158_v53 = vshrl.u32 %v9299_v30, 16  ;;  %vm10582_vm8 = vmmov %vm10563_vm10 }
 0x4ed   :  { %vm1548_vm14 = vcmp.eq.f32.partialorder %v10568_v18, %v10580_v29  ;;  %v5020_v4 = vadd.f32 -15.5, %v3709_v35  ;;  %v3311_v27 = vadd.s32 %v3310_v6, %v3308_v13  ;;  %v3393_v5 = vcvt.s32.f32 %v3391_v51  ;;  %v10583_v6 = vld [vmem:[#allocation28_spill] sm:$0xff]  ;;  %vm10584_vm13 = vmmov %vm10582_vm8 }
 0x4ee   :  { %v1941_v46 = vsel %vm9309_vm2, 1, %v10064_v31  ;;  %v4584_v20 = vsel %vm10581_vm1, %v4583_v40, %v4579_v33  ;;  %v9334_v32 = vpop.xlane.xlu0 %3345  ;;  %v3456_v41 = vand.u32 65535, %v8799_v50  ;;  %v3430_v34 = vand.u32 65535, %v8790_v56  ;;  %vm1688_vm4 = vmand %vm1548_vm14, %vm5810_vm0 }
 0x4ef   :  { %3150 = vadd.xlane.f32.xlu0 %v3147_v58  ;;  %vm1420_vm15 = vcmp.lt.f32.partialorder %v10568_v18, %v10580_v29  ;;  %v1943_v48 = vsel %vm9320_vm3, 1, %v10064_v31  ;;  %v4569_v10 = vrot.slane %v5020_v4, %v6487_v38  ;;  %v3279_v54 = vpop.xlane.xlu1 %3278  ;;  %v9345_v28 = vsel %vm10582_vm8, %v1938_v15, 0  ;;  %vm10585_vm5 = vmmov %vm10582_vm8 }
 0x4f0   :  { %3124 = vadd.xlane.f32.xlu1 %v3121_v36  ;;  %v3284_v56 = vshll.u32 %v3283_v26, 16  ;;  %v3322_v50 = vcvt.f32.s32 %v9149_v19  ;;  %v3282_v14 = vcvt.f32.s32 %v3279_v54  ;;  %v3160_v51 = vcvt.s32.f32 %v3158_v53  ;;  %vm1816_vm0 = vmor %vm1420_vm15, %vm1688_vm4  ;;  %v10586_v54 = vld [vmem:[#allocation27_spill] sm:$0xff] }
 0x4f1   :  { %v9354_v3 = vsel %vm3947_vm7, %v4569_v10, %v4565_v2  ;;  %v3458_v15 = vcvt.s32.f32 %v3456_v41  ;;  %v3432_v7 = vcvt.s32.f32 %v3430_v34  ;;  %v3469_v22 = vand.u32 65535, %v8809_v42  ;;  %vm10587_vm14 = vmmov %vm10585_vm5 }
 0x4f2   :  { %v3285_v59 = vadd.s32 %v3284_v56, %v3282_v14  ;;  %v9356_v36 = vpop.xlane.xlu0 %3410  ;;  %vm1514_vm12 = vcmp.eq.f32.partialorder %v10486_v44, %v10583_v6  ;;  %v3496_v2 = vshrl.u32 %v9345_v28, 16  ;;  %v9366_v35 = vsel %vm10584_vm13, %v1943_v48, 0  ;;  %vm10590_vm13 = vmmov %vm10585_vm5 }
 0x4f3   :  { %3395 = vadd.xlane.f32.xlu0 %v3393_v5  ;;  %v3318_v19 = vpop.xlane.xlu1 %3317  ;;  %v9369_v13 = vsel %vm10585_vm5, %v1941_v46, 0  ;;  %v3323_v58 = vshll.u32 %v3322_v50, 16  ;;  %v3715_v21 = vcvt.s32.f32 %v3311_v27  ;;  %v1944_v33 = vsel %vm1816_vm0, 1, %v10064_v31  ;;  %vm1654_vm2 = vmand %vm1514_vm12, %vm5870_vm9 }
 0x4f4   :  { %3163 = vadd.xlane.f32.xlu1 %v3160_v51  ;;  %v3713_v26 = vcvt.s32.f32 %v3285_v59  ;;  %v3321_v42 = vcvt.f32.s32 %v3318_v19  ;;  %vm1386_vm10 = vcmp.lt.f32.partialorder %v10486_v44, %v10583_v6  ;;  %v3498_v27 = vcvt.s32.f32 %v3496_v2 }
 0x4f5   :  { %v3561_v5 = vshrl.u32 %v9366_v35, 16  ;;  %v3535_v46 = vshrl.u32 %v9369_v13, 16  ;;  %v5026_v41 = vadd.f32 -15.5, %v3715_v21  ;;  %v3471_v10 = vcvt.s32.f32 %v3469_v22  ;;  %vm1782_vm1 = vmor %vm1386_vm10, %vm1654_vm2 }
 0x4f6   :  { %v5024_v40 = vadd.f32 -15.5, %v3713_v26  ;;  %v3324_v53 = vadd.s32 %v3323_v58, %v3321_v42  ;;  %v9372_v29 = vpop.xlane.xlu0 %2786  ;;  %vm1517_vm3 = vcmp.eq.f32.partialorder %v10550_v39, %v10586_v54  ;;  %v9389_v56 = vsel %vm10587_vm14, %v1944_v33, 0  ;;  %v10589_v42 = vld [vmem:[#allocation80_spill] sm:$0xff] }
 0x4f7   :  { %3460 = vadd.xlane.f32.xlu0 %v3458_v15  ;;  %v9381_v4 = vpop.xlane.xlu1 %3384  ;;  %v3563_v59 = vcvt.s32.f32 %v3561_v5  ;;  %v3537_v15 = vcvt.s32.f32 %v3535_v46  ;;  %vm1389_vm15 = vcmp.lt.f32.partialorder %v10550_v39, %v10586_v54  ;;  %vm1657_vm8 = vmand %vm1517_vm3, %vm5796_vm11  ;;  %v4598_v22 = vrot.slane %v5026_v41, %v6419_v37 }
 0x4f8   :  { %3434 = vadd.xlane.f32.xlu1 %v3432_v7  ;;  %v4588_v34 = vrot.slane %v5024_v40, %v6487_v38  ;;  %v3716_v48 = vcvt.s32.f32 %v3324_v53  ;;  %v3027_v7 = vand.u32 65535, %v8926_v24  ;;  %v3574_v6 = vshrl.u32 %v9389_v56, 16  ;;  %vm1785_vm0 = vmor %vm1389_vm15, %vm1657_vm8 }
 0x4f9   :  { %v1910_v19 = vsel %vm1782_vm1, 1, %v10064_v31  ;;  %vm10588_vm4 = vcmask 130112   ;;  %v3092_v26 = vand.u32 65535, %v8974_v63  ;;  %vm1546_vm12 = vcmp.eq.f32.partialorder %v10507_v11, %v10589_v42  ;;  %vm10592_vm1 = vmmov %vm10590_vm13 }
 0x4fa   :  { %v9392_v44 = vsel %vm3947_vm7, %v4588_v34, %v4584_v20  ;;  %v5027_v50 = vadd.f32 -15.5, %v3716_v48  ;;  %v9394_v14 = vpop.xlane.xlu0 %2838  ;;  %v3029_v21 = vcvt.s32.f32 %v3027_v7  ;;  %v3576_v33 = vcvt.s32.f32 %v3574_v6  ;;  %vm1686_vm2 = vmand %vm1546_vm12, %vm5870_vm9 }
 0x4fb   :  { %3501 = vadd.xlane.f32.xlu0 %v3498_v27  ;;  %v9396_v51 = vpop.xlane.xlu1 %3423  ;;  %v3066_v40 = vand.u32 65535, %v8961_v1  ;;  %v9419_v53 = vsel %vm10590_vm13, %v1910_v19, 0  ;;  %v10591_v27 = vld [vmem:[#allocation78_spill] sm:$0xff]  ;;  %v1913_v5 = vsel %vm1785_vm0, 1, %v10064_v31  ;;  %vm1418_vm10 = vcmp.lt.f32.partialorder %v10507_v11, %v10589_v42  ;;  %vm10595_vm13 = vmmov %vm10592_vm1 }
 0x4fc   :  { %3473 = vadd.xlane.f32.xlu1 %v3471_v10  ;;  %v4602_v20 = vrot.slane %v5027_v50, %v6439_v16  ;;  %vm1549_vm5 = vcmp.eq.f32.partialorder %v10568_v18, %v10591_v27  ;;  %v3094_v1 = vcvt.s32.f32 %v3092_v26  ;;  %v3132_v41 = vshrl.u32 %v9419_v53, 16  ;;  %vm1814_vm15 = vmor %vm1418_vm10, %vm1686_vm2 }
 0x4fd   :  { %v3068_v34 = vcvt.s32.f32 %v3066_v40  ;;  %v3105_v48 = vand.u32 65535, %v9029_v0  ;;  %vm1421_vm3 = vcmp.lt.f32.partialorder %v10568_v18, %v10591_v27  ;;  %vm1689_vm14 = vmand %vm1549_vm5, %vm5796_vm11  ;;  %v9437_v10 = vsel %vm10592_vm1, %v1913_v5, 0 }
 0x4fe   :  { %v9408_v2 = vsel %vm10588_vm4, %v4602_v20, %v4598_v22  ;;  %v9410_v58 = vpop.xlane.xlu0 %2812  ;;  %v2789_v11 = vcvt.f32.s32 %v9372_v29  ;;  %v3443_v0 = vand.u32 65535, %v9091_v61  ;;  %vm1817_vm8 = vmor %vm1421_vm3, %vm1689_vm14  ;;  %v3171_v8 = vshrl.u32 %v9437_v10, 16  ;;  %v10593_v20 = vld [vmem:[#allocation6_spill] sm:$0xff] }
 0x4ff   :  { %3566 = vadd.xlane.f32.xlu0 %v3563_v59  ;;  %v9412_v24 = vpop.xlane.xlu1 %2799  ;;  %v3134_v59 = vcvt.s32.f32 %v3132_v41  ;;  %v3107_v7 = vcvt.s32.f32 %v3105_v48  ;;  %v1942_v22 = vsel %vm1814_vm15, 1, %v10064_v31  ;;  %vm1518_vm11 = vcmp.eq.f32.partialorder %v10550_v39, %v10593_v20  ;;  %vm10594_vm4 = vmmov %vm10592_vm1 }
 0x500   :  { %3540 = vadd.xlane.f32.xlu1 %v3537_v15  ;;  %v2790_v6 = vshll.u32 %v2789_v11, 16  ;;  %v3508_v19 = vand.u32 65535, %v9107_v49  ;;  %v3445_v42 = vcvt.s32.f32 %v3443_v0  ;;  %v2802_v40 = vcvt.f32.s32 %v9412_v24  ;;  %vm1658_vm12 = vmand %vm1518_vm11, %vm5870_vm9 }
 0x501   :  { %v3173_v5 = vcvt.s32.f32 %v3171_v8  ;;  %vm1390_vm0 = vcmp.lt.f32.partialorder %v10550_v39, %v10593_v20  ;;  %v3521_v24 = vand.u32 65535, %v9142_v57  ;;  %v2841_v41 = vcvt.f32.s32 %v9394_v14  ;;  %vm10596_vm10 = vmmov %vm10592_vm1 }
 0x502   :  { %v9424_v46 = vpop.xlane.xlu0 %2890  ;;  %vm1786_vm5 = vmor %vm1390_vm0, %vm1658_vm12  ;;  %vm10598_vm14 = vcmask 130112   ;;  %vm10604_vm12 = vcmask 1041409  }
 0x503   :  { %3031 = vadd.xlane.f32.xlu0 %v3029_v21  ;;  %v2852_v63 = vpop.xlane.xlu1 %2851  ;;  %v1945_v21 = vsel %vm1817_vm8, 1, %v10064_v31  ;;  %v3523_v57 = vcvt.s32.f32 %v3521_v24  ;;  %v1914_v14 = vsel %vm1786_vm5, 1, %v10064_v31  ;;  %v3144_v24 = vand.u32 65535, %v9242_v47  ;;  %vm10599_vm15 = vmmov %vm10598_vm14 }
 0x504   :  { %3579 = vadd.xlane.f32.xlu1 %v3576_v33  ;;  %v2854_v61 = vcvt.f32.s32 %v2852_v63  ;;  %v3482_v33 = vand.u32 65535, %v9099_v45  ;;  %v3510_v45 = vcvt.s32.f32 %v3508_v19  ;;  %v9467_v63 = vsel %vm10595_vm13, %v1945_v21, 0  ;;  %vm10600_vm8 = vmmov %vm10594_vm4 }
 0x505   :  { %v3587_v20 = vshrl.u32 %v9467_v63, 16  ;;  %vm10601_vm11 = vmmov %vm10598_vm14 }
 0x506   :  { %v2785_v54 = vpop.xlane.xlu0 %2784  ;;  %vm10605_vm13 = vmmov %vm10601_vm11 }
 0x507   :  { %3096 = vadd.xlane.f32.xlu0 %v3094_v1  ;;  %v9440_v50 = vpop.xlane.xlu1 %2864  ;;  %v2788_v15 = vcvt.f32.s32 %v2785_v54  ;;  %v9456_v1 = vsel %vm10594_vm4, %v1942_v22, 0  ;;  %vm10602_vm4 = vcmask 261312  }
 0x508   :  { %3070 = vadd.xlane.f32.xlu1 %v3068_v34  ;;  %v2855_v34 = vshll.u32 %v2854_v61, 16  ;;  %v3548_v54 = vshrl.u32 %v9456_v1, 16  ;;  %v3079_v61 = vand.u32 65535, %v9217_v23  ;;  %v3589_v23 = vcvt.s32.f32 %v3587_v20  ;;  %vm10603_vm0 = vmmov %vm10602_vm4 }
 0x509   :  { %v2791_v27 = vadd.s32 %v2790_v6, %v2788_v15  ;;  %v3484_v15 = vcvt.s32.f32 %v3482_v33  ;;  %v2842_v6 = vshll.u32 %v2841_v41, 16  ;;  %v2815_v41 = vcvt.f32.s32 %v9410_v58  ;;  %vm10606_vm5 = vmmov %vm10603_vm0 }
 0x50a   :  { %v9447_v29 = vpop.xlane.xlu0 %2825  ;;  %v3550_v21 = vcvt.s32.f32 %v3548_v54  ;;  %v9484_v54 = vsel %vm10596_vm10, %v1914_v14, 0  ;;  %v2893_v14 = vcvt.f32.s32 %v9424_v46  ;;  %vm10607_vm10 = vmmov %vm10603_vm0 }
 0x50b   :  { %3137 = vadd.xlane.f32.xlu0 %v3134_v59  ;;  %v9451_v26 = vpop.xlane.xlu1 %2903  ;;  %v2803_v59 = vshll.u32 %v2802_v40, 16  ;;  %v3675_v39 = vcvt.s32.f32 %v2791_v27  ;;  %v2816_v20 = vshll.u32 %v2815_v41, 16 }
 0x50c   :  { %3109 = vadd.xlane.f32.xlu1 %v3107_v7  ;;  %v2894_v25 = vshll.u32 %v2893_v14, 16 }
 0x50e   :  { %v2850_v49 = vpop.xlane.xlu0 %2849 }
 0x50f   :  { %3447 = vadd.xlane.f32.xlu0 %v3445_v42  ;;  %v2853_v48 = vcvt.f32.s32 %v2850_v49  ;;  %v2798_v11 = vpop.xlane.xlu1 %2797  ;;  %v4986_v42 = vadd.f32 -15.5, %v3675_v39 }
 0x510   :  { %3176 = vadd.xlane.f32.xlu1 %v3173_v5  ;;  %v2801_v0 = vcvt.f32.s32 %v2798_v11  ;;  %v3081_v11 = vcvt.s32.f32 %v3079_v61  ;;  %v2867_v61 = vcvt.f32.s32 %v9440_v50 }
 0x511   :  { %v2856_v7 = vadd.s32 %v2855_v34, %v2853_v48  ;;  %v3118_v34 = vand.u32 65535, %v9237_v55 }
 0x512   :  { %v2804_v8 = vadd.s32 %v2803_v59, %v2801_v0  ;;  %v9471_v22 = vpop.xlane.xlu0 %2916  ;;  %v4408_v59 = vrot.slane %v4986_v42, %v6419_v37 }
 0x513   :  { %3512 = vadd.xlane.f32.xlu0 %v3510_v45  ;;  %v2837_v19 = vpop.xlane.xlu1 %2836  ;;  %v3680_v40 = vcvt.s32.f32 %v2856_v7  ;;  %v10597_v7 = vld [vmem:[#allocation81_spill] sm:$0xff] }
 0x514   :  { %3486 = vadd.xlane.f32.xlu1 %v3484_v15  ;;  %v3676_v27 = vcvt.s32.f32 %v2804_v8  ;;  %v2840_v33 = vcvt.f32.s32 %v2837_v19  ;;  %vm1422_vm2 = vcmp.lt.f32.partialorder %v10568_v18, %v10597_v7  ;;  %vm1550_vm3 = vcmp.eq.f32.partialorder %v10568_v18, %v10597_v7 }
 0x515   :  { %v4991_v39 = vadd.f32 -15.5, %v3680_v40  ;;  %v3146_v8 = vcvt.s32.f32 %v3144_v24  ;;  %vm1690_vm1 = vmand %vm1550_vm3, %vm5870_vm9  ;;  %v3495_v24 = vand.u32 65535, %v9345_v28 }
 0x516   :  { %v4987_v5 = vadd.f32 -15.5, %v3676_v27  ;;  %v2843_v49 = vadd.s32 %v2842_v6, %v2840_v33  ;;  %v9476_v45 = vpop.xlane.xlu0 %2955  ;;  %v3157_v27 = vand.u32 65535, %v9299_v30  ;;  %vm1818_vm9 = vmor %vm1422_vm2, %vm1690_vm1  ;;  %v2868_v30 = vshll.u32 %v2867_v61, 16 }
 0x517   :  { %3553 = vadd.xlane.f32.xlu0 %v3550_v21  ;;  %v9481_v48 = vpop.xlane.xlu1 %2877  ;;  %v3184_v21 = vshrl.u32 %v9484_v54, 16  ;;  %v4431_v42 = vrot.slane %v4991_v39, %v6439_v16  ;;  %vm10608_vm2 = vmmov %vm10604_vm12  ;;  %vm10611_vm1 = vcmask 1042434  }
 0x518   :  { %3525 = vadd.xlane.f32.xlu1 %v3523_v57  ;;  %v4412_v0 = vrot.slane %v4987_v5, %v6439_v16  ;;  %v3679_v15 = vcvt.s32.f32 %v2843_v49  ;;  %v3120_v57 = vcvt.s32.f32 %v3118_v34  ;;  %v3534_v49 = vand.u32 65535, %v9369_v13  ;;  %vm10609_vm3 = vmmov %vm10601_vm11 }
 0x519   :  { %v3159_v39 = vcvt.s32.f32 %v3157_v27  ;;  %v1946_v13 = vsel %vm1818_vm9, 1, %v10064_v31  ;;  %vm10613_vm9 = vmmov %vm10603_vm0 }
 0x51a   :  { %v4413_v55 = vsel %vm10598_vm14, %v4412_v0, %v4408_v59  ;;  %v4990_v47 = vadd.f32 -15.5, %v3679_v15  ;;  %v2811_v58 = vpop.xlane.xlu0 %2810  ;;  %v3536_v18 = vcvt.s32.f32 %v3534_v49  ;;  %v9520_v31 = vsel %vm10600_vm8, %v1946_v13, 0  ;;  %vm10610_vm14 = vmmov %vm10603_vm0 }
 0x51b   :  { %3083 = vadd.xlane.f32.xlu0 %v3081_v11  ;;  %v2814_v6 = vcvt.f32.s32 %v2811_v58  ;;  %v9494_v19 = vpop.xlane.xlu1 %2942  ;;  %v3186_v11 = vcvt.s32.f32 %v3184_v21  ;;  %vm10614_vm8 = vmmov %vm10611_vm1 }
 0x51c   :  { %3592 = vadd.xlane.f32.xlu1 %v3589_v23  ;;  %v4427_v40 = vrot.slane %v4990_v47, %v6419_v37  ;;  %v2906_v23 = vcvt.f32.s32 %v9451_v26  ;;  %v3560_v26 = vand.u32 65535, %v9366_v35  ;;  %v2828_v35 = vcvt.f32.s32 %v9447_v29 }
 0x51d   :  { %v2817_v33 = vadd.s32 %v2816_v20, %v2814_v6  ;;  %v3547_v29 = vand.u32 65535, %v9456_v1 }
 0x51e   :  { %v4432_v46 = vsel %vm10599_vm15, %v4431_v42, %v4427_v40  ;;  %v2889_v5 = vpop.xlane.xlu0 %2888  ;;  %v2907_v20 = vshll.u32 %v2906_v23, 16  ;;  %v3562_v49 = vcvt.s32.f32 %v3560_v26  ;;  %v2919_v23 = vcvt.f32.s32 %v9471_v22  ;;  %vm10612_vm15 = vmmov %vm10609_vm3 }
 0x51f   :  { %3148 = vadd.xlane.f32.xlu0 %v3146_v8  ;;  %v3677_v50 = vcvt.s32.f32 %v2817_v33  ;;  %v2892_v34 = vcvt.f32.s32 %v2889_v5  ;;  %v2863_v41 = vpop.xlane.xlu1 %2862  ;;  %v3497_v8 = vcvt.s32.f32 %v3495_v24  ;;  %v3183_v22 = vand.u32 65535, %v9484_v54 }
 0x520   :  { %3122 = vadd.xlane.f32.xlu1 %v3120_v57  ;;  %v2866_v59 = vcvt.f32.s32 %v2863_v41  ;;  %v3573_v57 = vand.u32 65535, %v9389_v56  ;;  %v3131_v56 = vand.u32 65535, %v9419_v53 }
 0x521   :  { %v4988_v0 = vadd.f32 -15.5, %v3677_v50  ;;  %v2895_v15 = vadd.s32 %v2894_v25, %v2892_v34  ;;  %v3600_v50 = vshrl.u32 %v9520_v31, 16  ;;  %v3185_v54 = vcvt.s32.f32 %v3183_v22 }
 0x522   :  { %v2869_v28 = vadd.s32 %v2868_v30, %v2866_v59  ;;  %v9511_v47 = vpop.xlane.xlu0 %2929  ;;  %v3575_v5 = vcvt.s32.f32 %v3573_v57  ;;  %v3133_v53 = vcvt.s32.f32 %v3131_v56  ;;  %v2829_v30 = vshll.u32 %v2828_v35, 16 }
 0x523   :  { %3189 = vadd.xlane.f32.xlu0 %v3186_v11  ;;  %v4417_v7 = vrot.slane %v4988_v0, %v6487_v38  ;;  %v2902_v58 = vpop.xlane.xlu1 %2901  ;;  %v3683_v14 = vcvt.s32.f32 %v2895_v15  ;;  %v3170_v0 = vand.u32 65535, %v9437_v10  ;;  %v2880_v15 = vcvt.f32.s32 %v9481_v48 }
 0x524   :  { %3161 = vadd.xlane.f32.xlu1 %v3159_v39  ;;  %v3681_v6 = vcvt.s32.f32 %v2869_v28  ;;  %v2905_v21 = vcvt.f32.s32 %v2902_v58  ;;  %v3602_v28 = vcvt.s32.f32 %v3600_v50  ;;  %v3549_v58 = vcvt.s32.f32 %v3547_v29 }
 0x525   :  { %v9517_v61 = vsel %vm3947_vm7, %v4417_v7, %v4413_v55  ;;  %v4994_v24 = vadd.f32 -15.5, %v3683_v14  ;;  %v2920_v57 = vshll.u32 %v2919_v23, 16  ;;  %v2958_v10 = vcvt.f32.s32 %v9476_v45 }
 0x526   :  { %v4992_v42 = vadd.f32 -15.5, %v3681_v6  ;;  %v2908_v40 = vadd.s32 %v2907_v20, %v2905_v21  ;;  %v9522_v27 = vpop.xlane.xlu0 %2994  ;;  %v2881_v14 = vshll.u32 %v2880_v15, 16  ;;  %v2945_v6 = vcvt.f32.s32 %v9494_v19 }
 0x527   :  { %3538 = vadd.xlane.f32.xlu0 %v3536_v18  ;;  %v9526_v33 = vpop.xlane.xlu1 %2968  ;;  %v4446_v13 = vrot.slane %v4994_v24, %v6419_v37  ;;  %v3599_v19 = vand.u32 65535, %v9520_v31 }
 0x528   :  { %3499 = vadd.xlane.f32.xlu1 %v3497_v8  ;;  %v4436_v55 = vrot.slane %v4992_v42, %v6487_v38  ;;  %v3684_v25 = vcvt.s32.f32 %v2908_v40  ;;  %v3586_v8 = vand.u32 65535, %v9467_v63  ;;  %v3172_v42 = vcvt.s32.f32 %v3170_v0 }
 0x529   :  { %v2959_v63 = vshll.u32 %v2958_v10, 16  ;;  %v2946_v50 = vshll.u32 %v2945_v6, 16  ;;  %v3601_v31 = vcvt.s32.f32 %v3599_v19 }
 0x52a   :  { %v9531_v34 = vsel %vm3947_vm7, %v4436_v55, %v4432_v46  ;;  %v4995_v41 = vadd.f32 -15.5, %v3684_v25  ;;  %v2824_v11 = vpop.xlane.xlu0 %2823 }
 0x52b   :  { %3577 = vadd.xlane.f32.xlu0 %v3575_v5  ;;  %v2827_v59 = vcvt.f32.s32 %v2824_v11  ;;  %v9535_v39 = vpop.xlane.xlu1 %3007 }
 0x52c   :  { %3564 = vadd.xlane.f32.xlu1 %v3562_v49  ;;  %v4450_v46 = vrot.slane %v4995_v41, %v6439_v16  ;;  %v3588_v49 = vcvt.s32.f32 %v3586_v8 }
 0x52d   :  { %v2830_v18 = vadd.s32 %v2829_v30, %v2827_v59 }
 0x52e   :  { %v4451_v7 = vsel %vm10601_vm11, %v4450_v46, %v4446_v13  ;;  %v2915_v1 = vpop.xlane.xlu0 %2914  ;;  %vm10615_vm11 = vmmov %vm10609_vm3 }
 0x52f   :  { %3135 = vadd.xlane.f32.xlu0 %v3133_v53  ;;  %v3678_v48 = vcvt.s32.f32 %v2830_v18  ;;  %v2918_v26 = vcvt.f32.s32 %v2915_v1  ;;  %v2876_v20 = vpop.xlane.xlu1 %2875 }
 0x530   :  { %3605 = vadd.xlane.f32.xlu1 %v3602_v28  ;;  %v2879_v21 = vcvt.f32.s32 %v2876_v20 }
 0x531   :  { %v4989_v40 = vadd.f32 -15.5, %v3678_v48  ;;  %v2921_v56 = vadd.s32 %v2920_v57, %v2918_v26  ;;  %v3296_v57 = vcvt.f32.s32 %v9207_v9 }
 0x532   :  { %v2882_v35 = vadd.s32 %v2881_v14, %v2879_v21  ;;  %v2954_v5 = vpop.xlane.xlu0 %2953  ;;  %v3361_v21 = vcvt.f32.s32 %v9233_v12 }
 0x533   :  { %3551 = vadd.xlane.f32.xlu0 %v3549_v58  ;;  %v4422_v24 = vrot.slane %v4989_v40, %v6535_v62  ;;  %v3685_v45 = vcvt.s32.f32 %v2921_v56  ;;  %v2957_v55 = vcvt.f32.s32 %v2954_v5  ;;  %v2941_v25 = vpop.xlane.xlu1 %2940  ;;  %v3297_v6 = vshll.u32 %v3296_v57, 16 }
 0x534   :  { %3174 = vadd.xlane.f32.xlu1 %v3172_v42  ;;  %v3682_v41 = vcvt.s32.f32 %v2882_v35  ;;  %v2944_v11 = vcvt.f32.s32 %v2941_v25  ;;  %v3335_v56 = vcvt.f32.s32 %v9272_v17 }
 0x535   :  { %v4423_v53 = vsel %vm10602_vm4, %v4422_v24, %v9517_v61  ;;  %v4996_v29 = vadd.f32 -15.5, %v3685_v45  ;;  %v2960_v30 = vadd.s32 %v2959_v63, %v2957_v55  ;;  %v3362_v63 = vshll.u32 %v3361_v21, 16  ;;  %vm10616_vm4 = vmmov %vm10603_vm0 }
 0x536   :  { %v4993_v23 = vadd.f32 -15.5, %v3682_v41  ;;  %v2947_v59 = vadd.s32 %v2946_v50, %v2944_v11  ;;  %v9550_v0 = vpop.xlane.xlu0 %3020  ;;  %v3336_v25 = vshll.u32 %v3335_v56, 16 }
 0x537   :  { %3187 = vadd.xlane.f32.xlu0 %v3185_v54  ;;  %v4455_v15 = vrot.slane %v4996_v29, %v6487_v38  ;;  %v3688_v13 = vcvt.s32.f32 %v2960_v30  ;;  %v9553_v46 = vpop.xlane.xlu1 %2981 }
 0x538   :  { %3590 = vadd.xlane.f32.xlu1 %v3588_v49  ;;  %v4441_v28 = vrot.slane %v4993_v23, %v6535_v62  ;;  %v3687_v18 = vcvt.s32.f32 %v2947_v59 }
 0x539   :  { %v9557_v1 = vsel %vm3947_vm7, %v4455_v15, %v4451_v7  ;;  %v4999_v61 = vadd.f32 -15.5, %v3688_v13  ;;  %v3244_v7 = vcvt.f32.s32 %v9214_v43  ;;  %v3374_v43 = vcvt.f32.s32 %v9313_v60 }
 0x53a   :  { %v4442_v58 = vsel %vm10603_vm0, %v4441_v28, %v9531_v34  ;;  %v4998_v22 = vadd.f32 -15.5, %v3687_v18  ;;  %v9561_v8 = vpop.xlane.xlu0 %3059  ;;  %vm10617_vm0 = vcmask 1043459  }
 0x53b   :  { %v9565_v10 = vsel %vm10604_vm12, %v4442_v58, %v4423_v53  ;;  %v4469_v48 = vrot.slane %v4999_v61, %v6439_v16  ;;  %v9568_v26 = vpop.xlane.xlu1 %3046  ;;  %v3245_v40 = vshll.u32 %v3244_v7, 16  ;;  %v3375_v17 = vshll.u32 %v3374_v43, 16  ;;  %vm10618_vm12 = vmmov %vm10609_vm3 }
 0x53c   :  { %3603 = vadd.xlane.f32.xlu1 %v3601_v31  ;;  %v4465_v20 = vrot.slane %v4998_v22, %v6419_v37  ;;  %v2932_v22 = vcvt.f32.s32 %v9511_v47 }
 0x53e   :  { %v9573_v14 = vsel %vm10605_vm13, %v4469_v48, %v4465_v20  ;;  %v3292_v34 = vpop.xlane.xlu0 %3291  ;;  %v2933_v21 = vshll.u32 %v2932_v22, 16  ;;  %vm10619_vm13 = vmmov %vm10616_vm4 }
 0x53f   :  { %v3295_v42 = vcvt.f32.s32 %v3292_v34  ;;  %v3240_v9 = vpop.xlane.xlu1 %3239 }
 0x540   :  { %v3243_v35 = vcvt.f32.s32 %v3240_v9 }
 0x541   :  { %v3298_v5 = vadd.s32 %v3297_v6, %v3295_v42  ;;  %v2997_v42 = vcvt.f32.s32 %v9522_v27  ;;  %v3010_v27 = vcvt.f32.s32 %v9535_v39 }
 0x542   :  { %v3246_v54 = vadd.s32 %v3245_v40, %v3243_v35  ;;  %v3357_v49 = vpop.xlane.xlu0 %3356  ;;  %v2971_v40 = vcvt.f32.s32 %v9526_v33 }
 0x543   :  { %v3714_v24 = vcvt.s32.f32 %v3298_v5  ;;  %v3360_v45 = vcvt.f32.s32 %v3357_v49  ;;  %v3331_v55 = vpop.xlane.xlu1 %3330  ;;  %v2998_v49 = vshll.u32 %v2997_v42, 16 }
 0x544   :  { %v3710_v50 = vcvt.s32.f32 %v3246_v54  ;;  %v3334_v41 = vcvt.f32.s32 %v3331_v55 }
 0x545   :  { %v5025_v11 = vadd.f32 -15.5, %v3714_v24  ;;  %v3363_v12 = vadd.s32 %v3362_v63, %v3360_v45  ;;  %v2972_v45 = vshll.u32 %v2971_v40, 16 }
 0x546   :  { %v5021_v19 = vadd.f32 -15.5, %v3710_v50  ;;  %v3337_v53 = vadd.s32 %v3336_v25, %v3334_v41  ;;  %v9578_v29 = vpop.xlane.xlu0 %3397 }
 0x547   :  { %v4593_v30 = vrot.slane %v5025_v11, %v6535_v62  ;;  %v3370_v23 = vpop.xlane.xlu1 %3369  ;;  %v3719_v15 = vcvt.s32.f32 %v3363_v12 }
 0x548   :  { %v4574_v59 = vrot.slane %v5021_v19, %v6535_v62  ;;  %v3717_v60 = vcvt.s32.f32 %v3337_v53  ;;  %v3373_v13 = vcvt.f32.s32 %v3370_v23  ;;  %v3011_v19 = vshll.u32 %v3010_v27, 16 }
 0x549   :  { %v4594_v28 = vsel %vm10606_vm5, %v4593_v30, %v9392_v44  ;;  %v5030_v7 = vadd.f32 -15.5, %v3719_v15  ;;  %vm10620_vm5 = vmmov %vm10617_vm0 }
 0x54a   :  { %v4575_v18 = vsel %vm10607_vm10, %v4574_v59, %v9354_v3  ;;  %v5028_v31 = vadd.f32 -15.5, %v3717_v60  ;;  %v3376_v61 = vadd.s32 %v3375_v17, %v3373_v13  ;;  %v9586_v58 = vpop.xlane.xlu0 %3462  ;;  %v3348_v13 = vcvt.f32.s32 %v9334_v32  ;;  %vm10621_vm10 = vmmov %vm10609_vm3 }
 0x54b   :  { %v9590_v57 = vsel %vm10608_vm2, %v4594_v28, %v4575_v18  ;;  %v9592_v48 = vpop.xlane.xlu1 %3436  ;;  %v4617_v56 = vrot.slane %v5030_v7, %v6419_v37  ;;  %v3387_v32 = vcvt.f32.s32 %v9381_v4  ;;  %vm10622_vm2 = vmmov %vm10616_vm4 }
 0x54c   :  { %v4607_v20 = vrot.slane %v5028_v31, %v6487_v38  ;;  %v3720_v34 = vcvt.s32.f32 %v3376_v61 }
 0x54e   :  { %v9597_v44 = vsel %vm3947_vm7, %v4607_v20, %v9408_v2  ;;  %v5031_v3 = vadd.f32 -15.5, %v3720_v34  ;;  %v2928_v6 = vpop.xlane.xlu0 %2927  ;;  %v3413_v20 = vcvt.f32.s32 %v9356_v36  ;;  %v3426_v36 = vcvt.f32.s32 %v9396_v51 }
 0x54f   :  { %v2931_v9 = vcvt.f32.s32 %v2928_v6  ;;  %v9600_v47 = vpop.xlane.xlu1 %3475 }
 0x550   :  { %v4621_v35 = vrot.slane %v5031_v3, %v6439_v16  ;;  %v3414_v40 = vshll.u32 %v3413_v20, 16 }
 0x551   :  { %v2934_v5 = vadd.s32 %v2933_v21, %v2931_v9 }
 0x552   :  { %v9606_v54 = vsel %vm10609_vm3, %v4621_v35, %v4617_v56  ;;  %v2993_v2 = vpop.xlane.xlu0 %2992  ;;  %vm10623_vm3 = vcmask 1044484  }
 0x553   :  { %v3686_v63 = vcvt.s32.f32 %v2934_v5  ;;  %v2996_v43 = vcvt.f32.s32 %v2993_v2  ;;  %v2967_v24 = vpop.xlane.xlu1 %2966  ;;  %v3388_v2 = vshll.u32 %v3387_v32, 16 }
 0x554   :  { %v2970_v55 = vcvt.f32.s32 %v2967_v24 }
 0x555   :  { %v4997_v25 = vadd.f32 -15.5, %v3686_v63  ;;  %v2999_v50 = vadd.s32 %v2998_v49, %v2996_v43 }
 0x556   :  { %v2973_v33 = vadd.s32 %v2972_v45, %v2970_v55  ;;  %v3427_v55 = vshll.u32 %v3426_v36, 16 }
 0x557   :  { %v4460_v11 = vrot.slane %v4997_v25, %v6535_v62  ;;  %v3006_v12 = vpop.xlane.xlu1 %3005  ;;  %v3691_v53 = vcvt.s32.f32 %v2999_v50 }
 0x558   :  { %v9609_v41 = vpop.xlane.xlu0 %3033  ;;  %v3689_v17 = vcvt.s32.f32 %v2973_v33  ;;  %v3009_v30 = vcvt.f32.s32 %v3006_v12 }
 0x559   :  { %v4461_v23 = vsel %vm10610_vm14, %v4460_v11, %v9557_v1  ;;  %v5002_v18 = vadd.f32 -15.5, %v3691_v53  ;;  %vm10624_vm14 = vmmov %vm10621_vm10 }
 0x55a   :  { %v9616_v59 = vsel %vm10611_vm1, %v4461_v23, %v9565_v10  ;;  %v5000_v39 = vadd.f32 -15.5, %v3689_v17  ;;  %v3012_v15 = vadd.s32 %v3011_v19, %v3009_v30  ;;  %v3349_v10 = vshll.u32 %v3348_v13, 16  ;;  %vm10625_vm1 = vmmov %vm10622_vm2 }
 0x55b   :  { %v4484_v6 = vrot.slane %v5002_v18, %v6419_v37  ;;  %v2984_v17 = vcvt.f32.s32 %v9553_v46  ;;  %v3023_v46 = vcvt.f32.s32 %v9550_v0 }
 0x55c   :  { %v9618_v60 = vpop.xlane.xlu0 %3098  ;;  %v4474_v31 = vrot.slane %v5000_v39, %v6487_v38  ;;  %v3692_v61 = vcvt.s32.f32 %v3012_v15 }
 0x55d   :  { %v9621_v28 = vpop.xlane.xlu1 %3072 }
 0x55e   :  { %v9626_v22 = vsel %vm3947_vm7, %v4474_v31, %v9573_v14  ;;  %v5003_v1 = vadd.f32 -15.5, %v3692_v61  ;;  %v3049_v31 = vcvt.f32.s32 %v9568_v26  ;;  %v3062_v26 = vcvt.f32.s32 %v9561_v8 }
 0x560   :  { %v3344_v7 = vpop.xlane.xlu0 %3343  ;;  %v4488_v21 = vrot.slane %v5003_v1, %v6439_v16  ;;  %v3050_v32 = vshll.u32 %v3049_v31, 16 }
 0x561   :  { %v3347_v34 = vcvt.f32.s32 %v3344_v7  ;;  %v9629_v3 = vpop.xlane.xlu1 %3111 }
 0x562   :  { %v9635_v9 = vsel %vm10612_vm15, %v4488_v21, %v4484_v6  ;;  %vm10626_vm15 = vmmov %vm10623_vm3 }
 0x563   :  { %v3350_v42 = vadd.s32 %v3349_v10, %v3347_v34 }
 0x564   :  { %v3409_v14 = vpop.xlane.xlu0 %3408 }
 0x565   :  { %v3718_v56 = vcvt.s32.f32 %v3350_v42  ;;  %v3412_v35 = vcvt.f32.s32 %v3409_v14  ;;  %v3383_v5 = vpop.xlane.xlu1 %3382  ;;  %v3024_v14 = vshll.u32 %v3023_v46, 16 }
 0x566   :  { %v3386_v49 = vcvt.f32.s32 %v3383_v5 }
 0x567   :  { %v5029_v63 = vadd.f32 -15.5, %v3718_v56  ;;  %v3415_v43 = vadd.s32 %v3414_v40, %v3412_v35 }
 0x568   :  { %v3389_v4 = vadd.s32 %v3388_v2, %v3386_v49  ;;  %v9638_v24 = vpop.xlane.xlu0 %3449  ;;  %v3063_v49 = vshll.u32 %v3062_v26, 16 }
 0x569   :  { %v4612_v45 = vrot.slane %v5029_v63, %v6535_v62  ;;  %v3422_v27 = vpop.xlane.xlu1 %3421  ;;  %v3723_v25 = vcvt.s32.f32 %v3415_v43 }
 0x56a   :  { %v3721_v50 = vcvt.s32.f32 %v3389_v4  ;;  %v3425_v33 = vcvt.f32.s32 %v3422_v27 }
 0x56b   :  { %v4613_v11 = vsel %vm10613_vm9, %v4612_v45, %v9597_v44  ;;  %v5034_v23 = vadd.f32 -15.5, %v3723_v25  ;;  %vm10627_vm9 = vmmov %vm10621_vm10 }
 0x56c   :  { %v9645_v12 = vsel %vm10614_vm8, %v4613_v11, %v9590_v57  ;;  %v5032_v51 = vadd.f32 -15.5, %v3721_v50  ;;  %v3428_v19 = vadd.s32 %v3427_v55, %v3425_v33  ;;  %v9647_v53 = vpop.xlane.xlu0 %3514  ;;  %v2985_v57 = vshll.u32 %v2984_v17, 16  ;;  %vm10628_vm8 = vmmov %vm10625_vm1 }
 0x56d   :  { %v9650_v30 = vpop.xlane.xlu1 %3488  ;;  %v4636_v7 = vrot.slane %v5034_v23, %v6419_v37  ;;  %v3400_v50 = vcvt.f32.s32 %v9578_v29  ;;  %v3439_v29 = vcvt.f32.s32 %v9592_v48 }
 0x56e   :  { %v4626_v39 = vrot.slane %v5032_v51, %v6487_v38  ;;  %v3724_v15 = vcvt.s32.f32 %v3428_v19 }
 0x570   :  { %v9655_v13 = vsel %vm3947_vm7, %v4626_v39, %v9606_v54  ;;  %v5035_v44 = vadd.f32 -15.5, %v3724_v15  ;;  %v2980_v18 = vpop.xlane.xlu0 %2979  ;;  %v3465_v39 = vcvt.f32.s32 %v9586_v58  ;;  %v3478_v58 = vcvt.f32.s32 %v9600_v47 }
 0x571   :  { %v2983_v61 = vcvt.f32.s32 %v2980_v18  ;;  %v9658_v1 = vpop.xlane.xlu1 %3527 }
 0x572   :  { %v4640_v10 = vrot.slane %v5035_v44, %v6439_v16  ;;  %v3466_v46 = vshll.u32 %v3465_v39, 16 }
 0x573   :  { %v2986_v20 = vadd.s32 %v2985_v57, %v2983_v61 }
 0x574   :  { %v9664_v34 = vsel %vm10615_vm11, %v4640_v10, %v4636_v7  ;;  %v3045_v54 = vpop.xlane.xlu0 %3044  ;;  %vm4810_vm11 = vcmask 130048  }
 0x575   :  { %v3690_v6 = vcvt.s32.f32 %v2986_v20  ;;  %v3048_v21 = vcvt.f32.s32 %v3045_v54  ;;  %v3019_v42 = vpop.xlane.xlu1 %3018  ;;  %v3440_v54 = vshll.u32 %v3439_v29, 16 }
 0x576   :  { %v3022_v40 = vcvt.f32.s32 %v3019_v42 }
 0x577   :  { %v5001_v56 = vadd.f32 -15.5, %v3690_v6  ;;  %v3051_v35 = vadd.s32 %v3050_v32, %v3048_v21 }
 0x578   :  { %v3025_v0 = vadd.s32 %v3024_v14, %v3022_v40  ;;  %v9667_v5 = vpop.xlane.xlu0 %3085  ;;  %v3479_v40 = vshll.u32 %v3478_v58, 16 }
 0x579   :  { %v4479_v2 = vrot.slane %v5001_v56, %v6535_v62  ;;  %v3058_v36 = vpop.xlane.xlu1 %3057  ;;  %v3695_v63 = vcvt.s32.f32 %v3051_v35 }
 0x57a   :  { %v3693_v43 = vcvt.s32.f32 %v3025_v0  ;;  %v3061_v4 = vcvt.f32.s32 %v3058_v36 }
 0x57b   :  { %v4480_v45 = vsel %vm10616_vm4, %v4479_v2, %v9626_v22  ;;  %v5006_v11 = vadd.f32 -15.5, %v3695_v63  ;;  %vm10629_vm4 = vcmask 1045509  }
 0x57c   :  { %v9674_v27 = vsel %vm10617_vm0, %v4480_v45, %v9616_v59  ;;  %v5004_v8 = vadd.f32 -15.5, %v3693_v43  ;;  %v3064_v55 = vadd.s32 %v3063_v49, %v3061_v4  ;;  %v9676_v25 = vpop.xlane.xlu0 %3150  ;;  %v3401_v59 = vshll.u32 %v3400_v50, 16  ;;  %vm10630_vm0 = vmmov %vm10625_vm1 }
 0x57d   :  { %v9679_v33 = vpop.xlane.xlu1 %3124  ;;  %v4503_v18 = vrot.slane %v5006_v11, %v6419_v37  ;;  %v3036_v43 = vcvt.f32.s32 %v9609_v41  ;;  %v3075_v41 = vcvt.f32.s32 %v9621_v28 }
 0x57e   :  { %v4493_v51 = vrot.slane %v5004_v8, %v6487_v38  ;;  %v3696_v19 = vcvt.s32.f32 %v3064_v55 }
 0x580   :  { %v9684_v17 = vsel %vm3947_vm7, %v4493_v51, %v9635_v9  ;;  %v5007_v22 = vadd.f32 -15.5, %v3696_v19  ;;  %v3396_v23 = vpop.xlane.xlu0 %3395  ;;  %v3101_v51 = vcvt.f32.s32 %v9618_v60  ;;  %v3114_v60 = vcvt.f32.s32 %v9629_v3 }
 0x581   :  { %v3399_v15 = vcvt.f32.s32 %v3396_v23  ;;  %v9687_v44 = vpop.xlane.xlu1 %3163 }
 0x582   :  { %v4507_v57 = vrot.slane %v5007_v22, %v6439_v16  ;;  %v3102_v29 = vshll.u32 %v3101_v51, 16 }
 0x583   :  { %v3402_v31 = vadd.s32 %v3401_v59, %v3399_v15 }
 0x584   :  { %v9693_v61 = vsel %vm10618_vm12, %v4507_v57, %v4503_v18  ;;  %v3461_v9 = vpop.xlane.xlu0 %3460  ;;  %vm10631_vm12 = vmmov %vm10629_vm4 }
 0x585   :  { %v3722_v7 = vcvt.s32.f32 %v3402_v31  ;;  %v3464_v10 = vcvt.f32.s32 %v3461_v9  ;;  %v3435_v20 = vpop.xlane.xlu1 %3434  ;;  %v3076_v9 = vshll.u32 %v3075_v41, 16 }
 0x586   :  { %v3438_v32 = vcvt.f32.s32 %v3435_v20 }
 0x587   :  { %v5033_v6 = vadd.f32 -15.5, %v3722_v7  ;;  %v3467_v21 = vadd.s32 %v3466_v46, %v3464_v10 }
 0x588   :  { %v3441_v48 = vadd.s32 %v3440_v54, %v3438_v32  ;;  %v9696_v42 = vpop.xlane.xlu0 %3501  ;;  %v3452_v54 = vcvt.f32.s32 %v9638_v24  ;;  %v3517_v24 = vcvt.f32.s32 %v9647_v53 }
 0x589   :  { %v4631_v14 = vrot.slane %v5033_v6, %v6535_v62  ;;  %v3474_v26 = vpop.xlane.xlu1 %3473  ;;  %v3727_v56 = vcvt.s32.f32 %v3467_v21  ;;  %v3115_v6 = vshll.u32 %v3114_v60, 16 }
 0x58a   :  { %v3725_v35 = vcvt.s32.f32 %v3441_v48  ;;  %v3477_v0 = vcvt.f32.s32 %v3474_v26 }
 0x58b   :  { %v4632_v2 = vsel %vm10619_vm13, %v4631_v14, %v9655_v13  ;;  %v5038_v45 = vadd.f32 -15.5, %v3727_v56  ;;  %vm10632_vm13 = vmmov %vm10630_vm0 }
 0x58c   :  { %v9703_v36 = vsel %vm10620_vm5, %v4632_v2, %v9645_v12  ;;  %v5036_v47 = vadd.f32 -15.5, %v3725_v35  ;;  %v3480_v49 = vadd.s32 %v3479_v40, %v3477_v0  ;;  %v9705_v63 = vpop.xlane.xlu0 %3566  ;;  %v3037_v12 = vshll.u32 %v3036_v43, 16 }
 0x58d   :  { %v9708_v4 = vpop.xlane.xlu1 %3540  ;;  %v4655_v23 = vrot.slane %v5038_v45, %v6419_v37  ;;  %v3453_v0 = vshll.u32 %v3452_v54, 16  ;;  %v3491_v2 = vcvt.f32.s32 %v9650_v30  ;;  %v3530_v30 = vcvt.f32.s32 %v9658_v1 }
 0x58e   :  { %v4645_v8 = vrot.slane %v5036_v47, %v6487_v38  ;;  %v3728_v55 = vcvt.s32.f32 %v3480_v49  ;;  %vm10633_vm5 = vcmask 1046534  }
 0x58f   :  { %v3531_v60 = vshll.u32 %v3530_v30, 16 }
 0x590   :  { %v9713_v50 = vsel %vm3947_vm7, %v4645_v8, %v9664_v34  ;;  %v5039_v13 = vadd.f32 -15.5, %v3728_v55  ;;  %v3032_v11 = vpop.xlane.xlu0 %3031 }
 0x591   :  { %v3035_v19 = vcvt.f32.s32 %v3032_v11  ;;  %v9716_v22 = vpop.xlane.xlu1 %3579 }
 0x592   :  { %v4659_v59 = vrot.slane %v5039_v13, %v6439_v16 }
 0x593   :  { %v3038_v39 = vadd.s32 %v3037_v12, %v3035_v19  ;;  %v3492_v12 = vshll.u32 %v3491_v2, 16 }
 0x594   :  { %v9722_v15 = vsel %vm10621_vm10, %v4659_v59, %v4655_v23  ;;  %v3097_v34 = vpop.xlane.xlu0 %3096  ;;  %vm10634_vm10 = vmmov %vm10630_vm0 }
 0x595   :  { %v3694_v18 = vcvt.s32.f32 %v3038_v39  ;;  %v3100_v57 = vcvt.f32.s32 %v3097_v34  ;;  %v3071_v31 = vpop.xlane.xlu1 %3070 }
 0x596   :  { %v3074_v46 = vcvt.f32.s32 %v3071_v31 }
 0x597   :  { %v5005_v7 = vadd.f32 -15.5, %v3694_v18  ;;  %v3103_v10 = vadd.s32 %v3102_v29, %v3100_v57  ;;  %v3088_v57 = vcvt.f32.s32 %v9667_v5 }
 0x598   :  { %v3077_v28 = vadd.s32 %v3076_v9, %v3074_v46  ;;  %v9725_v20 = vpop.xlane.xlu0 %3137 }
 0x599   :  { %v4498_v58 = vrot.slane %v5005_v7, %v6535_v62  ;;  %v3110_v32 = vpop.xlane.xlu1 %3109  ;;  %v3699_v21 = vcvt.s32.f32 %v3103_v10 }
 0x59a   :  { %v3697_v48 = vcvt.s32.f32 %v3077_v28  ;;  %v3113_v14 = vcvt.f32.s32 %v3110_v32 }
 0x59b   :  { %v4499_v26 = vsel %vm10622_vm2, %v4498_v58, %v9684_v17  ;;  %v5010_v43 = vadd.f32 -15.5, %v3699_v21  ;;  %vm10635_vm2 = vmmov %vm10633_vm5 }
 0x59c   :  { %v5008_v40 = vadd.f32 -15.5, %v3697_v48  ;;  %v3116_v3 = vadd.s32 %v3115_v6, %v3113_v14  ;;  %v3448_v56 = vpop.xlane.xlu0 %3447  ;;  %v9733_v35 = vsel %vm10623_vm3, %v4499_v26, %v9674_v27  ;;  %v3518_v27 = vshll.u32 %v3517_v24, 16  ;;  %vm10636_vm3 = vmmov %vm10627_vm9 }
 0x59d   :  { %v3451_v47 = vcvt.f32.s32 %v3448_v56  ;;  %v9737_v49 = vpop.xlane.xlu1 %3176  ;;  %v4522_v41 = vrot.slane %v5010_v43, %v6419_v37  ;;  %v3089_v6 = vshll.u32 %v3088_v57, 16  ;;  %v3127_v48 = vcvt.f32.s32 %v9679_v33 }
 0x59e   :  { %v4512_v45 = vrot.slane %v5008_v40, %v6487_v38  ;;  %v3700_v8 = vcvt.s32.f32 %v3116_v3 }
 0x59f   :  { %v3454_v17 = vadd.s32 %v3453_v0, %v3451_v47  ;;  %v3128_v2 = vshll.u32 %v3127_v48, 16  ;;  %v3582_v48 = vcvt.f32.s32 %v9716_v22 }
 0x5a0   :  { %v4513_v55 = vsel %vm3947_vm7, %v4512_v45, %v9693_v61  ;;  %v5011_v13 = vadd.f32 -15.5, %v3700_v8  ;;  %v3513_v11 = vpop.xlane.xlu0 %3512 }
 0x5a1   :  { %v3726_v51 = vcvt.s32.f32 %v3454_v17  ;;  %v3516_v19 = vcvt.f32.s32 %v3513_v11  ;;  %v3487_v53 = vpop.xlane.xlu1 %3486 }
 0x5a2   :  { %v4526_v23 = vrot.slane %v5011_v13, %v6439_v16  ;;  %v3490_v59 = vcvt.f32.s32 %v3487_v53 }
 0x5a3   :  { %v5037_v39 = vadd.f32 -15.5, %v3726_v51  ;;  %v3519_v34 = vadd.s32 %v3518_v27, %v3516_v19 }
 0x5a4   :  { %v4527_v29 = vsel %vm10624_vm14, %v4526_v23, %v4522_v41  ;;  %v3493_v18 = vadd.s32 %v3492_v12, %v3490_v59  ;;  %v9746_v61 = vpop.xlane.xlu0 %3553  ;;  %v3543_v12 = vcvt.f32.s32 %v9708_v4  ;;  %v3166_v59 = vcvt.f32.s32 %v9687_v44  ;;  %vm10637_vm14 = vmmov %vm10630_vm0 }
 0x5a5   :  { %v4650_v31 = vrot.slane %v5037_v39, %v6535_v62  ;;  %v3526_v9 = vpop.xlane.xlu1 %3525  ;;  %v3731_v46 = vcvt.s32.f32 %v3519_v34 }
 0x5a6   :  { %v3729_v1 = vcvt.s32.f32 %v3493_v18  ;;  %v3529_v7 = vcvt.f32.s32 %v3526_v9 }
 0x5a7   :  { %v4651_v10 = vsel %vm10625_vm1, %v4650_v31, %v9713_v50  ;;  %v5042_v14 = vadd.f32 -15.5, %v3731_v46  ;;  %v3544_v31 = vshll.u32 %v3543_v12, 16  ;;  %vm10638_vm1 = vcmask 1047559  }
 0x5a8   :  { %v5040_v28 = vadd.f32 -15.5, %v3729_v1  ;;  %v3532_v54 = vadd.s32 %v3531_v60, %v3529_v7  ;;  %v3084_v58 = vpop.xlane.xlu0 %3083  ;;  %v9754_v32 = vsel %vm10626_vm15, %v4651_v10, %v9703_v36  ;;  %v3153_v60 = vcvt.f32.s32 %v9676_v25 }
 0x5a9   :  { %v3087_v21 = vcvt.f32.s32 %v3084_v58  ;;  %v9756_v5 = vpop.xlane.xlu1 %3592  ;;  %v4674_v47 = vrot.slane %v5042_v14, %v6419_v37  ;;  %v3569_v58 = vcvt.f32.s32 %v9705_v63  ;;  %vm10639_vm15 = vcmask 261120  }
 0x5aa   :  { %v4664_v26 = vrot.slane %v5040_v28, %v6487_v38  ;;  %v3732_v40 = vcvt.s32.f32 %v3532_v54  ;;  %v3167_v54 = vshll.u32 %v3166_v59, 16  ;;  %v3154_v63 = vshll.u32 %v3153_v60, 16 }
 0x5ab   :  { %v3090_v3 = vadd.s32 %v3089_v6, %v3087_v21  ;;  %v3140_v6 = vcvt.f32.s32 %v9725_v20 }
 0x5ac   :  { %v9762_v50 = vsel %vm3947_vm7, %v4664_v26, %v9722_v15  ;;  %v5043_v56 = vadd.f32 -15.5, %v3732_v40  ;;  %v9764_v0 = vpop.xlane.xlu0 %3148  ;;  %v3504_v15 = vcvt.f32.s32 %v9696_v42  ;;  %v3556_v40 = vcvt.f32.s32 %v9746_v61 }
 0x5ad   :  { %v3698_v36 = vcvt.s32.f32 %v3090_v3  ;;  %v3123_v24 = vpop.xlane.xlu1 %3122  ;;  %v3152_v14 = vcvt.f32.s32 %v9764_v0  ;;  %v3583_v0 = vshll.u32 %v3582_v48, 16  ;;  %v3595_v61 = vcvt.f32.s32 %v9756_v5 }
 0x5ae   :  { %v4678_v43 = vrot.slane %v5043_v56, %v6439_v16  ;;  %v3126_v33 = vcvt.f32.s32 %v3123_v24  ;;  %v3505_v39 = vshll.u32 %v3504_v15, 16 }
 0x5af   :  { %v5009_v45 = vadd.f32 -15.5, %v3698_v36 }
 0x5b0   :  { %v9769_v8 = vsel %vm10627_vm9, %v4678_v43, %v4674_v47  ;;  %v3129_v17 = vadd.s32 %v3128_v2, %v3126_v33  ;;  %v9771_v13 = vpop.xlane.xlu0 %3189  ;;  %v3570_v2 = vshll.u32 %v3569_v58, 16  ;;  %v3141_v47 = vshll.u32 %v3140_v6, 16  ;;  %vm10640_vm9 = vmmov %vm10636_vm3 }
 0x5b1   :  { %v4517_v11 = vrot.slane %v5009_v45, %v6535_v62  ;;  %v3162_v27 = vpop.xlane.xlu1 %3161  ;;  %v3179_v45 = vcvt.f32.s32 %v9737_v49 }
 0x5b2   :  { %v3701_v51 = vcvt.s32.f32 %v3129_v17  ;;  %v3165_v46 = vcvt.f32.s32 %v3162_v27  ;;  %v3155_v17 = vadd.s32 %v3154_v63, %v3152_v14 }
 0x5b3   :  { %v4518_v19 = vsel %vm10628_vm8, %v4517_v11, %v4513_v55  ;;  %v3557_v11 = vshll.u32 %v3556_v40, 16  ;;  %vm10641_vm8 = vmmov %vm10630_vm0 }
 0x5b4   :  { %v5012_v53 = vadd.f32 -15.5, %v3701_v51  ;;  %v3539_v30 = vpop.xlane.xlu0 %3538  ;;  %v9779_v23 = vsel %vm10629_vm4, %v4518_v19, %v9733_v35  ;;  %v3168_v3 = vadd.s32 %v3167_v54, %v3165_v46  ;;  %v3192_v51 = vcvt.f32.s32 %v9771_v13  ;;  %vm10642_vm4 = vmmov %vm10638_vm1 }
 0x5b5   :  { %v3542_v42 = vcvt.f32.s32 %v3539_v30  ;;  %v3500_v57 = vpop.xlane.xlu1 %3499 }
 0x5b6   :  { %v5100_v41 = vpop.f32.mrb[0].mxu1  ;;  %v4531_v4 = vrot.slane %v5012_v53, %v6487_v38  ;;  %v3503_v55 = vcvt.f32.s32 %v3500_v57  ;;  %v3704_v27 = vcvt.s32.f32 %v3168_v3  ;;  %v3703_v57 = vcvt.s32.f32 %v3155_v17 }
 0x5b7   :  { %v4803_v34 = vand.u32 2147483647, %v5100_v41  ;;  %v4332_v18 = vpop.f32.mrb[1].mxu1  ;;  %v3545_v7 = vadd.s32 %v3544_v31, %v3542_v42  ;;  %v3596_v31 = vshll.u32 %v3595_v61, 16 }
 0x5b8   :  { %v4802_v9 = vand.u32 2147483647, %v4332_v18  ;;  %v9787_v35 = vsel %vm3947_vm7, %v4531_v4, %v4527_v29  ;;  %v3506_v10 = vadd.s32 %v3505_v39, %v3503_v55  ;;  %v3578_v28 = vpop.xlane.xlu0 %3577  ;;  %v3180_v18 = vshll.u32 %v3179_v45, 16 }
 0x5b9   :  { %v9784_v1 = vmul.f32 0.00036656891, %v4803_v34  ;;  %v3565_v21 = vpop.xlane.xlu1 %3564  ;;  %v3733_v56 = vcvt.s32.f32 %v3545_v7  ;;  %v3581_v36 = vcvt.f32.s32 %v3578_v28  ;;  %v5015_v4 = vadd.f32 -15.5, %v3704_v27 }
 0x5ba   :  { %v9789_v44 = vmul.f32 0.00036656891, %v4802_v9  ;;  %v3730_v29 = vcvt.s32.f32 %v3506_v10  ;;  %v3568_v43 = vcvt.f32.s32 %v3565_v21  ;;  %v3193_v55 = vshll.u32 %v3192_v51, 16 }
 0x5bb   :  { %v4814_v25 = vsel %vm4810_vm11, %v9784_v1, 0.0  ;;  %v5044_v19 = vadd.f32 -15.5, %v3733_v56  ;;  %v3584_v30 = vadd.s32 %v3583_v0, %v3581_v36  ;;  %v4545_v14 = vrot.slane %v5015_v4, %v6439_v16 }
 0x5bc   :  { %4815 = vadd.xlane.f32.xlu1 %v4814_v25  ;;  %v4811_v26 = vsel %vm4810_vm11, %v9789_v44, 0.0  ;;  %v5041_v20 = vadd.f32 -15.5, %v3730_v29  ;;  %v3136_v24 = vpop.xlane.xlu0 %3135  ;;  %v3571_v59 = vadd.s32 %v3570_v2, %v3568_v43 }
 0x5bd   :  { %4812 = vadd.xlane.f32.xlu0 %v4811_v26  ;;  %v3139_v22 = vcvt.f32.s32 %v3136_v24  ;;  %v3606_v33 = vpop.xlane.xlu1 %3605  ;;  %v4683_v60 = vrot.slane %v5044_v19, %v6487_v38 }
 0x5be   :  { %v4669_v15 = vrot.slane %v5041_v20, %v6535_v62  ;;  %v3735_v10 = vcvt.s32.f32 %v3571_v59  ;;  %v3608_v21 = vcvt.f32.s32 %v3606_v33 }
 0x5bf   :  { %v3142_v12 = vadd.s32 %v3141_v47, %v3139_v22  ;;  %v4684_v3 = vsel %vm3947_vm7, %v4683_v60, %v9769_v8 }
 0x5c0   :  { %v4670_v53 = vsel %vm10630_vm0, %v4669_v15, %v9762_v50  ;;  %v3552_v41 = vpop.xlane.xlu0 %3551  ;;  %v3736_v50 = vcvt.s32.f32 %v3584_v30  ;;  %v5046_v24 = vadd.f32 -15.5, %v3735_v10  ;;  %v3609_v22 = vshll.u32 %v3608_v21, 16  ;;  %vm10643_vm0 = vmmov %vm10639_vm15 }
 0x5c1   :  { %v3702_v39 = vcvt.s32.f32 %v3142_v12  ;;  %v3555_v42 = vcvt.f32.s32 %v3552_v41  ;;  %v3175_v49 = vpop.xlane.xlu1 %3174  ;;  %v4720_v34 = vsel %vm10631_vm12, %v4670_v53, %v9754_v32  ;;  %v5014_v32 = vadd.f32 -15.5, %v3703_v57 }
 0x5c2   :  { %v3178_v5 = vcvt.f32.s32 %v3175_v49  ;;  %v5047_v36 = vadd.f32 -15.5, %v3736_v50  ;;  %v4693_v51 = vrot.slane %v5046_v24, %v6419_v37 }
 0x5c3   :  { %v5013_v9 = vadd.f32 -15.5, %v3702_v39  ;;  %v3558_v13 = vadd.s32 %v3557_v11, %v3555_v42 }
 0x5c4   :  { %v3181_v46 = vadd.s32 %v3180_v18, %v3178_v5  ;;  %v3188_v7 = vpop.xlane.xlu0 %3187  ;;  %v4697_v12 = vrot.slane %v5047_v36, %v6439_v16 }
 0x5c5   :  { %v4536_v28 = vrot.slane %v5013_v9, %v6535_v62  ;;  %v3734_v54 = vcvt.s32.f32 %v3558_v13  ;;  %v3191_v58 = vcvt.f32.s32 %v3188_v7  ;;  %v3591_v6 = vpop.xlane.xlu1 %3590 }
 0x5c6   :  { %v3705_v25 = vcvt.s32.f32 %v3181_v46  ;;  %v3594_v48 = vcvt.f32.s32 %v3591_v6  ;;  %v4698_v42 = vsel %vm10640_vm9, %v4697_v12, %v4693_v51 }
 0x5c7   :  { %v5045_v29 = vadd.f32 -15.5, %v3734_v54  ;;  %v3194_v26 = vadd.s32 %v3193_v55, %v3191_v58  ;;  %v4537_v40 = vsel %vm10632_vm13, %v4536_v28, %v9787_v35  ;;  %v4541_v35 = vrot.slane %v5014_v32, %v6419_v37 }
 0x5c8   :  { %v5016_v63 = vadd.f32 -15.5, %v3705_v25  ;;  %v3597_v56 = vadd.s32 %v3596_v31, %v3594_v48  ;;  %v4714_v20 = vsel %vm10633_vm5, %v4537_v40, %v9779_v23 }
 0x5c9   :  { %v4688_v2 = vrot.slane %v5045_v29, %v6535_v62  ;;  %v3706_v47 = vcvt.s32.f32 %v3194_v26  ;;  %v3604_v43 = vpop.xlane.xlu1 %3603  ;;  %v4546_v61 = vsel %vm10636_vm3, %v4545_v14, %v4541_v35 }
 0x5ca   :  { %v4550_v33 = vrot.slane %v5016_v63, %v6487_v38  ;;  %v3737_v0 = vcvt.s32.f32 %v3597_v56  ;;  %v3607_v45 = vcvt.f32.s32 %v3604_v43 }
 0x5cb   :  { %v5017_v17 = vadd.f32 -15.5, %v3706_v47  ;;  %v4689_v8 = vsel %vm10634_vm10, %v4688_v2, %v4684_v3  ;;  %v5058_v2 = vld [vmem:[%s9876_s5] ss:$0 sm:$0xff]  ;;  %s5171_s5 = smov [#allocation2]  }
 0x5cc   :  { %v5048_v15 = vadd.f32 -15.5, %v3737_v0  ;;  %v3610_v11 = vadd.s32 %v3609_v22, %v3607_v45  ;;  %v4721_v23 = vsel %vm10635_vm2, %v4689_v8, %v4720_v34  ;;  %v4551_v53 = vsel %vm3947_vm7, %v4550_v33, %v4546_v61  ;;  %v5059_v22 = vld [vmem:[%s9877_s6] ss:$0 sm:$0xff]  ;;  %s4899_s6 = sshll.u32 %s5171_s5, 4  ;;  %s4900_s6 = int_to_ptr.vmem [resolvable:$true] %s4899_s6 }
 0x5cd   :  { %v4555_v27 = vrot.slane %v5017_v17, %v6535_v62  ;;  %s5145_s26 = scalar_lea.vmem %s4900_s6, 512  ;;  %p5150_p1 = scmp.lt.s32.totalorder %s4900_s6, %s4900_s6 }
 0x5ce   :  { %v3738_v19 = vcvt.s32.f32 %v3610_v11  ;;  %v4702_v30 = vrot.slane %v5048_v15, %v6487_v38  ;;  %p5146_p0 = scmp.ne.s32.totalorder %s4900_s6, %s5145_s26  ;;  %p5151_p2 = scmp.lt.s32.totalorder %s5145_s26, %s5145_s26 }
 0x5cf   :  { %v4556_v41 = vsel %vm10637_vm14, %v4555_v27, %v4551_v53 }
 0x5d0   :  { %v5049_v59 = vadd.f32 -15.5, %v3738_v19  ;;  %v4715_v39 = vsel %vm10638_vm1, %v4556_v41, %v4714_v20  ;;  %v4703_v16 = vsel %vm3947_vm7, %v4702_v30, %v4698_v42  ;;  %p5152_p3 = por %p5151_p2, %p5150_p1 }
 0x5d1   :  { %5105 = vmatprep.mubr.msk.f32.mxu1 %vm10639_vm15, %v4715_v39 }
 0x5d2   :  { %v4707_v49 = vrot.slane %v5049_v59, %v6535_v62  ;;  %p5153_p4 = pnand %p5152_p3, %p5146_p0 }
 0x5d4   :  { %v4708_v37 = vsel %vm10641_vm8, %v4707_v49, %v4703_v16 }
 0x5d5   :  { %v4722_v34 = vsel %vm10642_vm4, %v4708_v37, %v4721_v23 }
 0x5d6   :  { %v5114_v18 = vpack.c.bf16 %v4722_v34, %v4715_v39 }
 0x5d8   :  { %5116 = vmatprep.subr.msk.bf16.mxu1 %vm9119_vm6, %v5114_v18 }
 0x5d9   :  { %5119 = vmatpush3.bf16.xpose.msk.msra.mxu1 %vm9119_vm6, %v5114_v18 }
 0x5e0   :  { %5106 = vmatmul.mubr.msk.f32.vlgmr.msra.gmra.mrb[2].mxu1 %vm10643_vm0, %v4722_v34 }
 0x649   :  { %v4816_v38 = vpop.xlane.xlu1 %4815 }
 0x64a   :  { %v4813_v57 = vpop.xlane.xlu0 %4812  ;;  %v4825_v5 = vmul.f32 0.0625, %v4816_v38 }
 0x64b   :  { %v4824_v31 = vmul.f32 0.0625, %v4813_v57 }
 0x64c   :  { %v4829_v4 = vsub.f32 %v9784_v1, %v4825_v5 }
 0x64d   :  { %v4828_v55 = vsub.f32 %v9789_v44, %v4824_v31 }
 0x64e   :  { %v4833_v52 = vmul.f32 %v4829_v4, %v4829_v4 }
 0x64f   :  { %v4832_v28 = vmul.f32 %v4828_v55, %v4828_v55 }
 0x650   :  { %v4839_v54 = vsel %vm4810_vm11, %v4833_v52, 0.0 }
 0x651   :  { %v4836_v1 = vsel %vm4810_vm11, %v4832_v28, 0.0 }
 0x6b3   :  { %v5107_v62 = vpop.f32.mrb[2].mxu1 }
 0x6b4   :  { %v4805_v9 = vand.u32 2147483647, %v5107_v62  ;;  %v4793_v13 = vpop.f32.mrb[3].mxu1 }
 0x6b5   :  { %v4804_v60 = vand.u32 2147483647, %v4793_v13 }
 0x6b6   :  { %v4809_v50 = vmul.f32 0.00036656891, %v4805_v9 }
 0x6b7   :  { %v4808_v46 = vmul.f32 0.00036656891, %v4804_v60 }
 0x6b8   :  { %v4820_v7 = vsel %vm4810_vm11, %v4809_v50, 0.0 }
 0x6b9   :  { %4821 = vadd.xlane.f32.xlu1 %v4820_v7  ;;  %v4817_v10 = vsel %vm4810_vm11, %v4808_v46, 0.0 }
 0x6ba   :  { %4818 = vadd.xlane.f32.xlu0 %v4817_v10 }
 0x6bd   :  { %4840 = vadd.xlane.f32.xlu1 %v4839_v54 }
 0x6be   :  { %4837 = vadd.xlane.f32.xlu0 %v4836_v1 }
 0x746   :  { %v4822_v58 = vpop.xlane.xlu1 %4821 }
 0x747   :  { %v4827_v6 = vmul.f32 0.0625, %v4822_v58  ;;  %v4819_v44 = vpop.xlane.xlu0 %4818 }
 0x748   :  { %v4826_v32 = vmul.f32 0.0625, %v4819_v44 }
 0x749   :  { %v4831_v21 = vsub.f32 %v4809_v50, %v4827_v6 }
 0x74a   :  { %v4830_v25 = vsub.f32 %v4808_v46, %v4826_v32  ;;  %v4841_v48 = vpop.xlane.xlu1 %4840 }
 0x74b   :  { %v4849_v14 = vmul.f32 0.0625, %v4841_v48  ;;  %v4838_v29 = vpop.xlane.xlu0 %4837  ;;  %v4835_v26 = vmul.f32 %v4831_v21, %v4831_v21 }
 0x74c   :  { %v4848_v40 = vmul.f32 0.0625, %v4838_v29  ;;  %v4834_v3 = vmul.f32 %v4830_v25, %v4830_v25 }
 0x74d   :  { %v4853_v63 = vadd.f32 1e-05, %v4849_v14  ;;  %v4845_v56 = vsel %vm4810_vm11, %v4835_v26, 0.0 }
 0x74e   :  { %v4852_v20 = vadd.f32 1e-05, %v4848_v40  ;;  %4846 = vadd.xlane.f32.xlu1 %v4845_v56  ;;  %v4842_v36 = vsel %vm4810_vm11, %v4834_v3, 0.0 }
 0x74f   :  { %5137 = vrsqrt.f32 %v4853_v63  ;;  %4843 = vadd.xlane.f32.xlu0 %v4842_v36 }
 0x750   :  { %5139 = vrsqrt.f32 %v4852_v20 }
 0x759   :  { %v5138_v24 = vpop.eup %5137 }
 0x75a   :  { %v5140_v47 = vpop.eup %5139  ;;  %v4861_v43 = vmul.f32 %v5138_v24, %v4829_v4 }
 0x75b   :  { %v4860_v33 = vmul.f32 %v5140_v47, %v4828_v55 }
 0x75c   :  { %v4872_v0 = vmul.f32 %v5058_v2, %v4861_v43 }
 0x75d   :  { %v4871_v45 = vmul.f32 %v5058_v2, %v4860_v33 }
 0x75e   :  { %v4883_v35 = vadd.f32 %v5059_v22, %v4872_v0 }
 0x75f   :  { %v4882_v17 = vadd.f32 %v5059_v22, %v4871_v45 }
 0x760   :  { %v4887_v8 = vmax.f32 %v4883_v35, 0.0 }
 0x761   :  { %v4886_v15 = vmax.f32 %v4882_v17, 0.0 }
 0x762   :  { %4891 = vst.msk [vmem:[#allocation2 + $0x8] sm:$0xff] %vm4810_vm11, %v4887_v8 }
 0x763   :  { %4890 = vst.msk [vmem:[#allocation2] sm:$0xff] %vm4810_vm11, %v4886_v15 }
 0x7db   :  { %v4847_v11 = vpop.xlane.xlu1 %4846 }
 0x7dc   :  { %v4851_v23 = vmul.f32 0.0625, %v4847_v11  ;;  %v4844_v61 = vpop.xlane.xlu0 %4843 }
 0x7dd   :  { %v4850_v27 = vmul.f32 0.0625, %v4844_v61 }
 0x7de   :  { %v4855_v12 = vadd.f32 1e-05, %v4851_v23 }
 0x7df   :  { %v4854_v51 = vadd.f32 1e-05, %v4850_v27 }
 0x7e0   :  { %5141 = vrsqrt.f32 %v4855_v12 }
 0x7e1   :  { %5143 = vrsqrt.f32 %v4854_v51 }
 0x7ea   :  { %v5142_v19 = vpop.eup %5141 }
 0x7eb   :  { %v5144_v53 = vpop.eup %5143  ;;  %v4863_v30 = vmul.f32 %v5142_v19, %v4831_v21 }
 0x7ec   :  { %v4862_v41 = vmul.f32 %v5144_v53, %v4830_v25 }
 0x7ed   :  { %v4874_v59 = vmul.f32 %v5058_v2, %v4863_v30 }
 0x7ee   :  { %v4873_v39 = vmul.f32 %v5058_v2, %v4862_v41 }
 0x7ef   :  { %v4885_v42 = vadd.f32 %v5059_v22, %v4874_v59 }
 0x7f0   :  { %v4884_v49 = vadd.f32 %v5059_v22, %v4873_v39 }
 0x7f1   :  { %v4889_v16 = vmax.f32 %v4885_v42, 0.0 }
 0x7f2   :  { %v4888_v37 = vmax.f32 %v4884_v49, 0.0 }
 0x7f3   :  { %4893 = vst.msk [vmem:[#allocation2 + $0x18] sm:$0xff] %vm4810_vm11, %v4889_v16 }
 0x7f4   :  { %4892 = vst.msk [vmem:[#allocation2 + $0x10] sm:$0xff] %vm4810_vm11, %v4888_v37 }
 0x7f5   :  { %5156 = shalt.err (!%p5153_p4)
}
 0x7f6   :  { %s5157_s29 = scalar_lea.hbm %s9878_s7, 512 }
 0x7f7   :  { %p5158_p5 = scmp.ne.s32.totalorder %s9878_s7, %s5157_s29  ;;  %p5161_p6 = scmp.lt.u32.totalorder %s5157_s29, %s9878_s7 }
 0x7f9   :  { %p5163_p7 = pnand %p5161_p6, %p5158_p5 }
 0x7fb   :  { %5166 = shalt.err (!%p5163_p7)
}
 0x7fc   :  { %s5172_s11 = smov 128   ;;  %s5173_s12 = smov 8  }
 0x7fd   :  { %4905 = dma.vmem_to_hbm [thread:$0]  %s4900_s6, 512, %s9878_s7, [#allocation3], %s5172_s11, %s5172_s11, %s5173_s12  }
 0x7fe   :  { %5167 = dma.done.wait [#allocation3], 512  }
 0x7ff   :  { %5168 = vsyncadd [#allocation3], 4294966784 }
 0x800   :  { %4909 = vsyncpa [#allocation3], 1 }

</bundles_post_ra>
